<compile_context>
chip_gen: v7x
topology: tpu7x:2x2x1
jax: 0.10.0
libtpu: 0.0.40
codegen_flags: <defaults>
</compile_context>

<pallas_src>
import functools

import numpy as np
import jax
import jax.numpy as jnp
from jax.experimental import pallas as pl
from jax.experimental.pallas import tpu as pltpu


# -----------------------------------------------------------------------------
# Kernel: whole forward for one sample per grid step.
# -----------------------------------------------------------------------------
def _fused_kernel(x_ref, b1m_ref, b1b_ref, b2m_ref, b2b_ref, b3m_ref, b3b_ref,
                  mask_ref, wc_ref, bc_ref, o_ref, *, W, S):
    def lane_shift(v, off):
        # v[:, p] <- v[:, p + off]  (circular; wrapped lanes are masked away).
        if off == 0:
            return v
        s = (-off) % S
        return jnp.concatenate([v[:, S - s:], v[:, :S - s]], axis=1)

    def conv_bn_relu(y, bm_ref, bb_ref):
        r_out = bm_ref.shape[1]
        acc = jnp.zeros((r_out, S), jnp.float32)
        k = 0
        for dh in range(3):
            for dw in range(3):
                off = (dh - 1) * W + (dw - 1)
                xs = lane_shift(y, off)                        # shared by all couts
                tap = jnp.dot(bm_ref[k], xs,
                              preferred_element_type=jnp.float32)  # MXU
                if off != 0:
                    tap = tap * mask_ref[k]   # zero taps whose source is outside frame
                acc = acc + tap
                k += 1
        return jnp.maximum(acc + bb_ref[...], 0.0)             # BN bias + ReLU

    y = x_ref[0]                               # (Cin*T, S) rows = (channel, frame)
    y = conv_bn_relu(y, b1m_ref, b1b_ref)      # (3*10, S)
    y = conv_bn_relu(y, b2m_ref, b2b_ref)      # (3*2 , S)
    y = conv_bn_relu(y, b3m_ref, b3b_ref)      # (3*1 , S)  (temporal dim squeezed)

    # TODO(synk): pretrained timm efficientnet_b0 backbone cannot be reproduced
    # in-script; stand-in = global average pool + linear projection (composed
    # with the classifier below).
    feats = jnp.sum(y, axis=1, keepdims=True) * (1.0 / float(S))          # (3, 1)
    logits = jnp.sum(feats * wc_ref[...], axis=0, keepdims=True) + bc_ref[...]
    o_ref[0] = logits


# -----------------------------------------------------------------------------
# Trace-time helpers (tiny, run in the wrapper).
# -----------------------------------------------------------------------------
def bn_affine(gamma, beta, mean, var, eps=1e-5):
    scale = gamma / jnp.sqrt(var + eps)
    return scale, beta - mean * scale


def _band_matrices(w_folded, t_in):
    """Banded matrices for the temporal/channel contraction, one per spatial tap.

    w_folded: (Cout, Cin, kt, 3, 3) BN-folded conv weights.  Returns
    (9, Cout*t_out, Cin*t_in) with B[3*dh+dw][(co,to),(ci,t)] =
    w[co,ci,t-to*kt,dh,dw] when 0 <= t - to*kt < kt, else 0 (stride_t == kt).
    """
    cout, cin, kt = w_folded.shape[:3]
    t_out = (t_in - kt) // kt + 1
    t = jnp.arange(t_in)
    to = jnp.arange(t_out)
    dt = jnp.arange(kt)
    onehot = (t[None, :, None] == to[:, None, None] * kt + dt[None, None, :]
              ).astype(jnp.float32)                           # (t_out, t_in, kt)
    b = jnp.einsum("ytd,oidhw->hwoyit", onehot, w_folded)     # (3,3,Cout,t_out,Cin,t_in)
    return b.reshape(9, cout * t_out, cin * t_in), t_out


def _tap_masks(H, W):
    """mask[3*dh+dw, 0, p]=1 iff source pixel of output p for tap (dh,dw) is in-frame."""
    m = np.zeros((9, 1, H * W), np.float32)
    for dh in range(3):
        for dw in range(3):
            mm = np.zeros((H, W), np.float32)
            i0, i1 = max(0, 1 - dh), min(H, H - dh + 1)
            j0, j1 = max(0, 1 - dw), min(W, W - dw + 1)
            mm[i0:i1, j0:j1] = 1.0
            m[3 * dh + dw, 0] = mm.reshape(-1)
    return jnp.asarray(m)


# -----------------------------------------------------------------------------
# Parameters + forward
# -----------------------------------------------------------------------------
def init_params(key, num_classes):
    ks = jax.random.split(key, 5)

    def kaiming(k, shape):  # kaiming_normal_, mode='fan_in', relu
        fan_in = shape[1] * shape[2] * shape[3] * shape[4]
        return jax.random.normal(k, shape, jnp.float32) * jnp.sqrt(2.0 / fan_in)

    p = {}
    p["w1"] = kaiming(ks[0], (3, 3, 5, 3, 3))
    p["w2"] = kaiming(ks[1], (3, 3, 5, 3, 3))
    p["w3"] = kaiming(ks[2], (3, 3, 2, 3, 3))
    # BatchNorm3d defaults (eval semantics): gamma=1, beta=0, running stats (0, 1)
    for i in (1, 2, 3):
        p[f"bn{i}"] = (jnp.ones(3, jnp.float32), jnp.zeros(3, jnp.float32),
                       jnp.zeros(3, jnp.float32), jnp.ones(3, jnp.float32))
    # backbone stand-in projection to the 1280-dim feature size efficientnet_b0 emits
    p["backbone_w"] = jax.random.normal(ks[3], (3, 1280), jnp.float32) * 0.05
    p["backbone_b"] = jnp.zeros((1280,), jnp.float32)
    # classifier Linear(1280, num_classes): xavier_normal_ weight, zero bias
    std = jnp.sqrt(2.0 / (1280 + num_classes))
    p["cls_w"] = jax.random.normal(ks[4], (1280, num_classes), jnp.float32) * std
    p["cls_b"] = jnp.zeros((num_classes,), jnp.float32)
    return p


def conv_embeding_v1_forward(params, x):
    N, C, T, H, W = x.shape
    S = H * W
    NC = params["cls_b"].shape[0]

    # Fold BN (eval mode) into the conv weights and build the per-tap band matrices.
    band, bias_rows = [], []
    t_cur = T
    for i in (1, 2, 3):
        w = params[f"w{i}"]
        scale, bias = bn_affine(*params[f"bn{i}"])
        wf = w * scale[:, None, None, None, None]
        bm, t_out = _band_matrices(wf, t_cur)
        band.append(bm)
        bias_rows.append(jnp.repeat(bias, t_out)[:, None])   # (Cout*t_out, 1)
        t_cur = t_out
    assert t_cur == 1, "temporal extent must collapse to 1 (torch.squeeze(dim=2))"

    masks = _tap_masks(H, W)                                  # (9, 1, S)
    # Compose backbone projection with the classifier (no activation between them).
    wc = params["backbone_w"] @ params["cls_w"]               # (3, NC)
    bc = (params["backbone_b"] @ params["cls_w"] + params["cls_b"])[None, :]

    x_rows = x.reshape(N, C * T, S)                           # pure reshape, no pad

    kernel = functools.partial(_fused_kernel, W=W, S=S)
    bcast2 = lambda n: (0, 0)
    bcast3 = lambda n: (0, 0, 0)
    out = pl.pallas_call(
        kernel,
        out_shape=jax.ShapeDtypeStruct((N, 1, NC), jnp.float32),
        grid=(N,),
        in_specs=[
            pl.BlockSpec((1, C * T, S), lambda n: (n, 0, 0)),
            pl.BlockSpec(band[0].shape, bcast3),
            pl.BlockSpec(bias_rows[0].shape, bcast2),
            pl.BlockSpec(band[1].shape, bcast3),
            pl.BlockSpec(bias_rows[1].shape, bcast2),
            pl.BlockSpec(band[2].shape, bcast3),
            pl.BlockSpec(bias_rows[2].shape, bcast2),
            pl.BlockSpec(masks.shape, bcast3),
            pl.BlockSpec(wc.shape, bcast2),
            pl.BlockSpec(bc.shape, bcast2),
        ],
        out_specs=pl.BlockSpec((1, 1, NC), lambda n: (n, 0, 0)),
        compiler_params=pltpu.CompilerParams(
            dimension_semantics=("parallel",)),
    )(x_rows, band[0], bias_rows[0], band[1], bias_rows[1],
      band[2], bias_rows[2], masks, wc, bc)
    return out[:, 0, :]


# -----------------------------------------------------------------------------
# Pure-JAX reference (for correctness check)
# -----------------------------------------------------------------------------
def _reference_forward(params, x):
    y = x
    for i in (1, 2, 3):
        w = params[f"w{i}"]
        kt = w.shape[2]
        scale, bias = bn_affine(*params[f"bn{i}"])
        y = jax.lax.conv_general_dilated(
            y, w, window_strides=(kt, 1, 1),
            padding=((0, 0), (1, 1), (1, 1)),
            dimension_numbers=("NCDHW", "OIDHW", "NCDHW"))
        y = jnp.maximum(y * scale[None, :, None, None, None]
                        + bias[None, :, None, None, None], 0.0)
    y = jnp.squeeze(y, axis=2)
    feats = jnp.mean(y, axis=(2, 3))
    feats = feats @ params["backbone_w"] + params["backbone_b"]
    return feats @ params["cls_w"] + params["cls_b"]


if __name__ == "__main__":
    num_classes = 10
    key = jax.random.PRNGKey(0)
    kx, kp = jax.random.split(key)
    # T = 50 so the temporal strides (5 * 5 * 2) collapse the depth dim to 1,
    # matching torch.squeeze(x, dim=2) in the reference forward.
    x = jax.random.normal(kx, (2, 3, 50, 16, 16), jnp.float32)
    params = init_params(kp, num_classes)

    fwd = jax.jit(functools.partial(conv_embeding_v1_forward, params))
    y = fwd(x)
    jax.block_until_ready(y)
    assert y.shape == (2, num_classes) and y.dtype == jnp.float32

    y_ref = jax.jit(functools.partial(_reference_forward, params))(x)
    err = float(jnp.max(jnp.abs(y - y_ref)))
    assert jnp.allclose(y, y_ref, rtol=2e-2, atol=2e-3), err
    print("KERNEL_OK")
</pallas_src>

<mosaic_0001>
module attributes {stable_mosaic.version = 11 : i64} {
  func.func @_fused_kernel(%arg0: i32, %arg1: memref<1x150x256xf32, #tpu.memory_space<vmem>>, %arg2: memref<9x30x150xf32, #tpu.memory_space<vmem>>, %arg3: memref<30x1xf32, #tpu.memory_space<vmem>>, %arg4: memref<9x6x30xf32, #tpu.memory_space<vmem>>, %arg5: memref<6x1xf32, #tpu.memory_space<vmem>>, %arg6: memref<9x3x6xf32, #tpu.memory_space<vmem>>, %arg7: memref<3x1xf32, #tpu.memory_space<vmem>>, %arg8: memref<9x1x256xf32, #tpu.memory_space<vmem>>, %arg9: memref<3x10xf32, #tpu.memory_space<vmem>>, %arg10: memref<1x10xf32, #tpu.memory_space<vmem>>, %arg11: memref<1x1x10xf32, #tpu.memory_space<vmem>>) attributes {dimension_semantics = [#tpu.dimension_semantics<parallel>], iteration_bounds = array<i64: 2>, scalar_prefetch = 0 : i64, scratch_operands = 0 : i64, tpu.core_type = #tpu.core_type<tc>, window_params = [{transform_indices = @transform_0, window_bounds = array<i64: 1, 150, 256>}, {pipeline_mode = #tpu.pipeline_mode<synchronous>, transform_indices = @transform_1, window_bounds = array<i64: 9, 30, 150>}, {pipeline_mode = #tpu.pipeline_mode<synchronous>, transform_indices = @transform_2, window_bounds = array<i64: 30, 1>}, {pipeline_mode = #tpu.pipeline_mode<synchronous>, transform_indices = @transform_3, window_bounds = array<i64: 9, 6, 30>}, {pipeline_mode = #tpu.pipeline_mode<synchronous>, transform_indices = @transform_4, window_bounds = array<i64: 6, 1>}, {pipeline_mode = #tpu.pipeline_mode<synchronous>, transform_indices = @transform_5, window_bounds = array<i64: 9, 3, 6>}, {pipeline_mode = #tpu.pipeline_mode<synchronous>, transform_indices = @transform_6, window_bounds = array<i64: 3, 1>}, {pipeline_mode = #tpu.pipeline_mode<synchronous>, transform_indices = @transform_7, window_bounds = array<i64: 9, 1, 256>}, {pipeline_mode = #tpu.pipeline_mode<synchronous>, transform_indices = @transform_8, window_bounds = array<i64: 3, 10>}, {pipeline_mode = #tpu.pipeline_mode<synchronous>, transform_indices = @transform_9, window_bounds = array<i64: 1, 10>}, {transform_indices = @transform_10, window_bounds = array<i64: 1, 1, 10>}]} {
    %c0 = arith.constant 0 : index
    %c0_0 = arith.constant 0 : index
    %c0_1 = arith.constant 0 : index
    %0 = vector.load %arg1[%c0, %c0_0, %c0_1] : memref<1x150x256xf32, #tpu.memory_space<vmem>>, vector<1x150x256xf32>
    %1 = vector.shape_cast %0 : vector<1x150x256xf32> to vector<150x256xf32>
    %cst = arith.constant 0.000000e+00 : f32
    %2 = vector.broadcast %cst : f32 to vector<30x256xf32>
    %3 = vector.extract_strided_slice %1 {offsets = [0, 239], sizes = [150, 17], strides = [1, 1]} : vector<150x256xf32> to vector<150x17xf32>
    %4 = vector.extract_strided_slice %1 {offsets = [0, 0], sizes = [150, 239], strides = [1, 1]} : vector<150x256xf32> to vector<150x239xf32>
    %5 = tpu.concatenate %3, %4 in 1 : vector<150x17xf32>, vector<150x239xf32> -> vector<150x256xf32>
    %c0_2 = arith.constant 0 : index
    %c0_3 = arith.constant 0 : index
    %c0_4 = arith.constant 0 : index
    %6 = vector.load %arg2[%c0_2, %c0_3, %c0_4] : memref<9x30x150xf32, #tpu.memory_space<vmem>>, vector<1x30x150xf32>
    %7 = vector.shape_cast %6 : vector<1x30x150xf32> to vector<30x150xf32>
    %cst_5 = arith.constant dense<0.000000e+00> : vector<30x256xf32>
    %8 = tpu.matmul %7, %5, %cst_5 {dimension_numbers = #tpu.dot_dimension_numbers<[1], [0], [0], [1], [0, 0, 1, 1], [], []>} : vector<30x150xf32>, vector<150x256xf32>, vector<30x256xf32> -> vector<30x256xf32>
    %c0_6 = arith.constant 0 : index
    %c0_7 = arith.constant 0 : index
    %c0_8 = arith.constant 0 : index
    %9 = vector.load %arg8[%c0_6, %c0_7, %c0_8] : memref<9x1x256xf32, #tpu.memory_space<vmem>>, vector<1x1x256xf32>
    %10 = vector.shape_cast %9 : vector<1x1x256xf32> to vector<1x256xf32>
    %11 = vector.broadcast %10 : vector<1x256xf32> to vector<30x256xf32>
    %12 = arith.mulf %8, %11 : vector<30x256xf32>
    %13 = arith.addf %2, %12 : vector<30x256xf32>
    %14 = vector.extract_strided_slice %1 {offsets = [0, 240], sizes = [150, 16], strides = [1, 1]} : vector<150x256xf32> to vector<150x16xf32>
    %15 = vector.extract_strided_slice %1 {offsets = [0, 0], sizes = [150, 240], strides = [1, 1]} : vector<150x256xf32> to vector<150x240xf32>
    %16 = tpu.concatenate %14, %15 in 1 : vector<150x16xf32>, vector<150x240xf32> -> vector<150x256xf32>
    %c1 = arith.constant 1 : index
    %c0_9 = arith.constant 0 : index
    %c0_10 = arith.constant 0 : index
    %17 = vector.load %arg2[%c1, %c0_9, %c0_10] : memref<9x30x150xf32, #tpu.memory_space<vmem>>, vector<1x30x150xf32>
    %18 = vector.shape_cast %17 : vector<1x30x150xf32> to vector<30x150xf32>
    %cst_11 = arith.constant dense<0.000000e+00> : vector<30x256xf32>
    %19 = tpu.matmul %18, %16, %cst_11 {dimension_numbers = #tpu.dot_dimension_numbers<[1], [0], [0], [1], [0, 0, 1, 1], [], []>} : vector<30x150xf32>, vector<150x256xf32>, vector<30x256xf32> -> vector<30x256xf32>
    %c1_12 = arith.constant 1 : index
    %c0_13 = arith.constant 0 : index
    %c0_14 = arith.constant 0 : index
    %20 = vector.load %arg8[%c1_12, %c0_13, %c0_14] : memref<9x1x256xf32, #tpu.memory_space<vmem>>, vector<1x1x256xf32>
    %21 = vector.shape_cast %20 : vector<1x1x256xf32> to vector<1x256xf32>
    %22 = vector.broadcast %21 : vector<1x256xf32> to vector<30x256xf32>
    %23 = arith.mulf %19, %22 : vector<30x256xf32>
    %24 = arith.addf %13, %23 : vector<30x256xf32>
    %25 = vector.extract_strided_slice %1 {offsets = [0, 241], sizes = [150, 15], strides = [1, 1]} : vector<150x256xf32> to vector<150x15xf32>
    %26 = vector.extract_strided_slice %1 {offsets = [0, 0], sizes = [150, 241], strides = [1, 1]} : vector<150x256xf32> to vector<150x241xf32>
    %27 = tpu.concatenate %25, %26 in 1 : vector<150x15xf32>, vector<150x241xf32> -> vector<150x256xf32>
    %c2 = arith.constant 2 : index
    %c0_15 = arith.constant 0 : index
    %c0_16 = arith.constant 0 : index
    %28 = vector.load %arg2[%c2, %c0_15, %c0_16] : memref<9x30x150xf32, #tpu.memory_space<vmem>>, vector<1x30x150xf32>
    %29 = vector.shape_cast %28 : vector<1x30x150xf32> to vector<30x150xf32>
    %cst_17 = arith.constant dense<0.000000e+00> : vector<30x256xf32>
    %30 = tpu.matmul %29, %27, %cst_17 {dimension_numbers = #tpu.dot_dimension_numbers<[1], [0], [0], [1], [0, 0, 1, 1], [], []>} : vector<30x150xf32>, vector<150x256xf32>, vector<30x256xf32> -> vector<30x256xf32>
    %c2_18 = arith.constant 2 : index
    %c0_19 = arith.constant 0 : index
    %c0_20 = arith.constant 0 : index
    %31 = vector.load %arg8[%c2_18, %c0_19, %c0_20] : memref<9x1x256xf32, #tpu.memory_space<vmem>>, vector<1x1x256xf32>
    %32 = vector.shape_cast %31 : vector<1x1x256xf32> to vector<1x256xf32>
    %33 = vector.broadcast %32 : vector<1x256xf32> to vector<30x256xf32>
    %34 = arith.mulf %30, %33 : vector<30x256xf32>
    %35 = arith.addf %24, %34 : vector<30x256xf32>
    %36 = vector.extract_strided_slice %1 {offsets = [0, 255], sizes = [150, 1], strides = [1, 1]} : vector<150x256xf32> to vector<150x1xf32>
    %37 = vector.extract_strided_slice %1 {offsets = [0, 0], sizes = [150, 255], strides = [1, 1]} : vector<150x256xf32> to vector<150x255xf32>
    %38 = tpu.concatenate %36, %37 in 1 : vector<150x1xf32>, vector<150x255xf32> -> vector<150x256xf32>
    %c3 = arith.constant 3 : index
    %c0_21 = arith.constant 0 : index
    %c0_22 = arith.constant 0 : index
    %39 = vector.load %arg2[%c3, %c0_21, %c0_22] : memref<9x30x150xf32, #tpu.memory_space<vmem>>, vector<1x30x150xf32>
    %40 = vector.shape_cast %39 : vector<1x30x150xf32> to vector<30x150xf32>
    %cst_23 = arith.constant dense<0.000000e+00> : vector<30x256xf32>
    %41 = tpu.matmul %40, %38, %cst_23 {dimension_numbers = #tpu.dot_dimension_numbers<[1], [0], [0], [1], [0, 0, 1, 1], [], []>} : vector<30x150xf32>, vector<150x256xf32>, vector<30x256xf32> -> vector<30x256xf32>
    %c3_24 = arith.constant 3 : index
    %c0_25 = arith.constant 0 : index
    %c0_26 = arith.constant 0 : index
    %42 = vector.load %arg8[%c3_24, %c0_25, %c0_26] : memref<9x1x256xf32, #tpu.memory_space<vmem>>, vector<1x1x256xf32>
    %43 = vector.shape_cast %42 : vector<1x1x256xf32> to vector<1x256xf32>
    %44 = vector.broadcast %43 : vector<1x256xf32> to vector<30x256xf32>
    %45 = arith.mulf %41, %44 : vector<30x256xf32>
    %46 = arith.addf %35, %45 : vector<30x256xf32>
    %c4 = arith.constant 4 : index
    %c0_27 = arith.constant 0 : index
    %c0_28 = arith.constant 0 : index
    %47 = vector.load %arg2[%c4, %c0_27, %c0_28] : memref<9x30x150xf32, #tpu.memory_space<vmem>>, vector<1x30x150xf32>
    %48 = vector.shape_cast %47 : vector<1x30x150xf32> to vector<30x150xf32>
    %cst_29 = arith.constant dense<0.000000e+00> : vector<30x256xf32>
    %49 = tpu.matmul %48, %1, %cst_29 {dimension_numbers = #tpu.dot_dimension_numbers<[1], [0], [0], [1], [0, 0, 1, 1], [], []>} : vector<30x150xf32>, vector<150x256xf32>, vector<30x256xf32> -> vector<30x256xf32>
    %50 = arith.addf %46, %49 : vector<30x256xf32>
    %51 = vector.extract_strided_slice %1 {offsets = [0, 1], sizes = [150, 255], strides = [1, 1]} : vector<150x256xf32> to vector<150x255xf32>
    %52 = vector.extract_strided_slice %1 {offsets = [0, 0], sizes = [150, 1], strides = [1, 1]} : vector<150x256xf32> to vector<150x1xf32>
    %53 = tpu.concatenate %51, %52 in 1 : vector<150x255xf32>, vector<150x1xf32> -> vector<150x256xf32>
    %c5 = arith.constant 5 : index
    %c0_30 = arith.constant 0 : index
    %c0_31 = arith.constant 0 : index
    %54 = vector.load %arg2[%c5, %c0_30, %c0_31] : memref<9x30x150xf32, #tpu.memory_space<vmem>>, vector<1x30x150xf32>
    %55 = vector.shape_cast %54 : vector<1x30x150xf32> to vector<30x150xf32>
    %cst_32 = arith.constant dense<0.000000e+00> : vector<30x256xf32>
    %56 = tpu.matmul %55, %53, %cst_32 {dimension_numbers = #tpu.dot_dimension_numbers<[1], [0], [0], [1], [0, 0, 1, 1], [], []>} : vector<30x150xf32>, vector<150x256xf32>, vector<30x256xf32> -> vector<30x256xf32>
    %c5_33 = arith.constant 5 : index
    %c0_34 = arith.constant 0 : index
    %c0_35 = arith.constant 0 : index
    %57 = vector.load %arg8[%c5_33, %c0_34, %c0_35] : memref<9x1x256xf32, #tpu.memory_space<vmem>>, vector<1x1x256xf32>
    %58 = vector.shape_cast %57 : vector<1x1x256xf32> to vector<1x256xf32>
    %59 = vector.broadcast %58 : vector<1x256xf32> to vector<30x256xf32>
    %60 = arith.mulf %56, %59 : vector<30x256xf32>
    %61 = arith.addf %50, %60 : vector<30x256xf32>
    %62 = vector.extract_strided_slice %1 {offsets = [0, 15], sizes = [150, 241], strides = [1, 1]} : vector<150x256xf32> to vector<150x241xf32>
    %63 = vector.extract_strided_slice %1 {offsets = [0, 0], sizes = [150, 15], strides = [1, 1]} : vector<150x256xf32> to vector<150x15xf32>
    %64 = tpu.concatenate %62, %63 in 1 : vector<150x241xf32>, vector<150x15xf32> -> vector<150x256xf32>
    %c6 = arith.constant 6 : index
    %c0_36 = arith.constant 0 : index
    %c0_37 = arith.constant 0 : index
    %65 = vector.load %arg2[%c6, %c0_36, %c0_37] : memref<9x30x150xf32, #tpu.memory_space<vmem>>, vector<1x30x150xf32>
    %66 = vector.shape_cast %65 : vector<1x30x150xf32> to vector<30x150xf32>
    %cst_38 = arith.constant dense<0.000000e+00> : vector<30x256xf32>
    %67 = tpu.matmul %66, %64, %cst_38 {dimension_numbers = #tpu.dot_dimension_numbers<[1], [0], [0], [1], [0, 0, 1, 1], [], []>} : vector<30x150xf32>, vector<150x256xf32>, vector<30x256xf32> -> vector<30x256xf32>
    %c6_39 = arith.constant 6 : index
    %c0_40 = arith.constant 0 : index
    %c0_41 = arith.constant 0 : index
    %68 = vector.load %arg8[%c6_39, %c0_40, %c0_41] : memref<9x1x256xf32, #tpu.memory_space<vmem>>, vector<1x1x256xf32>
    %69 = vector.shape_cast %68 : vector<1x1x256xf32> to vector<1x256xf32>
    %70 = vector.broadcast %69 : vector<1x256xf32> to vector<30x256xf32>
    %71 = arith.mulf %67, %70 : vector<30x256xf32>
    %72 = arith.addf %61, %71 : vector<30x256xf32>
    %73 = vector.extract_strided_slice %1 {offsets = [0, 16], sizes = [150, 240], strides = [1, 1]} : vector<150x256xf32> to vector<150x240xf32>
    %74 = vector.extract_strided_slice %1 {offsets = [0, 0], sizes = [150, 16], strides = [1, 1]} : vector<150x256xf32> to vector<150x16xf32>
    %75 = tpu.concatenate %73, %74 in 1 : vector<150x240xf32>, vector<150x16xf32> -> vector<150x256xf32>
    %c7 = arith.constant 7 : index
    %c0_42 = arith.constant 0 : index
    %c0_43 = arith.constant 0 : index
    %76 = vector.load %arg2[%c7, %c0_42, %c0_43] : memref<9x30x150xf32, #tpu.memory_space<vmem>>, vector<1x30x150xf32>
    %77 = vector.shape_cast %76 : vector<1x30x150xf32> to vector<30x150xf32>
    %cst_44 = arith.constant dense<0.000000e+00> : vector<30x256xf32>
    %78 = tpu.matmul %77, %75, %cst_44 {dimension_numbers = #tpu.dot_dimension_numbers<[1], [0], [0], [1], [0, 0, 1, 1], [], []>} : vector<30x150xf32>, vector<150x256xf32>, vector<30x256xf32> -> vector<30x256xf32>
    %c7_45 = arith.constant 7 : index
    %c0_46 = arith.constant 0 : index
    %c0_47 = arith.constant 0 : index
    %79 = vector.load %arg8[%c7_45, %c0_46, %c0_47] : memref<9x1x256xf32, #tpu.memory_space<vmem>>, vector<1x1x256xf32>
    %80 = vector.shape_cast %79 : vector<1x1x256xf32> to vector<1x256xf32>
    %81 = vector.broadcast %80 : vector<1x256xf32> to vector<30x256xf32>
    %82 = arith.mulf %78, %81 : vector<30x256xf32>
    %83 = arith.addf %72, %82 : vector<30x256xf32>
    %84 = vector.extract_strided_slice %1 {offsets = [0, 17], sizes = [150, 239], strides = [1, 1]} : vector<150x256xf32> to vector<150x239xf32>
    %85 = vector.extract_strided_slice %1 {offsets = [0, 0], sizes = [150, 17], strides = [1, 1]} : vector<150x256xf32> to vector<150x17xf32>
    %86 = tpu.concatenate %84, %85 in 1 : vector<150x239xf32>, vector<150x17xf32> -> vector<150x256xf32>
    %c8 = arith.constant 8 : index
    %c0_48 = arith.constant 0 : index
    %c0_49 = arith.constant 0 : index
    %87 = vector.load %arg2[%c8, %c0_48, %c0_49] : memref<9x30x150xf32, #tpu.memory_space<vmem>>, vector<1x30x150xf32>
    %88 = vector.shape_cast %87 : vector<1x30x150xf32> to vector<30x150xf32>
    %cst_50 = arith.constant dense<0.000000e+00> : vector<30x256xf32>
    %89 = tpu.matmul %88, %86, %cst_50 {dimension_numbers = #tpu.dot_dimension_numbers<[1], [0], [0], [1], [0, 0, 1, 1], [], []>} : vector<30x150xf32>, vector<150x256xf32>, vector<30x256xf32> -> vector<30x256xf32>
    %c8_51 = arith.constant 8 : index
    %c0_52 = arith.constant 0 : index
    %c0_53 = arith.constant 0 : index
    %90 = vector.load %arg8[%c8_51, %c0_52, %c0_53] : memref<9x1x256xf32, #tpu.memory_space<vmem>>, vector<1x1x256xf32>
    %91 = vector.shape_cast %90 : vector<1x1x256xf32> to vector<1x256xf32>
    %92 = vector.broadcast %91 : vector<1x256xf32> to vector<30x256xf32>
    %93 = arith.mulf %89, %92 : vector<30x256xf32>
    %94 = arith.addf %83, %93 : vector<30x256xf32>
    %c0_54 = arith.constant 0 : index
    %c0_55 = arith.constant 0 : index
    %95 = vector.load %arg3[%c0_54, %c0_55] : memref<30x1xf32, #tpu.memory_space<vmem>>, vector<30x1xf32>
    %96 = vector.broadcast %95 : vector<30x1xf32> to vector<30x256xf32>
    %97 = arith.addf %94, %96 : vector<30x256xf32>
    %cst_56 = arith.constant 0.000000e+00 : f32
    %98 = vector.broadcast %cst_56 : f32 to vector<30x256xf32>
    %99 = arith.maximumf %97, %98 : vector<30x256xf32>
    %cst_57 = arith.constant 0.000000e+00 : f32
    %100 = vector.broadcast %cst_57 : f32 to vector<6x256xf32>
    %101 = vector.extract_strided_slice %99 {offsets = [0, 239], sizes = [30, 17], strides = [1, 1]} : vector<30x256xf32> to vector<30x17xf32>
    %102 = vector.extract_strided_slice %99 {offsets = [0, 0], sizes = [30, 239], strides = [1, 1]} : vector<30x256xf32> to vector<30x239xf32>
    %103 = tpu.concatenate %101, %102 in 1 : vector<30x17xf32>, vector<30x239xf32> -> vector<30x256xf32>
    %c0_58 = arith.constant 0 : index
    %c0_59 = arith.constant 0 : index
    %c0_60 = arith.constant 0 : index
    %104 = vector.load %arg4[%c0_58, %c0_59, %c0_60] : memref<9x6x30xf32, #tpu.memory_space<vmem>>, vector<1x6x30xf32>
    %105 = vector.shape_cast %104 : vector<1x6x30xf32> to vector<6x30xf32>
    %cst_61 = arith.constant dense<0.000000e+00> : vector<6x256xf32>
    %106 = tpu.matmul %105, %103, %cst_61 {dimension_numbers = #tpu.dot_dimension_numbers<[1], [0], [0], [1], [0, 0, 1, 1], [], []>} : vector<6x30xf32>, vector<30x256xf32>, vector<6x256xf32> -> vector<6x256xf32>
    %c0_62 = arith.constant 0 : index
    %c0_63 = arith.constant 0 : index
    %c0_64 = arith.constant 0 : index
    %107 = vector.load %arg8[%c0_62, %c0_63, %c0_64] : memref<9x1x256xf32, #tpu.memory_space<vmem>>, vector<1x1x256xf32>
    %108 = vector.shape_cast %107 : vector<1x1x256xf32> to vector<1x256xf32>
    %109 = vector.broadcast %108 : vector<1x256xf32> to vector<6x256xf32>
    %110 = arith.mulf %106, %109 : vector<6x256xf32>
    %111 = arith.addf %100, %110 : vector<6x256xf32>
    %112 = vector.extract_strided_slice %99 {offsets = [0, 240], sizes = [30, 16], strides = [1, 1]} : vector<30x256xf32> to vector<30x16xf32>
    %113 = vector.extract_strided_slice %99 {offsets = [0, 0], sizes = [30, 240], strides = [1, 1]} : vector<30x256xf32> to vector<30x240xf32>
    %114 = tpu.concatenate %112, %113 in 1 : vector<30x16xf32>, vector<30x240xf32> -> vector<30x256xf32>
    %c1_65 = arith.constant 1 : index
    %c0_66 = arith.constant 0 : index
    %c0_67 = arith.constant 0 : index
    %115 = vector.load %arg4[%c1_65, %c0_66, %c0_67] : memref<9x6x30xf32, #tpu.memory_space<vmem>>, vector<1x6x30xf32>
    %116 = vector.shape_cast %115 : vector<1x6x30xf32> to vector<6x30xf32>
    %cst_68 = arith.constant dense<0.000000e+00> : vector<6x256xf32>
    %117 = tpu.matmul %116, %114, %cst_68 {dimension_numbers = #tpu.dot_dimension_numbers<[1], [0], [0], [1], [0, 0, 1, 1], [], []>} : vector<6x30xf32>, vector<30x256xf32>, vector<6x256xf32> -> vector<6x256xf32>
    %c1_69 = arith.constant 1 : index
    %c0_70 = arith.constant 0 : index
    %c0_71 = arith.constant 0 : index
    %118 = vector.load %arg8[%c1_69, %c0_70, %c0_71] : memref<9x1x256xf32, #tpu.memory_space<vmem>>, vector<1x1x256xf32>
    %119 = vector.shape_cast %118 : vector<1x1x256xf32> to vector<1x256xf32>
    %120 = vector.broadcast %119 : vector<1x256xf32> to vector<6x256xf32>
    %121 = arith.mulf %117, %120 : vector<6x256xf32>
    %122 = arith.addf %111, %121 : vector<6x256xf32>
    %123 = vector.extract_strided_slice %99 {offsets = [0, 241], sizes = [30, 15], strides = [1, 1]} : vector<30x256xf32> to vector<30x15xf32>
    %124 = vector.extract_strided_slice %99 {offsets = [0, 0], sizes = [30, 241], strides = [1, 1]} : vector<30x256xf32> to vector<30x241xf32>
    %125 = tpu.concatenate %123, %124 in 1 : vector<30x15xf32>, vector<30x241xf32> -> vector<30x256xf32>
    %c2_72 = arith.constant 2 : index
    %c0_73 = arith.constant 0 : index
    %c0_74 = arith.constant 0 : index
    %126 = vector.load %arg4[%c2_72, %c0_73, %c0_74] : memref<9x6x30xf32, #tpu.memory_space<vmem>>, vector<1x6x30xf32>
    %127 = vector.shape_cast %126 : vector<1x6x30xf32> to vector<6x30xf32>
    %cst_75 = arith.constant dense<0.000000e+00> : vector<6x256xf32>
    %128 = tpu.matmul %127, %125, %cst_75 {dimension_numbers = #tpu.dot_dimension_numbers<[1], [0], [0], [1], [0, 0, 1, 1], [], []>} : vector<6x30xf32>, vector<30x256xf32>, vector<6x256xf32> -> vector<6x256xf32>
    %c2_76 = arith.constant 2 : index
    %c0_77 = arith.constant 0 : index
    %c0_78 = arith.constant 0 : index
    %129 = vector.load %arg8[%c2_76, %c0_77, %c0_78] : memref<9x1x256xf32, #tpu.memory_space<vmem>>, vector<1x1x256xf32>
    %130 = vector.shape_cast %129 : vector<1x1x256xf32> to vector<1x256xf32>
    %131 = vector.broadcast %130 : vector<1x256xf32> to vector<6x256xf32>
    %132 = arith.mulf %128, %131 : vector<6x256xf32>
    %133 = arith.addf %122, %132 : vector<6x256xf32>
    %134 = vector.extract_strided_slice %99 {offsets = [0, 255], sizes = [30, 1], strides = [1, 1]} : vector<30x256xf32> to vector<30x1xf32>
    %135 = vector.extract_strided_slice %99 {offsets = [0, 0], sizes = [30, 255], strides = [1, 1]} : vector<30x256xf32> to vector<30x255xf32>
    %136 = tpu.concatenate %134, %135 in 1 : vector<30x1xf32>, vector<30x255xf32> -> vector<30x256xf32>
    %c3_79 = arith.constant 3 : index
    %c0_80 = arith.constant 0 : index
    %c0_81 = arith.constant 0 : index
    %137 = vector.load %arg4[%c3_79, %c0_80, %c0_81] : memref<9x6x30xf32, #tpu.memory_space<vmem>>, vector<1x6x30xf32>
    %138 = vector.shape_cast %137 : vector<1x6x30xf32> to vector<6x30xf32>
    %cst_82 = arith.constant dense<0.000000e+00> : vector<6x256xf32>
    %139 = tpu.matmul %138, %136, %cst_82 {dimension_numbers = #tpu.dot_dimension_numbers<[1], [0], [0], [1], [0, 0, 1, 1], [], []>} : vector<6x30xf32>, vector<30x256xf32>, vector<6x256xf32> -> vector<6x256xf32>
    %c3_83 = arith.constant 3 : index
    %c0_84 = arith.constant 0 : index
    %c0_85 = arith.constant 0 : index
    %140 = vector.load %arg8[%c3_83, %c0_84, %c0_85] : memref<9x1x256xf32, #tpu.memory_space<vmem>>, vector<1x1x256xf32>
    %141 = vector.shape_cast %140 : vector<1x1x256xf32> to vector<1x256xf32>
    %142 = vector.broadcast %141 : vector<1x256xf32> to vector<6x256xf32>
    %143 = arith.mulf %139, %142 : vector<6x256xf32>
    %144 = arith.addf %133, %143 : vector<6x256xf32>
    %c4_86 = arith.constant 4 : index
    %c0_87 = arith.constant 0 : index
    %c0_88 = arith.constant 0 : index
    %145 = vector.load %arg4[%c4_86, %c0_87, %c0_88] : memref<9x6x30xf32, #tpu.memory_space<vmem>>, vector<1x6x30xf32>
    %146 = vector.shape_cast %145 : vector<1x6x30xf32> to vector<6x30xf32>
    %cst_89 = arith.constant dense<0.000000e+00> : vector<6x256xf32>
    %147 = tpu.matmul %146, %99, %cst_89 {dimension_numbers = #tpu.dot_dimension_numbers<[1], [0], [0], [1], [0, 0, 1, 1], [], []>} : vector<6x30xf32>, vector<30x256xf32>, vector<6x256xf32> -> vector<6x256xf32>
    %148 = arith.addf %144, %147 : vector<6x256xf32>
    %149 = vector.extract_strided_slice %99 {offsets = [0, 1], sizes = [30, 255], strides = [1, 1]} : vector<30x256xf32> to vector<30x255xf32>
    %150 = vector.extract_strided_slice %99 {offsets = [0, 0], sizes = [30, 1], strides = [1, 1]} : vector<30x256xf32> to vector<30x1xf32>
    %151 = tpu.concatenate %149, %150 in 1 : vector<30x255xf32>, vector<30x1xf32> -> vector<30x256xf32>
    %c5_90 = arith.constant 5 : index
    %c0_91 = arith.constant 0 : index
    %c0_92 = arith.constant 0 : index
    %152 = vector.load %arg4[%c5_90, %c0_91, %c0_92] : memref<9x6x30xf32, #tpu.memory_space<vmem>>, vector<1x6x30xf32>
    %153 = vector.shape_cast %152 : vector<1x6x30xf32> to vector<6x30xf32>
    %cst_93 = arith.constant dense<0.000000e+00> : vector<6x256xf32>
    %154 = tpu.matmul %153, %151, %cst_93 {dimension_numbers = #tpu.dot_dimension_numbers<[1], [0], [0], [1], [0, 0, 1, 1], [], []>} : vector<6x30xf32>, vector<30x256xf32>, vector<6x256xf32> -> vector<6x256xf32>
    %c5_94 = arith.constant 5 : index
    %c0_95 = arith.constant 0 : index
    %c0_96 = arith.constant 0 : index
    %155 = vector.load %arg8[%c5_94, %c0_95, %c0_96] : memref<9x1x256xf32, #tpu.memory_space<vmem>>, vector<1x1x256xf32>
    %156 = vector.shape_cast %155 : vector<1x1x256xf32> to vector<1x256xf32>
    %157 = vector.broadcast %156 : vector<1x256xf32> to vector<6x256xf32>
    %158 = arith.mulf %154, %157 : vector<6x256xf32>
    %159 = arith.addf %148, %158 : vector<6x256xf32>
    %160 = vector.extract_strided_slice %99 {offsets = [0, 15], sizes = [30, 241], strides = [1, 1]} : vector<30x256xf32> to vector<30x241xf32>
    %161 = vector.extract_strided_slice %99 {offsets = [0, 0], sizes = [30, 15], strides = [1, 1]} : vector<30x256xf32> to vector<30x15xf32>
    %162 = tpu.concatenate %160, %161 in 1 : vector<30x241xf32>, vector<30x15xf32> -> vector<30x256xf32>
    %c6_97 = arith.constant 6 : index
    %c0_98 = arith.constant 0 : index
    %c0_99 = arith.constant 0 : index
    %163 = vector.load %arg4[%c6_97, %c0_98, %c0_99] : memref<9x6x30xf32, #tpu.memory_space<vmem>>, vector<1x6x30xf32>
    %164 = vector.shape_cast %163 : vector<1x6x30xf32> to vector<6x30xf32>
    %cst_100 = arith.constant dense<0.000000e+00> : vector<6x256xf32>
    %165 = tpu.matmul %164, %162, %cst_100 {dimension_numbers = #tpu.dot_dimension_numbers<[1], [0], [0], [1], [0, 0, 1, 1], [], []>} : vector<6x30xf32>, vector<30x256xf32>, vector<6x256xf32> -> vector<6x256xf32>
    %c6_101 = arith.constant 6 : index
    %c0_102 = arith.constant 0 : index
    %c0_103 = arith.constant 0 : index
    %166 = vector.load %arg8[%c6_101, %c0_102, %c0_103] : memref<9x1x256xf32, #tpu.memory_space<vmem>>, vector<1x1x256xf32>
    %167 = vector.shape_cast %166 : vector<1x1x256xf32> to vector<1x256xf32>
    %168 = vector.broadcast %167 : vector<1x256xf32> to vector<6x256xf32>
    %169 = arith.mulf %165, %168 : vector<6x256xf32>
    %170 = arith.addf %159, %169 : vector<6x256xf32>
    %171 = vector.extract_strided_slice %99 {offsets = [0, 16], sizes = [30, 240], strides = [1, 1]} : vector<30x256xf32> to vector<30x240xf32>
    %172 = vector.extract_strided_slice %99 {offsets = [0, 0], sizes = [30, 16], strides = [1, 1]} : vector<30x256xf32> to vector<30x16xf32>
    %173 = tpu.concatenate %171, %172 in 1 : vector<30x240xf32>, vector<30x16xf32> -> vector<30x256xf32>
    %c7_104 = arith.constant 7 : index
    %c0_105 = arith.constant 0 : index
    %c0_106 = arith.constant 0 : index
    %174 = vector.load %arg4[%c7_104, %c0_105, %c0_106] : memref<9x6x30xf32, #tpu.memory_space<vmem>>, vector<1x6x30xf32>
    %175 = vector.shape_cast %174 : vector<1x6x30xf32> to vector<6x30xf32>
    %cst_107 = arith.constant dense<0.000000e+00> : vector<6x256xf32>
    %176 = tpu.matmul %175, %173, %cst_107 {dimension_numbers = #tpu.dot_dimension_numbers<[1], [0], [0], [1], [0, 0, 1, 1], [], []>} : vector<6x30xf32>, vector<30x256xf32>, vector<6x256xf32> -> vector<6x256xf32>
    %c7_108 = arith.constant 7 : index
    %c0_109 = arith.constant 0 : index
    %c0_110 = arith.constant 0 : index
    %177 = vector.load %arg8[%c7_108, %c0_109, %c0_110] : memref<9x1x256xf32, #tpu.memory_space<vmem>>, vector<1x1x256xf32>
    %178 = vector.shape_cast %177 : vector<1x1x256xf32> to vector<1x256xf32>
    %179 = vector.broadcast %178 : vector<1x256xf32> to vector<6x256xf32>
    %180 = arith.mulf %176, %179 : vector<6x256xf32>
    %181 = arith.addf %170, %180 : vector<6x256xf32>
    %182 = vector.extract_strided_slice %99 {offsets = [0, 17], sizes = [30, 239], strides = [1, 1]} : vector<30x256xf32> to vector<30x239xf32>
    %183 = vector.extract_strided_slice %99 {offsets = [0, 0], sizes = [30, 17], strides = [1, 1]} : vector<30x256xf32> to vector<30x17xf32>
    %184 = tpu.concatenate %182, %183 in 1 : vector<30x239xf32>, vector<30x17xf32> -> vector<30x256xf32>
    %c8_111 = arith.constant 8 : index
    %c0_112 = arith.constant 0 : index
    %c0_113 = arith.constant 0 : index
    %185 = vector.load %arg4[%c8_111, %c0_112, %c0_113] : memref<9x6x30xf32, #tpu.memory_space<vmem>>, vector<1x6x30xf32>
    %186 = vector.shape_cast %185 : vector<1x6x30xf32> to vector<6x30xf32>
    %cst_114 = arith.constant dense<0.000000e+00> : vector<6x256xf32>
    %187 = tpu.matmul %186, %184, %cst_114 {dimension_numbers = #tpu.dot_dimension_numbers<[1], [0], [0], [1], [0, 0, 1, 1], [], []>} : vector<6x30xf32>, vector<30x256xf32>, vector<6x256xf32> -> vector<6x256xf32>
    %c8_115 = arith.constant 8 : index
    %c0_116 = arith.constant 0 : index
    %c0_117 = arith.constant 0 : index
    %188 = vector.load %arg8[%c8_115, %c0_116, %c0_117] : memref<9x1x256xf32, #tpu.memory_space<vmem>>, vector<1x1x256xf32>
    %189 = vector.shape_cast %188 : vector<1x1x256xf32> to vector<1x256xf32>
    %190 = vector.broadcast %189 : vector<1x256xf32> to vector<6x256xf32>
    %191 = arith.mulf %187, %190 : vector<6x256xf32>
    %192 = arith.addf %181, %191 : vector<6x256xf32>
    %c0_118 = arith.constant 0 : index
    %c0_119 = arith.constant 0 : index
    %193 = vector.load %arg5[%c0_118, %c0_119] : memref<6x1xf32, #tpu.memory_space<vmem>>, vector<6x1xf32>
    %194 = vector.broadcast %193 : vector<6x1xf32> to vector<6x256xf32>
    %195 = arith.addf %192, %194 : vector<6x256xf32>
    %cst_120 = arith.constant 0.000000e+00 : f32
    %196 = vector.broadcast %cst_120 : f32 to vector<6x256xf32>
    %197 = arith.maximumf %195, %196 : vector<6x256xf32>
    %cst_121 = arith.constant 0.000000e+00 : f32
    %198 = vector.broadcast %cst_121 : f32 to vector<3x256xf32>
    %199 = vector.extract_strided_slice %197 {offsets = [0, 239], sizes = [6, 17], strides = [1, 1]} : vector<6x256xf32> to vector<6x17xf32>
    %200 = vector.extract_strided_slice %197 {offsets = [0, 0], sizes = [6, 239], strides = [1, 1]} : vector<6x256xf32> to vector<6x239xf32>
    %201 = tpu.concatenate %199, %200 in 1 : vector<6x17xf32>, vector<6x239xf32> -> vector<6x256xf32>
    %c0_122 = arith.constant 0 : index
    %c0_123 = arith.constant 0 : index
    %c0_124 = arith.constant 0 : index
    %202 = vector.load %arg6[%c0_122, %c0_123, %c0_124] : memref<9x3x6xf32, #tpu.memory_space<vmem>>, vector<1x3x6xf32>
    %203 = vector.shape_cast %202 : vector<1x3x6xf32> to vector<3x6xf32>
    %cst_125 = arith.constant dense<0.000000e+00> : vector<3x256xf32>
    %204 = tpu.matmul %203, %201, %cst_125 {dimension_numbers = #tpu.dot_dimension_numbers<[1], [0], [0], [1], [0, 0, 1, 1], [], []>} : vector<3x6xf32>, vector<6x256xf32>, vector<3x256xf32> -> vector<3x256xf32>
    %c0_126 = arith.constant 0 : index
    %c0_127 = arith.constant 0 : index
    %c0_128 = arith.constant 0 : index
    %205 = vector.load %arg8[%c0_126, %c0_127, %c0_128] : memref<9x1x256xf32, #tpu.memory_space<vmem>>, vector<1x1x256xf32>
    %206 = vector.shape_cast %205 : vector<1x1x256xf32> to vector<1x256xf32>
    %207 = vector.broadcast %206 : vector<1x256xf32> to vector<3x256xf32>
    %208 = arith.mulf %204, %207 : vector<3x256xf32>
    %209 = arith.addf %198, %208 : vector<3x256xf32>
    %210 = vector.extract_strided_slice %197 {offsets = [0, 240], sizes = [6, 16], strides = [1, 1]} : vector<6x256xf32> to vector<6x16xf32>
    %211 = vector.extract_strided_slice %197 {offsets = [0, 0], sizes = [6, 240], strides = [1, 1]} : vector<6x256xf32> to vector<6x240xf32>
    %212 = tpu.concatenate %210, %211 in 1 : vector<6x16xf32>, vector<6x240xf32> -> vector<6x256xf32>
    %c1_129 = arith.constant 1 : index
    %c0_130 = arith.constant 0 : index
    %c0_131 = arith.constant 0 : index
    %213 = vector.load %arg6[%c1_129, %c0_130, %c0_131] : memref<9x3x6xf32, #tpu.memory_space<vmem>>, vector<1x3x6xf32>
    %214 = vector.shape_cast %213 : vector<1x3x6xf32> to vector<3x6xf32>
    %cst_132 = arith.constant dense<0.000000e+00> : vector<3x256xf32>
    %215 = tpu.matmul %214, %212, %cst_132 {dimension_numbers = #tpu.dot_dimension_numbers<[1], [0], [0], [1], [0, 0, 1, 1], [], []>} : vector<3x6xf32>, vector<6x256xf32>, vector<3x256xf32> -> vector<3x256xf32>
    %c1_133 = arith.constant 1 : index
    %c0_134 = arith.constant 0 : index
    %c0_135 = arith.constant 0 : index
    %216 = vector.load %arg8[%c1_133, %c0_134, %c0_135] : memref<9x1x256xf32, #tpu.memory_space<vmem>>, vector<1x1x256xf32>
    %217 = vector.shape_cast %216 : vector<1x1x256xf32> to vector<1x256xf32>
    %218 = vector.broadcast %217 : vector<1x256xf32> to vector<3x256xf32>
    %219 = arith.mulf %215, %218 : vector<3x256xf32>
    %220 = arith.addf %209, %219 : vector<3x256xf32>
    %221 = vector.extract_strided_slice %197 {offsets = [0, 241], sizes = [6, 15], strides = [1, 1]} : vector<6x256xf32> to vector<6x15xf32>
    %222 = vector.extract_strided_slice %197 {offsets = [0, 0], sizes = [6, 241], strides = [1, 1]} : vector<6x256xf32> to vector<6x241xf32>
    %223 = tpu.concatenate %221, %222 in 1 : vector<6x15xf32>, vector<6x241xf32> -> vector<6x256xf32>
    %c2_136 = arith.constant 2 : index
    %c0_137 = arith.constant 0 : index
    %c0_138 = arith.constant 0 : index
    %224 = vector.load %arg6[%c2_136, %c0_137, %c0_138] : memref<9x3x6xf32, #tpu.memory_space<vmem>>, vector<1x3x6xf32>
    %225 = vector.shape_cast %224 : vector<1x3x6xf32> to vector<3x6xf32>
    %cst_139 = arith.constant dense<0.000000e+00> : vector<3x256xf32>
    %226 = tpu.matmul %225, %223, %cst_139 {dimension_numbers = #tpu.dot_dimension_numbers<[1], [0], [0], [1], [0, 0, 1, 1], [], []>} : vector<3x6xf32>, vector<6x256xf32>, vector<3x256xf32> -> vector<3x256xf32>
    %c2_140 = arith.constant 2 : index
    %c0_141 = arith.constant 0 : index
    %c0_142 = arith.constant 0 : index
    %227 = vector.load %arg8[%c2_140, %c0_141, %c0_142] : memref<9x1x256xf32, #tpu.memory_space<vmem>>, vector<1x1x256xf32>
    %228 = vector.shape_cast %227 : vector<1x1x256xf32> to vector<1x256xf32>
    %229 = vector.broadcast %228 : vector<1x256xf32> to vector<3x256xf32>
    %230 = arith.mulf %226, %229 : vector<3x256xf32>
    %231 = arith.addf %220, %230 : vector<3x256xf32>
    %232 = vector.extract_strided_slice %197 {offsets = [0, 255], sizes = [6, 1], strides = [1, 1]} : vector<6x256xf32> to vector<6x1xf32>
    %233 = vector.extract_strided_slice %197 {offsets = [0, 0], sizes = [6, 255], strides = [1, 1]} : vector<6x256xf32> to vector<6x255xf32>
    %234 = tpu.concatenate %232, %233 in 1 : vector<6x1xf32>, vector<6x255xf32> -> vector<6x256xf32>
    %c3_143 = arith.constant 3 : index
    %c0_144 = arith.constant 0 : index
    %c0_145 = arith.constant 0 : index
    %235 = vector.load %arg6[%c3_143, %c0_144, %c0_145] : memref<9x3x6xf32, #tpu.memory_space<vmem>>, vector<1x3x6xf32>
    %236 = vector.shape_cast %235 : vector<1x3x6xf32> to vector<3x6xf32>
    %cst_146 = arith.constant dense<0.000000e+00> : vector<3x256xf32>
    %237 = tpu.matmul %236, %234, %cst_146 {dimension_numbers = #tpu.dot_dimension_numbers<[1], [0], [0], [1], [0, 0, 1, 1], [], []>} : vector<3x6xf32>, vector<6x256xf32>, vector<3x256xf32> -> vector<3x256xf32>
    %c3_147 = arith.constant 3 : index
    %c0_148 = arith.constant 0 : index
    %c0_149 = arith.constant 0 : index
    %238 = vector.load %arg8[%c3_147, %c0_148, %c0_149] : memref<9x1x256xf32, #tpu.memory_space<vmem>>, vector<1x1x256xf32>
    %239 = vector.shape_cast %238 : vector<1x1x256xf32> to vector<1x256xf32>
    %240 = vector.broadcast %239 : vector<1x256xf32> to vector<3x256xf32>
    %241 = arith.mulf %237, %240 : vector<3x256xf32>
    %242 = arith.addf %231, %241 : vector<3x256xf32>
    %c4_150 = arith.constant 4 : index
    %c0_151 = arith.constant 0 : index
    %c0_152 = arith.constant 0 : index
    %243 = vector.load %arg6[%c4_150, %c0_151, %c0_152] : memref<9x3x6xf32, #tpu.memory_space<vmem>>, vector<1x3x6xf32>
    %244 = vector.shape_cast %243 : vector<1x3x6xf32> to vector<3x6xf32>
    %cst_153 = arith.constant dense<0.000000e+00> : vector<3x256xf32>
    %245 = tpu.matmul %244, %197, %cst_153 {dimension_numbers = #tpu.dot_dimension_numbers<[1], [0], [0], [1], [0, 0, 1, 1], [], []>} : vector<3x6xf32>, vector<6x256xf32>, vector<3x256xf32> -> vector<3x256xf32>
    %246 = arith.addf %242, %245 : vector<3x256xf32>
    %247 = vector.extract_strided_slice %197 {offsets = [0, 1], sizes = [6, 255], strides = [1, 1]} : vector<6x256xf32> to vector<6x255xf32>
    %248 = vector.extract_strided_slice %197 {offsets = [0, 0], sizes = [6, 1], strides = [1, 1]} : vector<6x256xf32> to vector<6x1xf32>
    %249 = tpu.concatenate %247, %248 in 1 : vector<6x255xf32>, vector<6x1xf32> -> vector<6x256xf32>
    %c5_154 = arith.constant 5 : index
    %c0_155 = arith.constant 0 : index
    %c0_156 = arith.constant 0 : index
    %250 = vector.load %arg6[%c5_154, %c0_155, %c0_156] : memref<9x3x6xf32, #tpu.memory_space<vmem>>, vector<1x3x6xf32>
    %251 = vector.shape_cast %250 : vector<1x3x6xf32> to vector<3x6xf32>
    %cst_157 = arith.constant dense<0.000000e+00> : vector<3x256xf32>
    %252 = tpu.matmul %251, %249, %cst_157 {dimension_numbers = #tpu.dot_dimension_numbers<[1], [0], [0], [1], [0, 0, 1, 1], [], []>} : vector<3x6xf32>, vector<6x256xf32>, vector<3x256xf32> -> vector<3x256xf32>
    %c5_158 = arith.constant 5 : index
    %c0_159 = arith.constant 0 : index
    %c0_160 = arith.constant 0 : index
    %253 = vector.load %arg8[%c5_158, %c0_159, %c0_160] : memref<9x1x256xf32, #tpu.memory_space<vmem>>, vector<1x1x256xf32>
    %254 = vector.shape_cast %253 : vector<1x1x256xf32> to vector<1x256xf32>
    %255 = vector.broadcast %254 : vector<1x256xf32> to vector<3x256xf32>
    %256 = arith.mulf %252, %255 : vector<3x256xf32>
    %257 = arith.addf %246, %256 : vector<3x256xf32>
    %258 = vector.extract_strided_slice %197 {offsets = [0, 15], sizes = [6, 241], strides = [1, 1]} : vector<6x256xf32> to vector<6x241xf32>
    %259 = vector.extract_strided_slice %197 {offsets = [0, 0], sizes = [6, 15], strides = [1, 1]} : vector<6x256xf32> to vector<6x15xf32>
    %260 = tpu.concatenate %258, %259 in 1 : vector<6x241xf32>, vector<6x15xf32> -> vector<6x256xf32>
    %c6_161 = arith.constant 6 : index
    %c0_162 = arith.constant 0 : index
    %c0_163 = arith.constant 0 : index
    %261 = vector.load %arg6[%c6_161, %c0_162, %c0_163] : memref<9x3x6xf32, #tpu.memory_space<vmem>>, vector<1x3x6xf32>
    %262 = vector.shape_cast %261 : vector<1x3x6xf32> to vector<3x6xf32>
    %cst_164 = arith.constant dense<0.000000e+00> : vector<3x256xf32>
    %263 = tpu.matmul %262, %260, %cst_164 {dimension_numbers = #tpu.dot_dimension_numbers<[1], [0], [0], [1], [0, 0, 1, 1], [], []>} : vector<3x6xf32>, vector<6x256xf32>, vector<3x256xf32> -> vector<3x256xf32>
    %c6_165 = arith.constant 6 : index
    %c0_166 = arith.constant 0 : index
    %c0_167 = arith.constant 0 : index
    %264 = vector.load %arg8[%c6_165, %c0_166, %c0_167] : memref<9x1x256xf32, #tpu.memory_space<vmem>>, vector<1x1x256xf32>
    %265 = vector.shape_cast %264 : vector<1x1x256xf32> to vector<1x256xf32>
    %266 = vector.broadcast %265 : vector<1x256xf32> to vector<3x256xf32>
    %267 = arith.mulf %263, %266 : vector<3x256xf32>
    %268 = arith.addf %257, %267 : vector<3x256xf32>
    %269 = vector.extract_strided_slice %197 {offsets = [0, 16], sizes = [6, 240], strides = [1, 1]} : vector<6x256xf32> to vector<6x240xf32>
    %270 = vector.extract_strided_slice %197 {offsets = [0, 0], sizes = [6, 16], strides = [1, 1]} : vector<6x256xf32> to vector<6x16xf32>
    %271 = tpu.concatenate %269, %270 in 1 : vector<6x240xf32>, vector<6x16xf32> -> vector<6x256xf32>
    %c7_168 = arith.constant 7 : index
    %c0_169 = arith.constant 0 : index
    %c0_170 = arith.constant 0 : index
    %272 = vector.load %arg6[%c7_168, %c0_169, %c0_170] : memref<9x3x6xf32, #tpu.memory_space<vmem>>, vector<1x3x6xf32>
    %273 = vector.shape_cast %272 : vector<1x3x6xf32> to vector<3x6xf32>
    %cst_171 = arith.constant dense<0.000000e+00> : vector<3x256xf32>
    %274 = tpu.matmul %273, %271, %cst_171 {dimension_numbers = #tpu.dot_dimension_numbers<[1], [0], [0], [1], [0, 0, 1, 1], [], []>} : vector<3x6xf32>, vector<6x256xf32>, vector<3x256xf32> -> vector<3x256xf32>
    %c7_172 = arith.constant 7 : index
    %c0_173 = arith.constant 0 : index
    %c0_174 = arith.constant 0 : index
    %275 = vector.load %arg8[%c7_172, %c0_173, %c0_174] : memref<9x1x256xf32, #tpu.memory_space<vmem>>, vector<1x1x256xf32>
    %276 = vector.shape_cast %275 : vector<1x1x256xf32> to vector<1x256xf32>
    %277 = vector.broadcast %276 : vector<1x256xf32> to vector<3x256xf32>
    %278 = arith.mulf %274, %277 : vector<3x256xf32>
    %279 = arith.addf %268, %278 : vector<3x256xf32>
    %280 = vector.extract_strided_slice %197 {offsets = [0, 17], sizes = [6, 239], strides = [1, 1]} : vector<6x256xf32> to vector<6x239xf32>
    %281 = vector.extract_strided_slice %197 {offsets = [0, 0], sizes = [6, 17], strides = [1, 1]} : vector<6x256xf32> to vector<6x17xf32>
    %282 = tpu.concatenate %280, %281 in 1 : vector<6x239xf32>, vector<6x17xf32> -> vector<6x256xf32>
    %c8_175 = arith.constant 8 : index
    %c0_176 = arith.constant 0 : index
    %c0_177 = arith.constant 0 : index
    %283 = vector.load %arg6[%c8_175, %c0_176, %c0_177] : memref<9x3x6xf32, #tpu.memory_space<vmem>>, vector<1x3x6xf32>
    %284 = vector.shape_cast %283 : vector<1x3x6xf32> to vector<3x6xf32>
    %cst_178 = arith.constant dense<0.000000e+00> : vector<3x256xf32>
    %285 = tpu.matmul %284, %282, %cst_178 {dimension_numbers = #tpu.dot_dimension_numbers<[1], [0], [0], [1], [0, 0, 1, 1], [], []>} : vector<3x6xf32>, vector<6x256xf32>, vector<3x256xf32> -> vector<3x256xf32>
    %c8_179 = arith.constant 8 : index
    %c0_180 = arith.constant 0 : index
    %c0_181 = arith.constant 0 : index
    %286 = vector.load %arg8[%c8_179, %c0_180, %c0_181] : memref<9x1x256xf32, #tpu.memory_space<vmem>>, vector<1x1x256xf32>
    %287 = vector.shape_cast %286 : vector<1x1x256xf32> to vector<1x256xf32>
    %288 = vector.broadcast %287 : vector<1x256xf32> to vector<3x256xf32>
    %289 = arith.mulf %285, %288 : vector<3x256xf32>
    %290 = arith.addf %279, %289 : vector<3x256xf32>
    %c0_182 = arith.constant 0 : index
    %c0_183 = arith.constant 0 : index
    %291 = vector.load %arg7[%c0_182, %c0_183] : memref<3x1xf32, #tpu.memory_space<vmem>>, vector<3x1xf32>
    %292 = vector.broadcast %291 : vector<3x1xf32> to vector<3x256xf32>
    %293 = arith.addf %290, %292 : vector<3x256xf32>
    %cst_184 = arith.constant 0.000000e+00 : f32
    %294 = vector.broadcast %cst_184 : f32 to vector<3x256xf32>
    %295 = arith.maximumf %293, %294 : vector<3x256xf32>
    %cst_185 = arith.constant dense<0.000000e+00> : vector<3xf32>
    %296 = vector.multi_reduction <add>, %295, %cst_185 [1] : vector<3x256xf32> to vector<3xf32>
    %297 = vector.shape_cast %296 : vector<3xf32> to vector<3x1xf32>
    %cst_186 = arith.constant 3.906250e-03 : f32
    %298 = vector.broadcast %cst_186 : f32 to vector<3x1xf32>
    %299 = arith.mulf %297, %298 : vector<3x1xf32>
    %c0_187 = arith.constant 0 : index
    %c0_188 = arith.constant 0 : index
    %300 = vector.load %arg9[%c0_187, %c0_188] : memref<3x10xf32, #tpu.memory_space<vmem>>, vector<3x10xf32>
    %301 = vector.broadcast %299 : vector<3x1xf32> to vector<3x10xf32>
    %302 = arith.mulf %301, %300 : vector<3x10xf32>
    %cst_189 = arith.constant dense<0.000000e+00> : vector<10xf32>
    %303 = vector.multi_reduction <add>, %302, %cst_189 [0] : vector<3x10xf32> to vector<10xf32>
    %304 = vector.shape_cast %303 : vector<10xf32> to vector<1x10xf32>
    %c0_190 = arith.constant 0 : index
    %c0_191 = arith.constant 0 : index
    %305 = vector.load %arg10[%c0_190, %c0_191] : memref<1x10xf32, #tpu.memory_space<vmem>>, vector<1x10xf32>
    %306 = arith.addf %304, %305 : vector<1x10xf32>
    %c0_192 = arith.constant 0 : index
    %c0_193 = arith.constant 0 : index
    %c0_194 = arith.constant 0 : index
    %307 = vector.load %arg11[%c0_192, %c0_193, %c0_194] : memref<1x1x10xf32, #tpu.memory_space<vmem>>, vector<1x1x10xf32>
    %308 = vector.shape_cast %307 : vector<1x1x10xf32> to vector<1x10xf32>
    %309 = vector.shape_cast %306 : vector<1x10xf32> to vector<1x1x10xf32>
    tpu.vector_store %arg11[%c0_192, %c0_193, %c0_194], %309 {strides = array<i32>} : memref<1x1x10xf32, #tpu.memory_space<vmem>>, vector<1x1x10xf32>,
    return
  }
  func.func @transform_0(%arg0: i32) -> (i32, i32, i32) {
    %c0_i32 = arith.constant 0 : i32
    %c0_i32_0 = arith.constant 0 : i32
    %c0_i32_1 = arith.constant 0 : i32
    return %arg0, %c0_i32, %c0_i32_0 : i32, i32, i32
  }
  func.func @transform_1(%arg0: i32) -> (i32, i32, i32) {
    %c0_i32 = arith.constant 0 : i32
    %c0_i32_0 = arith.constant 0 : i32
    %c0_i32_1 = arith.constant 0 : i32
    %c0_i32_2 = arith.constant 0 : i32
    return %c0_i32, %c0_i32_0, %c0_i32_1 : i32, i32, i32
  }
  func.func @transform_2(%arg0: i32) -> (i32, i32) {
    %c0_i32 = arith.constant 0 : i32
    %c0_i32_0 = arith.constant 0 : i32
    %c0_i32_1 = arith.constant 0 : i32
    return %c0_i32, %c0_i32_0 : i32, i32
  }
  func.func @transform_3(%arg0: i32) -> (i32, i32, i32) {
    %c0_i32 = arith.constant 0 : i32
    %c0_i32_0 = arith.constant 0 : i32
    %c0_i32_1 = arith.constant 0 : i32
    %c0_i32_2 = arith.constant 0 : i32
    return %c0_i32, %c0_i32_0, %c0_i32_1 : i32, i32, i32
  }
  func.func @transform_4(%arg0: i32) -> (i32, i32) {
    %c0_i32 = arith.constant 0 : i32
    %c0_i32_0 = arith.constant 0 : i32
    %c0_i32_1 = arith.constant 0 : i32
    return %c0_i32, %c0_i32_0 : i32, i32
  }
  func.func @transform_5(%arg0: i32) -> (i32, i32, i32) {
    %c0_i32 = arith.constant 0 : i32
    %c0_i32_0 = arith.constant 0 : i32
    %c0_i32_1 = arith.constant 0 : i32
    %c0_i32_2 = arith.constant 0 : i32
    return %c0_i32, %c0_i32_0, %c0_i32_1 : i32, i32, i32
  }
  func.func @transform_6(%arg0: i32) -> (i32, i32) {
    %c0_i32 = arith.constant 0 : i32
    %c0_i32_0 = arith.constant 0 : i32
    %c0_i32_1 = arith.constant 0 : i32
    return %c0_i32, %c0_i32_0 : i32, i32
  }
  func.func @transform_7(%arg0: i32) -> (i32, i32, i32) {
    %c0_i32 = arith.constant 0 : i32
    %c0_i32_0 = arith.constant 0 : i32
    %c0_i32_1 = arith.constant 0 : i32
    %c0_i32_2 = arith.constant 0 : i32
    return %c0_i32, %c0_i32_0, %c0_i32_1 : i32, i32, i32
  }
  func.func @transform_8(%arg0: i32) -> (i32, i32) {
    %c0_i32 = arith.constant 0 : i32
    %c0_i32_0 = arith.constant 0 : i32
    %c0_i32_1 = arith.constant 0 : i32
    return %c0_i32, %c0_i32_0 : i32, i32
  }
  func.func @transform_9(%arg0: i32) -> (i32, i32) {
    %c0_i32 = arith.constant 0 : i32
    %c0_i32_0 = arith.constant 0 : i32
    %c0_i32_1 = arith.constant 0 : i32
    return %c0_i32, %c0_i32_0 : i32, i32
  }
  func.func @transform_10(%arg0: i32) -> (i32, i32, i32) {
    %c0_i32 = arith.constant 0 : i32
    %c0_i32_0 = arith.constant 0 : i32
    %c0_i32_1 = arith.constant 0 : i32
    return %arg0, %c0_i32, %c0_i32_0 : i32, i32, i32
  }
}

</mosaic_0001>

<bundles_post_ra>
// kernel: conv_embeding_v1_forward.1
= control target key start
LH: loop header
LB: loop body
LE: loop exit
PB: predicated region body
PF: predicated region fallthrough
CT: control target
= control target key end

     0   :  { %15 = vsyncpa [#allocation3], 0  ;;  %s8676_s0 = inlined_call_operand.vmem [shape: f32[2,150,256], index: 0, kind: input, shape index: {}]   ;;  %s8677_s1 = inlined_call_operand.vmem [shape: f32[9,30,150], index: 1, kind: input, shape index: {}]   ;;  %s8678_s2 = inlined_call_operand.vmem [shape: f32[30,1], index: 2, kind: input, shape index: {}]   ;;  %s8679_s3 = inlined_call_operand.vmem [shape: f32[9,6,30], index: 3, kind: input, shape index: {}]   ;;  %s8680_s4 = inlined_call_operand.vmem [shape: f32[6,1], index: 4, kind: input, shape index: {}]   ;;  %s8681_s5 = inlined_call_operand.vmem [shape: f32[9,3,6], index: 5, kind: input, shape index: {}]   ;;  %s8682_s6 = inlined_call_operand.vmem [shape: f32[3,1], index: 6, kind: input, shape index: {}]   ;;  %s8683_s7 = inlined_call_operand.vmem [shape: f32[9,1,256], index: 7, kind: input, shape index: {}]   ;;  %s8684_s8 = inlined_call_operand.vmem [shape: f32[3,10], index: 8, kind: input, shape index: {}]   ;;  %s8685_s9 = inlined_call_operand.vmem [shape: f32[1,10], index: 9, kind: input, shape index: {}]   ;;  %s8686_s10 = inlined_call_operand.hbm [shape: f32[2,1,10], index: 10, kind: output, shape index: {}]  }
   0x1   :  { %17 = vsyncpa [#allocation3 + $0x1], 0  ;;  %s6821_s13 = smov 0   ;;  %s6823_s14 = smov 0  }
   0x2   :  { %s6825_s15 = smov 0   ;;  %s6827_s16 = smov 0  }
   0x3 LB: > { %s6842_s17 = sadd.s32 4294967295, %s6752_s16   ;;  %s5102_s18 = sadd.s32 4294967294, %s6752_s16   ;;  %s6752_s16 = sphi %s6827_s16, %s8724_s16   ;;  %s6748_s15 = sphi %s6825_s15, %s8723_s15   ;;  %s6744_s14 = sphi %s6823_s14, %s8722_s14   ;;  %s6740_s13 = sphi %s6821_s13, %s8721_s13  }
   0x4   : > { %s6846_s19 = sadd.s32 1, %s6752_s16   ;;  %s245_s20 = sadd.s32 1, %s6748_s15 }
   0x5   : > { %s242_s21 = ssub.s32 %s6752_s16, %s6846_s19  ;;  %p255_p0 = scmp.ne.s32.totalorder %s6748_s15, %s6744_s14 }
   0x6   : > { %p243_p1 = scmp.eq.s32.totalorder %s242_s21, 0  ;;  %p256_p2 = scmp.eq.s32.totalorder %s6842_s17, 1 }
   0x7   : > { %p261_p3 = scmp.ne.s32.totalorder %s6744_s14, %s6740_s13  ;;  %p262_p4 = scmp.eq.s32.totalorder %s5102_s18, 1 }
   0x8   : > { %s6857_s22 = scalar_select %p243_p1, %s6748_s15, %s245_s20  }
   0x9   : > { %p6859_p5 = por %p256_p2, %p255_p0  ;;  %p6863_p6 = por %p262_p4, %p261_p3 }
   0xa   : > { %p5105_p7 = scmp.ge.s32.totalorder %s6752_s16, 1  ;;  %p315_p8 = scmp.lt.s32.totalorder %s6752_s16, 3 }
   0xc   : > { %p316_p9 = pnand %p5105_p7, %p315_p8 }
   0xe   : > { %319 = sbr.rel (%p316_p9) target bundleno = 1642 (0x66a), region = 60 }
  0x15   : > { %p352_p10 = scmp.lt.s32.totalorder %s6842_s17, 1  ;;  %s8703_s30 = smov 17   ;;  %v605_v54 = vld [vmem:[%s8677_s1 + $0x8] sm:$0xff]  ;;  %vm612_vm0 = vcmask 179200   ;;  %vm528_vm1 = vcmask 138240   ;;  %vm843_vm2 = vcmask 130048  }
  0x16   : > { %s8701_s11 = smov 16   ;;  %5109 = vmatprep.mubr.msk.f32.mxu0 %vm612_vm0, %v605_v54  ;;  %s8693_s20 = smov 15   ;;  %v5114_v57 = vld [vmem:[%s8677_s1 + $0x48] sm:$0xff]  ;;  %vm625_vm3 = vcmask 1045504   ;;  %vm1158_vm4 = vcmask 121856   ;;  %vm1473_vm5 = vcmask 7168  }
  0x17   : > { %s353_s25 = scalar_select %p352_p10, %s6842_s17, 1  ;;  %5123 = vmatprep.mubr.msk.f32.mxu1 %vm612_vm0, %v5114_v57  ;;  %vm1891_vm6 = vcmask 1039360   ;;  %vm2206_vm7 = vcmask 924672   ;;  %vm2521_vm8 = vcmask 916480   ;;  %vm2836_vm9 = vcmask 908288  }
  0x18   : > { %s8689_s27 = smov 127   ;;  %s8697_s28 = smov 112   ;;  %vm6764_vm10 = vmmov 1   ;;  %vm3159_vm12 = vcmask 244736   ;;  %vm4186_vm13 = vcmask 48128   ;;  %vm5013_vm14 = vcmask 1042432  }
  0x19   : > { %s5719_s26 = smul.u32 304, %s353_s25  ;;  %s8699_s25 = smov 113   ;;  %vm8336_vm11 = vmpackc.low %vm625_vm3, %vm6764_vm10  ;;  %vm5022_vm15 = vcmask 75776  }
  0x1a   : > { %s8715_s21 = smov 113   ;;  %s8716_s12 = smov 112  }
  0x1b   : > { %s6874_s29 = scalar_lea.vmem %s8676_s0, %s5719_s26  ;;  %s8691_s26 = smov 1  }
  0x1c   : > { %v6877_v0 = vld [vmem:[%s6874_s29 + $0x28] sm:$0xff]  ;;  %v6880_v1 = vld [vmem:[%s6874_s29 + $0x38] sm:$0xff]  ;;  %v6893_v5 = vld [vmem:[%s6874_s29 + $0x20] sm:$0xff] }
  0x1d   : > { %v6883_v2 = vld [vmem:[%s6874_s29 + $0x8] sm:$0xff]  ;;  %v6887_v3 = vpack.i.bf16 %v6880_v1, %v6877_v0  ;;  %v6890_v4 = vld [vmem:[%s6874_s29 + $0x18] sm:$0xff]  ;;  %v6896_v6 = vld [vmem:[%s6874_s29 + $0x30] sm:$0xff] }
  0x1e   : > { %v6900_v7 = vpack.i.bf16 %v6890_v4, %v6883_v2  ;;  %v6903_v8 = vld [vmem:[%s6874_s29] sm:$0xff]  ;;  %v6906_v9 = vld [vmem:[%s6874_s29 + $0x10] sm:$0xff]  ;;  %v6912_v10 = vpack.i.bf16 %v6896_v6, %v6893_v5  ;;  %v6927_v14 = vld [vmem:[%s6874_s29 + $0x48] sm:$0xff] }
  0x1f   : > { %5781 = vrot.lane.b32.xlu1 %v6887_v3, %s8703_s30  ;;  %v6918_v11 = vpack.i.bf16 %v6906_v9, %v6903_v8  ;;  %v6921_v12 = vld [vmem:[%s6874_s29 + $0x40] sm:$0xff]  ;;  %v6924_v13 = vld [vmem:[%s6874_s29 + $0x50] sm:$0xff]  ;;  %v6930_v15 = vld [vmem:[%s6874_s29 + $0x58] sm:$0xff] }
  0x20   : > { %5771 = vrot.lane.b32.xlu0 %v6900_v7, %s8703_s30  ;;  %v6936_v16 = vpack.i.bf16 %v6924_v13, %v6921_v12  ;;  %v6942_v17 = vpack.i.bf16 %v6930_v15, %v6927_v14  ;;  %v6945_v18 = vld [vmem:[%s6874_s29 + $0x60] sm:$0xff]  ;;  %v6948_v19 = vld [vmem:[%s6874_s29 + $0x70] sm:$0xff]  ;;  %v6951_v20 = vld [vmem:[%s6874_s29 + $0x68] sm:$0xff] }
  0x21   : > { %v6954_v21 = vld [vmem:[%s6874_s29 + $0x78] sm:$0xff]  ;;  %v6960_v22 = vpack.i.bf16 %v6948_v19, %v6945_v18  ;;  %v6969_v24 = vld [vmem:[%s6874_s29 + $0x80] sm:$0xff]  ;;  %v6972_v25 = vld [vmem:[%s6874_s29 + $0x90] sm:$0xff] }
  0x22   : > { %v6966_v23 = vpack.i.bf16 %v6954_v21, %v6951_v20  ;;  %v6975_v26 = vld [vmem:[%s6874_s29 + $0x88] sm:$0xff]  ;;  %v6978_v27 = vld [vmem:[%s6874_s29 + $0x98] sm:$0xff]  ;;  %v6984_v28 = vpack.i.bf16 %v6972_v25, %v6969_v24  ;;  %v6993_v30 = vld [vmem:[%s6874_s29 + $0xa0] sm:$0xff] }
  0x23   : > { %5786 = vrot.lane.b32.xlu1 %v6912_v10, %s8703_s30  ;;  %v6990_v29 = vpack.i.bf16 %v6978_v27, %v6975_v26  ;;  %8707 = vst [vmem:[#allocation5_spill] sm:$0xff] %v6993_v30  ;;  %v6996_v31 = vld [vmem:[%s6874_s29 + $0xb0] sm:$0xff]  ;;  %v6999_v32 = vld [vmem:[%s6874_s29 + $0xa8] sm:$0xff]  ;;  %v7002_v33 = vld [vmem:[%s6874_s29 + $0xb8] sm:$0xff] }
  0x24   : > { %5776 = vrot.lane.b32.xlu0 %v6918_v11, %s8703_s30  ;;  %8708 = vst [vmem:[#allocation6_spill] sm:$0xff] %v6999_v32  ;;  %v7008_v34 = vpack.i.bf16 %v6996_v31, %v6993_v30  ;;  %v7014_v35 = vpack.i.bf16 %v7002_v33, %v6999_v32  ;;  %v381_v36 = vld [vmem:[%s6874_s29 + $0xc0] sm:$0xff]  ;;  %v383_v37 = vld [vmem:[%s6874_s29 + $0xd0] sm:$0xff]  ;;  %v382_v38 = vld [vmem:[%s6874_s29 + $0xc8] sm:$0xff] }
  0x25   : > { %v384_v39 = vld [vmem:[%s6874_s29 + $0xd8] sm:$0xff]  ;;  %v7022_v40 = vpack.i.bf16 %v383_v37, %v381_v36  ;;  %v385_v42 = vld [vmem:[%s6874_s29 + $0xe0] sm:$0xff]  ;;  %v387_v43 = vld [vmem:[%s6874_s29 + $0xf0] sm:$0xff] }
  0x26   : > { %v7026_v41 = vpack.i.bf16 %v384_v39, %v382_v38  ;;  %v386_v44 = vld [vmem:[%s6874_s29 + $0xe8] sm:$0xff]  ;;  %v388_v45 = vld [vmem:[%s6874_s29 + $0xf8] sm:$0xff]  ;;  %v7034_v46 = vpack.i.bf16 %v387_v43, %v385_v42  ;;  %v389_v48 = vld [vmem:[%s6874_s29 + $0x100] sm:$0xff] }
  0x27   : > { %5796 = vrot.lane.b32.xlu1 %v6936_v16, %s8703_s30  ;;  %v7038_v47 = vpack.i.bf16 %v388_v45, %v386_v44  ;;  %v391_v49 = vld [vmem:[%s6874_s29 + $0x110] sm:$0xff]  ;;  %v390_v50 = vld [vmem:[%s6874_s29 + $0x108] sm:$0xff]  ;;  %v392_v51 = vld [vmem:[%s6874_s29 + $0x118] sm:$0xff] }
  0x28   : > { %5791 = vrot.lane.b32.xlu0 %v6942_v17, %s8703_s30  ;;  %v7046_v52 = vpack.i.bf16 %v391_v49, %v389_v48  ;;  %v7050_v53 = vpack.i.bf16 %v392_v51, %v390_v50  ;;  %v7064_v55 = vld [vmem:[%s6874_s29 + $0x120] sm:$0x3f]  ;;  %v7068_v56 = vld [vmem:[%s6874_s29 + $0x128] sm:$0x3f] }
  0x2b   : > { %5806 = vrot.lane.b32.xlu1 %v6960_v22, %s8703_s30 }
  0x2c   : > { %5801 = vrot.lane.b32.xlu0 %v6966_v23, %s8703_s30 }
  0x2f   : > { %5816 = vrot.lane.b32.xlu1 %v6984_v28, %s8703_s30 }
  0x30   : > { %5811 = vrot.lane.b32.xlu0 %v6990_v29, %s8703_s30 }
  0x33   : > { %5826 = vrot.lane.b32.xlu1 %v7008_v34, %s8703_s30 }
  0x34   : > { %5821 = vrot.lane.b32.xlu0 %v7014_v35, %s8703_s30 }
  0x37   : > { %5836 = vrot.lane.b32.xlu1 %v7022_v40, %s8703_s30 }
  0x38   : > { %5831 = vrot.lane.b32.xlu0 %v7026_v41, %s8703_s30 }
  0x3b   : > { %5846 = vrot.lane.b32.xlu1 %v7034_v46, %s8703_s30 }
  0x3c   : > { %5841 = vrot.lane.b32.xlu0 %v7038_v47, %s8703_s30 }
  0x3f   : > { %5856 = vrot.lane.b32.xlu1 %v7046_v52, %s8703_s30 }
  0x40   : > { %5851 = vrot.lane.b32.xlu0 %v7050_v53, %s8703_s30 }
  0x43   : > { %5866 = vrot.lane.b32.xlu1 %v6918_v11, %s8701_s11 }
  0x44   : > { %5861 = vrot.lane.b32.xlu0 %v6900_v7, %s8701_s11 }
  0x47   : > { %526 = vrot.lane.b32.xlu1 %v7064_v55, %s8703_s30 }
  0x48   : > { %450 = vrot.lane.b32.xlu0 %v7068_v56, %s8703_s30 }
  0x4b   : > { %5876 = vrot.lane.b32.xlu1 %v6918_v11, %s8693_s20 }
  0x4c   : > { %5871 = vrot.lane.b32.xlu0 %v6900_v7, %s8693_s20 }
  0x4f   : > { %5886 = vrot.lane.b32.xlu1 %v6912_v10, %s8701_s11 }
  0x50   : > { %5881 = vrot.lane.b32.xlu0 %v6887_v3, %s8701_s11 }
  0x53   : > { %5896 = vrot.lane.b32.xlu1 %v6912_v10, %s8693_s20 }
  0x54   : > { %5891 = vrot.lane.b32.xlu0 %v6887_v3, %s8693_s20 }
  0x57   : > { %5906 = vrot.lane.b32.xlu1 %v6936_v16, %s8701_s11 }
  0x58   : > { %5901 = vrot.lane.b32.xlu0 %v6942_v17, %s8701_s11 }
  0x5b   : > { %5916 = vrot.lane.b32.xlu1 %v6936_v16, %s8693_s20 }
  0x5c   : > { %5911 = vrot.lane.b32.xlu0 %v6942_v17, %s8693_s20 }
  0x5f   : > { %5926 = vrot.lane.b32.xlu1 %v6960_v22, %s8701_s11 }
  0x60   : > { %5921 = vrot.lane.b32.xlu0 %v6966_v23, %s8701_s11 }
  0x63   : > { %5936 = vrot.lane.b32.xlu1 %v6960_v22, %s8693_s20 }
  0x64   : > { %5931 = vrot.lane.b32.xlu0 %v6966_v23, %s8693_s20 }
  0x67   : > { %5946 = vrot.lane.b32.xlu1 %v6984_v28, %s8701_s11 }
  0x68   : > { %5941 = vrot.lane.b32.xlu0 %v6990_v29, %s8701_s11 }
  0x6b   : > { %5956 = vrot.lane.b32.xlu1 %v6984_v28, %s8693_s20 }
  0x6c   : > { %5951 = vrot.lane.b32.xlu0 %v6990_v29, %s8693_s20 }
  0x6f   : > { %5966 = vrot.lane.b32.xlu1 %v7008_v34, %s8701_s11 }
  0x70   : > { %5961 = vrot.lane.b32.xlu0 %v7014_v35, %s8701_s11 }
  0x73   : > { %5976 = vrot.lane.b32.xlu1 %v7008_v34, %s8693_s20 }
  0x74   : > { %5971 = vrot.lane.b32.xlu0 %v7014_v35, %s8693_s20 }
  0x77   : > { %5986 = vrot.lane.b32.xlu1 %v7022_v40, %s8701_s11 }
  0x78   : > { %5981 = vrot.lane.b32.xlu0 %v7026_v41, %s8701_s11 }
  0x7b   : > { %5996 = vrot.lane.b32.xlu1 %v7022_v40, %s8693_s20 }
  0x7c   : > { %5991 = vrot.lane.b32.xlu0 %v7026_v41, %s8693_s20 }
  0x7f   : > { %6006 = vrot.lane.b32.xlu1 %v7034_v46, %s8701_s11 }
  0x80   : > { %6001 = vrot.lane.b32.xlu0 %v7038_v47, %s8701_s11 }
  0x83   : > { %6016 = vrot.lane.b32.xlu1 %v7034_v46, %s8693_s20 }
  0x84   : > { %6011 = vrot.lane.b32.xlu0 %v7038_v47, %s8693_s20 }
  0x87   : > { %6026 = vrot.lane.b32.xlu1 %v7046_v52, %s8701_s11 }
  0x88   : > { %6021 = vrot.lane.b32.xlu0 %v7050_v53, %s8701_s11 }
  0x8b   : > { %6036 = vrot.lane.b32.xlu1 %v7046_v52, %s8693_s20 }
  0x8c   : > { %6031 = vrot.lane.b32.xlu0 %v7050_v53, %s8693_s20 }
  0x8f   : > { %841 = vrot.lane.b32.xlu1 %v7064_v55, %s8701_s11 }
  0x90   : > { %784 = vrot.lane.b32.xlu0 %v7068_v56, %s8701_s11  ;;  %s8713_s11 = smov 1  }
  0x91   : > { %v5782_v58 = vpop.permute.xlu1 %5781 }
  0x92   : > { %v5772_v59 = vpop.permute.xlu0 %5771  ;;  %v5784_v61 = vunpack.i.h.bf16 %v5782_v58  ;;  %v5783_v62 = vunpack.i.l.bf16 %v5782_v58 }
  0x93   : > { %6046 = vrot.lane.b32.xlu1 %v6918_v11, %s8691_s26  ;;  %v5774_v38 = vunpack.i.h.bf16 %v5772_v59  ;;  %v5773_v39 = vunpack.i.l.bf16 %v5772_v59 }
  0x94   : > { %6041 = vrot.lane.b32.xlu0 %v6900_v7, %s8691_s26 }
  0x95   : > { %v5787_v60 = vpop.permute.xlu1 %5786 }
  0x96   : > { %v5789_v63 = vunpack.i.h.bf16 %v5787_v60  ;;  %v5788_v36 = vunpack.i.l.bf16 %v5787_v60  ;;  %v5777_v37 = vpop.permute.xlu0 %5776 }
  0x97   : > { %v5779_v42 = vunpack.i.h.bf16 %v5777_v37  ;;  %v5778_v43 = vunpack.i.l.bf16 %v5777_v37  ;;  %1156 = vrot.lane.b32.xlu1 %v7064_v55, %s8693_s20 }
  0x98   : > { %1099 = vrot.lane.b32.xlu0 %v7068_v56, %s8693_s20  ;;  %v531_v11 = vsel %vm528_vm1, %v5788_v36, %v5783_v62  ;;  %v532_v7 = vsel %vm528_vm1, %v5789_v63, %v5784_v61  ;;  %v587_v30 = vsel %vm528_vm1, %v5783_v62, %v5788_v36  ;;  %s8695_s20 = smov 111  }
  0x99   : > { %v5797_v44 = vpop.permute.xlu1 %5796  ;;  %v529_v45 = vsel %vm528_vm1, %v5778_v43, %v5773_v39  ;;  %v530_v48 = vsel %vm528_vm1, %v5779_v42, %v5774_v38  ;;  %v585_v49 = vsel %vm528_vm1, %v5773_v39, %v5778_v43  ;;  %v586_v50 = vsel %vm528_vm1, %v5774_v38, %v5779_v42 }
  0x9a   : > { %v5799_v51 = vunpack.i.h.bf16 %v5797_v44  ;;  %v5798_v54 = vunpack.i.l.bf16 %v5797_v44  ;;  %v5792_v57 = vpop.permute.xlu0 %5791  ;;  %v5305_v58 = vpack.c.bf16 %v530_v48, %v529_v45  ;;  %v5307_v59 = vpack.c.bf16 %v586_v50, %v585_v49 }
  0x9b   : > { %v5794_v60 = vunpack.i.h.bf16 %v5792_v57  ;;  %v5793_v37 = vunpack.i.l.bf16 %v5792_v57  ;;  %6056 = vrot.lane.b32.xlu1 %v6912_v10, %s8691_s26  ;;  %v5309_v32 = vpack.c.bf16 %v532_v7, %v531_v11  ;;  %v588_v39 = vsel %vm528_vm1, %v5784_v61, %v5789_v63 }
  0x9c   : > { %6051 = vrot.lane.b32.xlu0 %v6887_v3, %s8691_s26  ;;  %5306 = vmatprep.subr.bf16.mxu0 %v5305_v58  ;;  %v5311_v3 = vpack.c.bf16 %v588_v39, %v587_v30 }
  0x9d   : > { %5308 = vmatpush1.bf16.msra.mxu0 %v5307_v59  ;;  %v5807_v38 = vpop.permute.xlu1 %5806  ;;  %v533_v42 = vsel %vm528_vm1, %v5798_v54, %v5793_v37  ;;  %v534_v43 = vsel %vm528_vm1, %v5799_v51, %v5794_v60  ;;  %v589_v62 = vsel %vm528_vm1, %v5793_v37, %v5798_v54  ;;  %v590_v63 = vsel %vm528_vm1, %v5794_v60, %v5799_v51 }
  0x9e   : > { %v5809_v44 = vunpack.i.h.bf16 %v5807_v38  ;;  %v5808_v45 = vunpack.i.l.bf16 %v5807_v38  ;;  %v5802_v48 = vpop.permute.xlu0 %5801  ;;  %5310 = vmatprep.subr.bf16.mxu0 %v5309_v32  ;;  %v5313_v61 = vpack.c.bf16 %v534_v43, %v533_v42 }
  0x9f   : > { %v5804_v10 = vunpack.i.h.bf16 %v5802_v48  ;;  %v5803_v49 = vunpack.i.l.bf16 %v5802_v48  ;;  %6066 = vrot.lane.b32.xlu1 %v6936_v16, %s8691_s26 }
  0xa0   : > { %6061 = vrot.lane.b32.xlu0 %v6942_v17, %s8691_s26  ;;  %v5315_v17 = vpack.c.bf16 %v590_v63, %v589_v62 }
  0xa1   : > { %5312 = vmatpush1.bf16.msra.mxu0 %v5311_v3  ;;  %v5817_v36 = vpop.permute.xlu1 %5816  ;;  %v535_v11 = vsel %vm528_vm1, %v5808_v45, %v5803_v49  ;;  %v536_v32 = vsel %vm528_vm1, %v5809_v44, %v5804_v10  ;;  %v591_v54 = vsel %vm528_vm1, %v5803_v49, %v5808_v45  ;;  %v592_v58 = vsel %vm528_vm1, %v5804_v10, %v5809_v44 }
  0xa2   : > { %v5819_v7 = vunpack.i.h.bf16 %v5817_v36  ;;  %v5818_v50 = vunpack.i.l.bf16 %v5817_v36  ;;  %v5812_v57 = vpop.permute.xlu0 %5811  ;;  %5314 = vmatprep.subr.bf16.mxu0 %v5313_v61  ;;  %v5317_v51 = vpack.c.bf16 %v536_v32, %v535_v11 }
  0xa3   : > { %v5814_v16 = vunpack.i.h.bf16 %v5812_v57  ;;  %v5813_v30 = vunpack.i.l.bf16 %v5812_v57  ;;  %6076 = vrot.lane.b32.xlu1 %v6960_v22, %s8691_s26 }
  0xa4   : > { %6071 = vrot.lane.b32.xlu0 %v6966_v23, %s8691_s26  ;;  %v5319_v23 = vpack.c.bf16 %v592_v58, %v591_v54 }
  0xa5   : > { %5316 = vmatpush1.bf16.msra.mxu0 %v5315_v17  ;;  %v5827_v59 = vpop.permute.xlu1 %5826  ;;  %v537_v60 = vsel %vm528_vm1, %v5818_v50, %v5813_v30  ;;  %v538_v37 = vsel %vm528_vm1, %v5819_v7, %v5814_v16  ;;  %v593_v45 = vsel %vm528_vm1, %v5813_v30, %v5818_v50  ;;  %v594_v48 = vsel %vm528_vm1, %v5814_v16, %v5819_v7 }
  0xa6   : > { %v5829_v39 = vunpack.i.h.bf16 %v5827_v59  ;;  %v5828_v38 = vunpack.i.l.bf16 %v5827_v59  ;;  %v5822_v42 = vpop.permute.xlu0 %5821  ;;  %5318 = vmatprep.subr.bf16.mxu0 %v5317_v51  ;;  %v5321_v44 = vpack.c.bf16 %v538_v37, %v537_v60 }
  0xa7   : > { %v5824_v22 = vunpack.i.h.bf16 %v5822_v42  ;;  %v5823_v43 = vunpack.i.l.bf16 %v5822_v42  ;;  %6086 = vrot.lane.b32.xlu1 %v6984_v28, %s8691_s26 }
  0xa8   : > { %6081 = vrot.lane.b32.xlu0 %v6990_v29, %s8691_s26  ;;  %v5323_v29 = vpack.c.bf16 %v594_v48, %v593_v45 }
  0xa9   : > { %5320 = vmatpush1.bf16.msra.mxu0 %v5319_v23  ;;  %v5837_v10 = vpop.permute.xlu1 %5836  ;;  %v539_v49 = vsel %vm528_vm1, %v5828_v38, %v5823_v43  ;;  %v540_v3 = vsel %vm528_vm1, %v5829_v39, %v5824_v22  ;;  %v595_v32 = vsel %vm528_vm1, %v5823_v43, %v5828_v38  ;;  %v596_v7 = vsel %vm528_vm1, %v5824_v22, %v5829_v39 }
  0xaa   : > { %v5839_v61 = vunpack.i.h.bf16 %v5837_v10  ;;  %v5838_v62 = vunpack.i.l.bf16 %v5837_v10  ;;  %v5832_v63 = vpop.permute.xlu0 %5831  ;;  %5322 = vmatprep.subr.bf16.mxu0 %v5321_v44  ;;  %v5325_v11 = vpack.c.bf16 %v540_v3, %v539_v49 }
  0xab   : > { %v5834_v28 = vunpack.i.h.bf16 %v5832_v63  ;;  %v5833_v36 = vunpack.i.l.bf16 %v5832_v63  ;;  %6096 = vrot.lane.b32.xlu1 %v7008_v34, %s8691_s26 }
  0xac   : > { %6091 = vrot.lane.b32.xlu0 %v7014_v35, %s8691_s26  ;;  %v5327_v35 = vpack.c.bf16 %v596_v7, %v595_v32 }
  0xad   : > { %5324 = vmatpush1.bf16.msra.mxu0 %v5323_v29  ;;  %v5847_v50 = vpop.permute.xlu1 %5846  ;;  %v541_v57 = vsel %vm528_vm1, %v5838_v62, %v5833_v36  ;;  %v542_v16 = vsel %vm528_vm1, %v5839_v61, %v5834_v28  ;;  %v597_v59 = vsel %vm528_vm1, %v5833_v36, %v5838_v62  ;;  %v598_v60 = vsel %vm528_vm1, %v5834_v28, %v5839_v61 }
  0xae   : > { %v5849_v30 = vunpack.i.h.bf16 %v5847_v50  ;;  %v5848_v17 = vunpack.i.l.bf16 %v5847_v50  ;;  %v5842_v51 = vpop.permute.xlu0 %5841  ;;  %5326 = vmatprep.subr.bf16.mxu0 %v5325_v11  ;;  %v5329_v58 = vpack.c.bf16 %v542_v16, %v541_v57 }
  0xaf   : > { %v5844_v34 = vunpack.i.h.bf16 %v5842_v51  ;;  %v5843_v54 = vunpack.i.l.bf16 %v5842_v51  ;;  %6106 = vrot.lane.b32.xlu1 %v7022_v40, %s8691_s26  ;;  %v6135_v51 = vpack.i.bf16 %v6890_v4, %v6906_v9  ;;  %v607_v9 = vld [vmem:[%s8677_s1 + $0x18] sm:$0xff] }
  0xb0   : > { %6101 = vrot.lane.b32.xlu0 %v7026_v41, %s8691_s26  ;;  %v5331_v41 = vpack.c.bf16 %v598_v60, %v597_v59 }
  0xb1   : > { %5328 = vmatpush1.bf16.msra.mxu0 %v5327_v35  ;;  %v5857_v37 = vpop.permute.xlu1 %5856  ;;  %v543_v39 = vsel %vm528_vm1, %v5848_v17, %v5843_v54  ;;  %v544_v38 = vsel %vm528_vm1, %v5849_v30, %v5844_v34  ;;  %v599_v45 = vsel %vm528_vm1, %v5843_v54, %v5848_v17  ;;  %v600_v48 = vsel %vm528_vm1, %v5844_v34, %v5849_v30 }
  0xb2   : > { %v5859_v42 = vunpack.i.h.bf16 %v5857_v37  ;;  %v5858_v22 = vunpack.i.l.bf16 %v5857_v37  ;;  %v5852_v43 = vpop.permute.xlu0 %5851  ;;  %5330 = vmatprep.subr.bf16.mxu0 %v5329_v58  ;;  %v5333_v44 = vpack.c.bf16 %v544_v38, %v543_v39  ;;  %v6130_v34 = vpack.i.bf16 %v6883_v2, %v6903_v8  ;;  %v604_v2 = vld [vmem:[%s8677_s1] sm:$0xff] }
  0xb3   : > { %v5854_v40 = vunpack.i.h.bf16 %v5852_v43  ;;  %v5853_v23 = vunpack.i.l.bf16 %v5852_v43  ;;  %6116 = vrot.lane.b32.xlu1 %v7034_v46, %s8691_s26 }
  0xb4   : > { %6111 = vrot.lane.b32.xlu0 %v7038_v47, %s8691_s26  ;;  %v5335_v47 = vpack.c.bf16 %v600_v48, %v599_v45  ;;  %v6155_v48 = vpack.i.bf16 %v6880_v1, %v6896_v6 }
  0xb5   : > { %5332 = vmatpush1.bf16.msra.mxu0 %v5331_v41  ;;  %v5867_v10 = vpop.permute.xlu1 %5866  ;;  %v545_v49 = vsel %vm528_vm1, %v5858_v22, %v5853_v23  ;;  %v546_v3 = vsel %vm528_vm1, %v5859_v42, %v5854_v40  ;;  %v601_v29 = vsel %vm528_vm1, %v5853_v23, %v5858_v22  ;;  %v602_v11 = vsel %vm528_vm1, %v5854_v40, %v5859_v42 }
  0xb6   : > { %v5869_v61 = vunpack.i.h.bf16 %v5867_v10  ;;  %v5868_v62 = vunpack.i.l.bf16 %v5867_v10  ;;  %v5862_v63 = vpop.permute.xlu0 %5861  ;;  %5334 = vmatprep.subr.bf16.mxu0 %v5333_v44  ;;  %v5337_v36 = vpack.c.bf16 %v546_v3, %v545_v49  ;;  %v606_v10 = vld [vmem:[%s8677_s1 + $0x10] sm:$0xff]  ;;  %v6150_v49 = vpack.i.bf16 %v6877_v0, %v6893_v5  ;;  %v609_v3 = vld [vmem:[%s8677_s1 + $0x28] sm:$0xff] }
  0xb7   : > { %v5864_v46 = vunpack.i.h.bf16 %v5862_v63  ;;  %v5863_v28 = vunpack.i.l.bf16 %v5862_v63  ;;  %6126 = vrot.lane.b32.xlu1 %v7046_v52, %s8691_s26 }
  0xb8   : > { %6121 = vrot.lane.b32.xlu0 %v7050_v53, %s8691_s26  ;;  %v5339_v53 = vpack.c.bf16 %v602_v11, %v601_v29  ;;  %v608_v11 = vld [vmem:[%s8677_s1 + $0x20] sm:$0xff] }
  0xb9   : > { %5336 = vmatpush1.bf16.msra.mxu0 %v5335_v47  ;;  %v527_v32 = vpop.permute.xlu1 %526  ;;  %v844_v7 = vsel %vm843_vm2, %v5868_v62, %v5863_v28  ;;  %v845_v50 = vsel %vm843_vm2, %v5869_v61, %v5864_v46  ;;  %v900_v57 = vsel %vm843_vm2, %v5863_v28, %v5868_v62  ;;  %v901_v16 = vsel %vm843_vm2, %v5864_v46, %v5869_v61 }
  0xba   : > { %v451_v52 = vpop.permute.xlu0 %450  ;;  %5338 = vmatprep.subr.bf16.mxu0 %v5337_v36  ;;  %v5341_v30 = vpack.c.bf16 %v845_v50, %v844_v7  ;;  %v5343_v17 = vpack.c.bf16 %v901_v16, %v900_v57 }
  0xbb   : > { %1471 = vrot.lane.b32.xlu1 %v7064_v55, %s8691_s26  ;;  %v547_v35 = vsel %vm528_vm1, %v527_v32, %v451_v52  ;;  %v603_v8 = vsel %vm528_vm1, %v451_v52, %v527_v32  ;;  %v611_v32 = vld [vmem:[%s8677_s1 + $0x38] sm:$0x3f] }
  0xbc   : > { %1414 = vrot.lane.b32.xlu0 %v7068_v56, %s8691_s26  ;;  %5342 = vmatprep.subr.bf16.mxu1 %v5341_v30 }
  0xbd   : > { %5340 = vmatpush1.bf16.msra.mxu0 %v5339_v53  ;;  %5344 = vmatpush1.bf16.msra.mxu1 %v5343_v17  ;;  %v5877_v54 = vpop.permute.xlu1 %5876 }
  0xbe   : > { %v5879_v58 = vunpack.i.h.bf16 %v5877_v54  ;;  %v5878_v59 = vunpack.i.l.bf16 %v5877_v54  ;;  %v5872_v55 = vpop.permute.xlu0 %5871  ;;  %5107 = vmatprep.subr.msk.mxu0 %vm625_vm3, %v547_v35 }
  0xbf   : > { %v5874_v60 = vunpack.i.h.bf16 %v5872_v55  ;;  %v5873_v4 = vunpack.i.l.bf16 %v5872_v55  ;;  %6136 = vrot.lane.b32.xlu1 %v6135_v51, %s8689_s27  ;;  %v6170_v55 = vpack.i.bf16 %v6927_v14, %v6921_v12 }
  0xc0   : > { %6131 = vrot.lane.b32.xlu0 %v6130_v34, %s8689_s27 }
  0xc1   : > { %v1216_v56 = vsel %vm1158_vm4, %v5874_v60, %v5879_v58  ;;  %v1215_v37 = vsel %vm1158_vm4, %v5873_v4, %v5878_v59  ;;  %5108 = vmatpush1.msk.msra.mxu0 %vm625_vm3, %v603_v8  ;;  %v5887_v39 = vpop.permute.xlu1 %5886  ;;  %v1159_v38 = vsel %vm1158_vm4, %v5878_v59, %v5873_v4  ;;  %v1160_v42 = vsel %vm1158_vm4, %v5879_v58, %v5874_v60  ;;  %v610_v59 = vld [vmem:[%s8677_s1 + $0x30] sm:$0x3f]  ;;  %v5129_v60 = vld [vmem:[%s8677_s1 + $0x88] sm:$0xff] }
  0xc2   : > { %v5889_v22 = vunpack.i.h.bf16 %v5887_v39  ;;  %v5888_v43 = vunpack.i.l.bf16 %v5887_v39  ;;  %v5882_v40 = vpop.permute.xlu0 %5881  ;;  %v5377_v23 = vpack.c.bf16 %v1160_v42, %v1159_v38  ;;  %696 = vmatmul.mubr.f32.vlgmr.msra.gmra.mrb[0].mxu0 %v604_v2  ;;  %v5379_v41 = vpack.c.bf16 %v1216_v56, %v1215_v37 }
  0xc3   : > { %v5884_v44 = vunpack.i.h.bf16 %v5882_v40  ;;  %v5883_v45 = vunpack.i.l.bf16 %v5882_v40  ;;  %6146 = vrot.lane.b32.xlu1 %v6135_v51, %s8699_s25  ;;  %5110 = vmatprep.mubr.msk.f32.mxu0 %vm612_vm0, %v607_v9  ;;  %v6175_v58 = vpack.i.bf16 %v6930_v15, %v6924_v13 }
  0xc4   : > { %6141 = vrot.lane.b32.xlu0 %v6130_v34, %s8699_s25  ;;  %5378 = vmatprep.subr.bf16.mxu0 %v5377_v23 }
  0xc5   : > { %5380 = vmatpush1.bf16.msra.mxu0 %v5379_v41  ;;  %v5897_v61 = vpop.permute.xlu1 %5896  ;;  %v846_v1 = vsel %vm843_vm2, %v5888_v43, %v5883_v45  ;;  %v847_v6 = vsel %vm843_vm2, %v5889_v22, %v5884_v44  ;;  %v902_v62 = vsel %vm843_vm2, %v5883_v45, %v5888_v43  ;;  %v903_v63 = vsel %vm843_vm2, %v5884_v44, %v5889_v22 }
  0xc6   : > { %v5899_v46 = vunpack.i.h.bf16 %v5897_v61  ;;  %v5898_v28 = vunpack.i.l.bf16 %v5897_v61  ;;  %v5892_v47 = vpop.permute.xlu0 %5891  ;;  %v5345_v36 = vpack.c.bf16 %v847_v6, %v846_v1  ;;  %v5347_v29 = vpack.c.bf16 %v903_v63, %v902_v62  ;;  %702 = vmatmul.mubr.f32.gmra.mrb[2].mxu0 %v606_v10 }
  0xc7   : > { %v5894_v0 = vunpack.i.h.bf16 %v5892_v47  ;;  %v5893_v5 = vunpack.i.l.bf16 %v5892_v47  ;;  %6156 = vrot.lane.b32.xlu1 %v6155_v48, %s8689_s27  ;;  %5111 = vmatprep.mubr.msk.f32.mxu0 %vm612_vm0, %v609_v3  ;;  %v6195_v61 = vpack.i.bf16 %v6954_v21, %v6948_v19  ;;  %v6190_v1 = vpack.i.bf16 %v6951_v20, %v6945_v18 }
  0xc8   : > { %6151 = vrot.lane.b32.xlu0 %v6150_v49, %s8689_s27  ;;  %5346 = vmatprep.subr.bf16.mxu1 %v5345_v36 }
  0xc9   : > { %v1218_v7 = vsel %vm1158_vm4, %v5894_v0, %v5899_v46  ;;  %v1217_v50 = vsel %vm1158_vm4, %v5893_v5, %v5898_v28  ;;  %5348 = vmatpush1.bf16.msra.mxu1 %v5347_v29  ;;  %v5907_v57 = vpop.permute.xlu1 %5906  ;;  %v1161_v16 = vsel %vm1158_vm4, %v5898_v28, %v5893_v5  ;;  %v1162_v52 = vsel %vm1158_vm4, %v5899_v46, %v5894_v0 }
  0xca   : > { %v5909_v30 = vunpack.i.h.bf16 %v5907_v57  ;;  %v5908_v17 = vunpack.i.l.bf16 %v5907_v57  ;;  %v5902_v53 = vpop.permute.xlu0 %5901  ;;  %v5381_v51 = vpack.c.bf16 %v1162_v52, %v1161_v16  ;;  %v5383_v34 = vpack.c.bf16 %v1218_v7, %v1217_v50  ;;  %708 = vmatmul.mubr.f32.gmra.mrb[4].mxu0 %v608_v11 }
  0xcb   : > { %v5904_v54 = vunpack.i.h.bf16 %v5902_v53  ;;  %v5903_v35 = vunpack.i.l.bf16 %v5902_v53  ;;  %6166 = vrot.lane.b32.xlu1 %v6155_v48, %s8699_s25  ;;  %5112 = vmatprep.mubr.msk.f32.mxu0 %vm612_vm0, %v611_v32 }
  0xcc   : > { %6161 = vrot.lane.b32.xlu0 %v6150_v49, %s8699_s25  ;;  %5382 = vmatprep.subr.bf16.mxu0 %v5381_v51  ;;  %v6215_v51 = vpack.i.bf16 %v6978_v27, %v6972_v25 }
  0xcd   : > { %5384 = vmatpush1.bf16.msra.mxu0 %v5383_v34  ;;  %v5917_v4 = vpop.permute.xlu1 %5916  ;;  %v848_v13 = vsel %vm843_vm2, %v5908_v17, %v5903_v35  ;;  %v849_v15 = vsel %vm843_vm2, %v5909_v30, %v5904_v54  ;;  %v904_v2 = vsel %vm843_vm2, %v5903_v35, %v5908_v17  ;;  %v905_v8 = vsel %vm843_vm2, %v5904_v54, %v5909_v30 }
  0xce   : > { %v5919_v9 = vunpack.i.h.bf16 %v5917_v4  ;;  %v5918_v56 = vunpack.i.l.bf16 %v5917_v4  ;;  %v5912_v37 = vpop.permute.xlu0 %5911  ;;  %v5349_v39 = vpack.c.bf16 %v849_v15, %v848_v13  ;;  %v5351_v38 = vpack.c.bf16 %v905_v8, %v904_v2  ;;  %714 = vmatmul.mubr.f32.gmra.mrb[6].mxu0 %v610_v59 }
  0xcf   : > { %v5914_v12 = vunpack.i.h.bf16 %v5912_v37  ;;  %v5913_v14 = vunpack.i.l.bf16 %v5912_v37  ;;  %6176 = vrot.lane.b32.xlu1 %v6175_v58, %s8689_s27  ;;  %5138 = vmatprep.mubr.msk.f32.mxu0 %vm612_vm0, %v5129_v60  ;;  %v6210_v34 = vpack.i.bf16 %v6975_v26, %v6969_v24 }
  0xd0   : > { %6171 = vrot.lane.b32.xlu0 %v6170_v55, %s8689_s27  ;;  %5350 = vmatprep.subr.bf16.mxu1 %v5349_v39 }
  0xd1   : > { %v1220_v42 = vsel %vm1158_vm4, %v5914_v12, %v5919_v9  ;;  %v1219_v22 = vsel %vm1158_vm4, %v5913_v14, %v5918_v56  ;;  %5352 = vmatpush1.bf16.msra.mxu1 %v5351_v38  ;;  %v5927_v43 = vpop.permute.xlu1 %5926  ;;  %v1163_v40 = vsel %vm1158_vm4, %v5918_v56, %v5913_v14  ;;  %v1164_v23 = vsel %vm1158_vm4, %v5919_v9, %v5914_v12 }
  0xd2   : > { %v5929_v41 = vunpack.i.h.bf16 %v5927_v43  ;;  %v5928_v44 = vunpack.i.l.bf16 %v5927_v43  ;;  %v5922_v45 = vpop.permute.xlu0 %5921  ;;  %v5385_v48 = vpack.c.bf16 %v1164_v23, %v1163_v40  ;;  %v5387_v10 = vpack.c.bf16 %v1220_v42, %v1219_v22  ;;  %v8709_v40 = vld [vmem:[#allocation5_spill] sm:$0xff]  ;;  %v8710_v23 = vld [vmem:[#allocation6_spill] sm:$0xff] }
  0xd3   : > { %v5924_v49 = vunpack.i.h.bf16 %v5922_v45  ;;  %v5923_v3 = vunpack.i.l.bf16 %v5922_v45  ;;  %6186 = vrot.lane.b32.xlu1 %v6175_v58, %s8699_s25  ;;  %v6235_v43 = vpack.i.bf16 %v7002_v33, %v6996_v31 }
  0xd4   : > { %6181 = vrot.lane.b32.xlu0 %v6170_v55, %s8699_s25  ;;  %5386 = vmatprep.subr.bf16.mxu0 %v5385_v48 }
  0xd5   : > { %5388 = vmatpush1.bf16.msra.mxu0 %v5387_v10  ;;  %v5937_v6 = vpop.permute.xlu1 %5936  ;;  %v850_v62 = vsel %vm843_vm2, %v5928_v44, %v5923_v3  ;;  %v851_v63 = vsel %vm843_vm2, %v5929_v41, %v5924_v49  ;;  %v906_v46 = vsel %vm843_vm2, %v5923_v3, %v5928_v44  ;;  %v907_v28 = vsel %vm843_vm2, %v5924_v49, %v5929_v41 }
  0xd6   : > { %v5939_v47 = vunpack.i.h.bf16 %v5937_v6  ;;  %v5938_v36 = vunpack.i.l.bf16 %v5937_v6  ;;  %v5932_v29 = vpop.permute.xlu0 %5931  ;;  %v5353_v19 = vpack.c.bf16 %v851_v63, %v850_v62  ;;  %v5355_v21 = vpack.c.bf16 %v907_v28, %v906_v46  ;;  %v7352_v63 = vld [vmem:[%s6874_s29 + $0xb0] sm:$0xff]  ;;  %v7355_v46 = vld [vmem:[%s6874_s29 + $0xb8] sm:$0xff] }
  0xd7   : > { %v5934_v0 = vunpack.i.h.bf16 %v5932_v29  ;;  %v5933_v5 = vunpack.i.l.bf16 %v5932_v29  ;;  %6196 = vrot.lane.b32.xlu1 %v6195_v61, %s8689_s27  ;;  %v6230_v41 = vpack.i.bf16 %v8710_v23, %v8709_v40  ;;  %v7359_v28 = vpack.i.bf16 %v7355_v46, %v7352_v63  ;;  %v7418_v40 = vld [vmem:[%s6874_s29 + $0xf8] sm:$0xff] }
  0xd8   : > { %6191 = vrot.lane.b32.xlu0 %v6190_v1, %s8689_s27  ;;  %5354 = vmatprep.subr.bf16.mxu1 %v5353_v19 }
  0xd9   : > { %v1222_v18 = vsel %vm1158_vm4, %v5934_v0, %v5939_v47  ;;  %v1221_v20 = vsel %vm1158_vm4, %v5933_v5, %v5938_v36  ;;  %5356 = vmatpush1.bf16.msra.mxu1 %v5355_v21  ;;  %v5947_v11 = vpop.permute.xlu1 %5946  ;;  %v1165_v32 = vsel %vm1158_vm4, %v5938_v36, %v5933_v5  ;;  %v1166_v7 = vsel %vm1158_vm4, %v5939_v47, %v5934_v0  ;;  %v7363_v47 = vld [vmem:[%s6874_s29 + $0xa0] sm:$0xff]  ;;  %v7366_v36 = vld [vmem:[%s6874_s29 + $0xa8] sm:$0xff] }
  0xda   : > { %v5949_v50 = vunpack.i.h.bf16 %v5947_v11  ;;  %v5948_v57 = vunpack.i.l.bf16 %v5947_v11  ;;  %v5942_v16 = vpop.permute.xlu0 %5941  ;;  %v5389_v52 = vpack.c.bf16 %v1166_v7, %v1165_v32  ;;  %v5391_v30 = vpack.c.bf16 %v1222_v18, %v1221_v20 }
  0xdb   : > { %v5944_v17 = vunpack.i.h.bf16 %v5942_v16  ;;  %v5943_v53 = vunpack.i.l.bf16 %v5942_v16  ;;  %6206 = vrot.lane.b32.xlu1 %v6195_v61, %s8699_s25  ;;  %v7370_v29 = vpack.i.bf16 %v7366_v36, %v7363_v47 }
  0xdc   : > { %6201 = vrot.lane.b32.xlu0 %v6190_v1, %s8699_s25  ;;  %5390 = vmatprep.subr.bf16.mxu0 %v5389_v52  ;;  %v7379_v52 = vld [vmem:[%s6874_s29 + $0xd0] sm:$0xff] }
  0xdd   : > { %5392 = vmatpush1.bf16.msra.mxu0 %v5391_v30  ;;  %v5957_v54 = vpop.permute.xlu1 %5956  ;;  %v852_v35 = vsel %vm843_vm2, %v5948_v57, %v5943_v53  ;;  %v853_v58 = vsel %vm843_vm2, %v5949_v50, %v5944_v17  ;;  %v908_v59 = vsel %vm843_vm2, %v5943_v53, %v5948_v57  ;;  %v909_v55 = vsel %vm843_vm2, %v5944_v17, %v5949_v50  ;;  %v7382_v30 = vld [vmem:[%s6874_s29 + $0xd8] sm:$0xff]  ;;  %v7391_v53 = vld [vmem:[%s6874_s29 + $0xc0] sm:$0xff] }
  0xde   : > { %v5959_v60 = vunpack.i.h.bf16 %v5957_v54  ;;  %v5958_v4 = vunpack.i.l.bf16 %v5957_v54  ;;  %v5952_v13 = vpop.permute.xlu0 %5951  ;;  %v5357_v25 = vpack.c.bf16 %v853_v58, %v852_v35  ;;  %v5359_v27 = vpack.c.bf16 %v909_v55, %v908_v59 }
  0xdf   : > { %v5954_v15 = vunpack.i.h.bf16 %v5952_v13  ;;  %v5953_v2 = vunpack.i.l.bf16 %v5952_v13  ;;  %6216 = vrot.lane.b32.xlu1 %v6215_v51, %s8689_s27  ;;  %v7386_v17 = vpack.i.bf16 %v7382_v30, %v7379_v52 }
  0xe0   : > { %6211 = vrot.lane.b32.xlu0 %v6210_v34, %s8689_s27  ;;  %5358 = vmatprep.subr.bf16.mxu1 %v5357_v25 }
  0xe1   : > { %v1224_v24 = vsel %vm1158_vm4, %v5954_v15, %v5959_v60  ;;  %v1223_v26 = vsel %vm1158_vm4, %v5953_v2, %v5958_v4  ;;  %5360 = vmatpush1.bf16.msra.mxu1 %v5359_v27  ;;  %v5967_v8 = vpop.permute.xlu1 %5966  ;;  %v1167_v9 = vsel %vm1158_vm4, %v5958_v4, %v5953_v2  ;;  %v1168_v56 = vsel %vm1158_vm4, %v5959_v60, %v5954_v15 }
  0xe2   : > { %v5969_v37 = vunpack.i.h.bf16 %v5967_v8  ;;  %v5968_v39 = vunpack.i.l.bf16 %v5967_v8  ;;  %v5962_v38 = vpop.permute.xlu0 %5961  ;;  %v5393_v12 = vpack.c.bf16 %v1168_v56, %v1167_v9  ;;  %v5395_v14 = vpack.c.bf16 %v1224_v24, %v1223_v26 }
  0xe3   : > { %v5964_v42 = vunpack.i.h.bf16 %v5962_v38  ;;  %v5963_v22 = vunpack.i.l.bf16 %v5962_v38  ;;  %6226 = vrot.lane.b32.xlu1 %v6215_v51, %s8699_s25  ;;  %v7394_v51 = vld [vmem:[%s6874_s29 + $0xc8] sm:$0xff] }
  0xe4   : > { %6221 = vrot.lane.b32.xlu0 %v6210_v34, %s8699_s25  ;;  %5394 = vmatprep.subr.bf16.mxu0 %v5393_v12  ;;  %v7398_v34 = vpack.i.bf16 %v7394_v51, %v7391_v53 }
  0xe5   : > { %5396 = vmatpush1.bf16.msra.mxu0 %v5395_v14  ;;  %v5977_v44 = vpop.permute.xlu1 %5976  ;;  %v854_v45 = vsel %vm843_vm2, %v5968_v39, %v5963_v22  ;;  %v855_v48 = vsel %vm843_vm2, %v5969_v37, %v5964_v42  ;;  %v910_v10 = vsel %vm843_vm2, %v5963_v22, %v5968_v39  ;;  %v911_v31 = vsel %vm843_vm2, %v5964_v42, %v5969_v37 }
  0xe6   : > { %v5979_v33 = vunpack.i.h.bf16 %v5977_v44  ;;  %v5978_v49 = vunpack.i.l.bf16 %v5977_v44  ;;  %v5972_v3 = vpop.permute.xlu0 %5971  ;;  %v5361_v61 = vpack.c.bf16 %v855_v48, %v854_v45  ;;  %v5363_v1 = vpack.c.bf16 %v911_v31, %v910_v10  ;;  %v7430_v44 = vld [vmem:[%s6874_s29 + $0xe8] sm:$0xff] }
  0xe7   : > { %v5974_v6 = vunpack.i.h.bf16 %v5972_v3  ;;  %v5973_v62 = vunpack.i.l.bf16 %v5972_v3  ;;  %6236 = vrot.lane.b32.xlu1 %v6235_v43, %s8689_s27  ;;  %v7415_v43 = vld [vmem:[%s6874_s29 + $0xf0] sm:$0xff] }
  0xe8   : > { %6231 = vrot.lane.b32.xlu0 %v6230_v41, %s8689_s27  ;;  %5362 = vmatprep.subr.bf16.mxu1 %v5361_v61  ;;  %v7422_v23 = vpack.i.bf16 %v7418_v40, %v7415_v43  ;;  %v7427_v41 = vld [vmem:[%s6874_s29 + $0xe0] sm:$0xff] }
  0xe9   : > { %v1226_v19 = vsel %vm1158_vm4, %v5974_v6, %v5979_v33  ;;  %v1225_v21 = vsel %vm1158_vm4, %v5973_v62, %v5978_v49  ;;  %5364 = vmatpush1.bf16.msra.mxu1 %v5363_v1  ;;  %v5987_v0 = vpop.permute.xlu1 %5986  ;;  %v1169_v5 = vsel %vm1158_vm4, %v5978_v49, %v5973_v62  ;;  %v1170_v18 = vsel %vm1158_vm4, %v5979_v33, %v5974_v6 }
  0xea   : > { %v5989_v20 = vunpack.i.h.bf16 %v5987_v0  ;;  %v5988_v11 = vunpack.i.l.bf16 %v5987_v0  ;;  %v5982_v32 = vpop.permute.xlu0 %5981  ;;  %v5397_v7 = vpack.c.bf16 %v1170_v18, %v1169_v5  ;;  %v5399_v50 = vpack.c.bf16 %v1226_v19, %v1225_v21 }
  0xeb   : > { %v5984_v57 = vunpack.i.h.bf16 %v5982_v32  ;;  %v5983_v16 = vunpack.i.l.bf16 %v5982_v32  ;;  %6246 = vrot.lane.b32.xlu1 %v7359_v28, %s8699_s25  ;;  %v7434_v45 = vpack.i.bf16 %v7430_v44, %v7427_v41 }
  0xec   : > { %6241 = vrot.lane.b32.xlu0 %v7370_v29, %s8699_s25  ;;  %5398 = vmatprep.subr.bf16.mxu0 %v5397_v7 }
  0xed   : > { %5400 = vmatpush1.bf16.msra.mxu0 %v5399_v50  ;;  %v5997_v54 = vpop.permute.xlu1 %5996  ;;  %v856_v35 = vsel %vm843_vm2, %v5988_v11, %v5983_v16  ;;  %v857_v58 = vsel %vm843_vm2, %v5989_v20, %v5984_v57  ;;  %v912_v59 = vsel %vm843_vm2, %v5983_v16, %v5988_v11  ;;  %v913_v55 = vsel %vm843_vm2, %v5984_v57, %v5989_v20 }
  0xee   : > { %v5999_v60 = vunpack.i.h.bf16 %v5997_v54  ;;  %v5998_v4 = vunpack.i.l.bf16 %v5997_v54  ;;  %v5992_v13 = vpop.permute.xlu0 %5991  ;;  %v5365_v25 = vpack.c.bf16 %v857_v58, %v856_v35  ;;  %v5367_v27 = vpack.c.bf16 %v913_v55, %v912_v59  ;;  %v7451_v58 = vld [vmem:[%s6874_s29 + $0x110] sm:$0xff]  ;;  %v7454_v59 = vld [vmem:[%s6874_s29 + $0x118] sm:$0xff] }
  0xef   : > { %v5994_v15 = vunpack.i.h.bf16 %v5992_v13  ;;  %v5993_v2 = vunpack.i.l.bf16 %v5992_v13  ;;  %6256 = vrot.lane.b32.xlu1 %v7386_v17, %s8689_s27  ;;  %v7458_v55 = vpack.i.bf16 %v7454_v59, %v7451_v58 }
  0xf0   : > { %6251 = vrot.lane.b32.xlu0 %v7398_v34, %s8689_s27  ;;  %5366 = vmatprep.subr.bf16.mxu1 %v5365_v25 }
  0xf1   : > { %v1228_v24 = vsel %vm1158_vm4, %v5994_v15, %v5999_v60  ;;  %v1227_v26 = vsel %vm1158_vm4, %v5993_v2, %v5998_v4  ;;  %5368 = vmatpush1.bf16.msra.mxu1 %v5367_v27  ;;  %v6007_v8 = vpop.permute.xlu1 %6006  ;;  %v1171_v9 = vsel %vm1158_vm4, %v5998_v4, %v5993_v2  ;;  %v1172_v56 = vsel %vm1158_vm4, %v5999_v60, %v5994_v15  ;;  %v7463_v60 = vld [vmem:[%s6874_s29 + $0x100] sm:$0xff]  ;;  %v7466_v4 = vld [vmem:[%s6874_s29 + $0x108] sm:$0xff] }
  0xf2   : > { %v6009_v37 = vunpack.i.h.bf16 %v6007_v8  ;;  %v6008_v39 = vunpack.i.l.bf16 %v6007_v8  ;;  %v6002_v38 = vpop.permute.xlu0 %6001  ;;  %v5401_v12 = vpack.c.bf16 %v1172_v56, %v1171_v9  ;;  %v5403_v14 = vpack.c.bf16 %v1228_v24, %v1227_v26 }
  0xf3   : > { %v6004_v42 = vunpack.i.h.bf16 %v6002_v38  ;;  %v6003_v22 = vunpack.i.l.bf16 %v6002_v38  ;;  %6266 = vrot.lane.b32.xlu1 %v7386_v17, %s8699_s25  ;;  %v7470_v13 = vpack.i.bf16 %v7466_v4, %v7463_v60 }
  0xf4   : > { %6261 = vrot.lane.b32.xlu0 %v7398_v34, %s8699_s25  ;;  %5402 = vmatprep.subr.bf16.mxu0 %v5401_v12 }
  0xf5   : > { %5404 = vmatpush1.bf16.msra.mxu0 %v5403_v14  ;;  %v6017_v48 = vpop.permute.xlu1 %6016  ;;  %v858_v10 = vsel %vm843_vm2, %v6008_v39, %v6003_v22  ;;  %v859_v31 = vsel %vm843_vm2, %v6009_v37, %v6004_v42  ;;  %v914_v33 = vsel %vm843_vm2, %v6003_v22, %v6008_v39  ;;  %v915_v49 = vsel %vm843_vm2, %v6004_v42, %v6009_v37 }
  0xf6   : > { %v6019_v3 = vunpack.i.h.bf16 %v6017_v48  ;;  %v6018_v61 = vunpack.i.l.bf16 %v6017_v48  ;;  %v6012_v1 = vpop.permute.xlu0 %6011  ;;  %v5369_v6 = vpack.c.bf16 %v859_v31, %v858_v10  ;;  %v5371_v62 = vpack.c.bf16 %v915_v49, %v914_v33 }
  0xf7   : > { %v6014_v19 = vunpack.i.h.bf16 %v6012_v1  ;;  %v6013_v21 = vunpack.i.l.bf16 %v6012_v1  ;;  %6276 = vrot.lane.b32.xlu1 %v7422_v23, %s8689_s27  ;;  %v5116_v1 = vld [vmem:[%s8677_s1 + $0x58] sm:$0xff] }
  0xf8   : > { %6271 = vrot.lane.b32.xlu0 %v7434_v45, %s8689_s27  ;;  %5370 = vmatprep.subr.bf16.mxu1 %v5369_v6 }
  0xf9   : > { %v1230_v0 = vsel %vm1158_vm4, %v6014_v19, %v6019_v3  ;;  %v1229_v5 = vsel %vm1158_vm4, %v6013_v21, %v6018_v61  ;;  %5372 = vmatpush1.bf16.msra.mxu1 %v5371_v62  ;;  %v6027_v18 = vpop.permute.xlu1 %6026  ;;  %v1173_v20 = vsel %vm1158_vm4, %v6018_v61, %v6013_v21  ;;  %v1174_v11 = vsel %vm1158_vm4, %v6019_v3, %v6014_v19  ;;  %v5113_v61 = vld [vmem:[%s8677_s1 + $0x40] sm:$0xff] }
  0xfa   : > { %v6029_v32 = vunpack.i.h.bf16 %v6027_v18  ;;  %v6028_v7 = vunpack.i.l.bf16 %v6027_v18  ;;  %v6022_v50 = vpop.permute.xlu0 %6021  ;;  %v5405_v57 = vpack.c.bf16 %v1174_v11, %v1173_v20  ;;  %v5407_v16 = vpack.c.bf16 %v1230_v0, %v1229_v5  ;;  %v7499_v18 = vld [vmem:[%s6874_s29 + $0x128] sm:$0x3f]  ;;  %v6669_v20 = vld [vmem:[%s6874_s29 + $0x18] sm:$0xff]  ;;  %v6670_v11 = vld [vmem:[%s6874_s29 + $0x10] sm:$0xff] }
  0xfb   : > { %v6024_v54 = vunpack.i.h.bf16 %v6022_v50  ;;  %v6023_v35 = vunpack.i.l.bf16 %v6022_v50  ;;  %6286 = vrot.lane.b32.xlu1 %v7422_v23, %s8699_s25  ;;  %v7512_v50 = vld [vmem:[%s6874_s29 + $0x120] sm:$0x3f] }
  0xfc   : > { %6281 = vrot.lane.b32.xlu0 %v7434_v45, %s8699_s25  ;;  %5406 = vmatprep.subr.bf16.mxu0 %v5405_v57  ;;  %v6672_v57 = vld [vmem:[%s6874_s29 + $0x8] sm:$0xff] }
  0xfd   : > { %5408 = vmatpush1.bf16.msra.mxu0 %v5407_v16  ;;  %v6037_v25 = vpop.permute.xlu1 %6036  ;;  %v860_v27 = vsel %vm843_vm2, %v6028_v7, %v6023_v35  ;;  %v861_v15 = vsel %vm843_vm2, %v6029_v32, %v6024_v54  ;;  %v916_v2 = vsel %vm843_vm2, %v6023_v35, %v6028_v7  ;;  %v917_v24 = vsel %vm843_vm2, %v6024_v54, %v6029_v32  ;;  %v5115_v7 = vld [vmem:[%s8677_s1 + $0x50] sm:$0xff]  ;;  %v6673_v16 = vld [vmem:[%s6874_s29] sm:$0xff]  ;;  %v5118_v35 = vld [vmem:[%s8677_s1 + $0x68] sm:$0xff] }
  0xfe   : > { %v6039_v26 = vunpack.i.h.bf16 %v6037_v25  ;;  %v6038_v8 = vunpack.i.l.bf16 %v6037_v25  ;;  %v6032_v9 = vpop.permute.xlu0 %6031  ;;  %v5373_v56 = vpack.c.bf16 %v861_v15, %v860_v27  ;;  %v5375_v37 = vpack.c.bf16 %v917_v24, %v916_v2 }
  0xff   : > { %v6034_v39 = vunpack.i.h.bf16 %v6032_v9  ;;  %v6033_v38 = vunpack.i.l.bf16 %v6032_v9  ;;  %6296 = vrot.lane.b32.xlu1 %v7458_v55, %s8689_s27  ;;  %v7505_v32 = vpack.i.bf16 %v6669_v20, %v6670_v11  ;;  %v7518_v54 = vpack.i.bf16 %v6672_v57, %v6673_v16 }
 0x100   : > { %6291 = vrot.lane.b32.xlu0 %v7470_v13, %s8689_s27  ;;  %5374 = vmatprep.subr.bf16.mxu1 %v5373_v56  ;;  %v5449_v56 = vpack.c.bf16 %v6669_v20, %v6672_v57 }
 0x101   : > { %v1232_v12 = vsel %vm1158_vm4, %v6034_v39, %v6039_v26  ;;  %v1231_v14 = vsel %vm1158_vm4, %v6033_v38, %v6038_v8  ;;  %5376 = vmatpush1.bf16.msra.mxu1 %v5375_v37  ;;  %v842_v42 = vpop.permute.xlu1 %841  ;;  %v1175_v22 = vsel %vm1158_vm4, %v6038_v8, %v6033_v38  ;;  %v1176_v48 = vsel %vm1158_vm4, %v6039_v26, %v6034_v39  ;;  %v5128_v38 = vld [vmem:[%s8677_s1 + $0x80] sm:$0xff] }
 0x102   : > { %v785_v10 = vpop.permute.xlu0 %784  ;;  %v5409_v31 = vpack.c.bf16 %v1176_v48, %v1175_v22  ;;  %v5411_v33 = vpack.c.bf16 %v1232_v12, %v1231_v14  ;;  %v5451_v12 = vpack.c.bf16 %v6670_v11, %v6673_v16  ;;  %v6675_v22 = vld [vmem:[%s6874_s29 + $0x38] sm:$0xff] }
 0x103   : > { %6306 = vrot.lane.b32.xlu1 %v7458_v55, %s8699_s25  ;;  %v862_v49 = vsel %vm843_vm2, %v842_v42, %v785_v10  ;;  %v918_v3 = vsel %vm843_vm2, %v785_v10, %v842_v42  ;;  %v6674_v42 = vld [vmem:[%s6874_s29 + $0x28] sm:$0xff] }
 0x104   : > { %6301 = vrot.lane.b32.xlu0 %v7470_v13, %s8699_s25  ;;  %5121 = vmatprep.subr.msk.mxu1 %vm625_vm3, %v862_v49  ;;  %v5453_v48 = vpack.c.bf16 %v6675_v22, %v6674_v42 }
 0x105   : > { %5410 = vmatprep.subr.bf16.mxu0 %v5409_v31  ;;  %5122 = vmatpush1.msk.msra.mxu1 %vm625_vm3, %v918_v3  ;;  %v6047_v6 = vpop.permute.xlu1 %6046 }
 0x106   : > { %5412 = vmatpush1.bf16.msra.mxu0 %v5411_v33  ;;  %v6049_v62 = vunpack.i.h.bf16 %v6047_v6  ;;  %v6048_v19 = vunpack.i.l.bf16 %v6047_v6  ;;  %v6042_v21 = vpop.permute.xlu0 %6041  ;;  %1010 = vmatmul.mubr.f32.vlgmr.msra.gmra.mrb[0].mxu1 %v5113_v61  ;;  %v5131_v61 = vld [vmem:[%s8677_s1 + $0x98] sm:$0xff]  ;;  %v6676_v6 = vld [vmem:[%s6874_s29 + $0x20] sm:$0xff] }
 0x107   : > { %v6044_v0 = vunpack.i.h.bf16 %v6042_v21  ;;  %v6043_v5 = vunpack.i.l.bf16 %v6042_v21  ;;  %1889 = vrot.lane.b32.xlu1 %v7499_v18, %s8689_s27  ;;  %5124 = vmatprep.mubr.msk.f32.mxu1 %vm612_vm0, %v5116_v1  ;;  %v5117_v1 = vld [vmem:[%s8677_s1 + $0x60] sm:$0xff]  ;;  %v5130_v21 = vld [vmem:[%s8677_s1 + $0x90] sm:$0xff] }
 0x108   : > { %1887 = vrot.lane.b32.xlu0 %v7512_v50, %s8689_s27  ;;  %s8712_s27 = smov 15  }
 0x109   : > { %v1531_v25 = vsel %vm1473_vm5, %v6044_v0, %v6049_v62  ;;  %v1530_v27 = vsel %vm1473_vm5, %v6043_v5, %v6048_v19  ;;  %v1157_v15 = vpop.permute.xlu1 %1156  ;;  %v1474_v2 = vsel %vm1473_vm5, %v6048_v19, %v6043_v5  ;;  %v1475_v24 = vsel %vm1473_vm5, %v6049_v62, %v6044_v0  ;;  %v6677_v62 = vld [vmem:[%s6874_s29 + $0x30] sm:$0xff] }
 0x10a   : > { %v1100_v26 = vpop.permute.xlu0 %1099  ;;  %v5413_v8 = vpack.c.bf16 %v1475_v24, %v1474_v2  ;;  %v5415_v9 = vpack.c.bf16 %v1531_v25, %v1530_v27  ;;  %1016 = vmatmul.mubr.f32.gmra.mrb[2].mxu1 %v5115_v7  ;;  %v5455_v19 = vpack.c.bf16 %v6677_v62, %v6676_v6  ;;  %v6335_v24 = vpack.i.bf16 %v6675_v22, %v6677_v62 }
 0x10b   : > { %v1233_v37 = vsel %vm1158_vm4, %v1100_v26, %v1157_v15  ;;  %6316 = vrot.lane.b32.xlu1 %v7505_v32, %s8697_s28  ;;  %v1177_v39 = vsel %vm1158_vm4, %v1157_v15, %v1100_v26  ;;  %5125 = vmatprep.mubr.msk.f32.mxu1 %vm612_vm0, %v5118_v35  ;;  %v6678_v26 = vld [vmem:[%s6874_s29 + $0x48] sm:$0xff] }
 0x10c   : > { %6311 = vrot.lane.b32.xlu0 %v7518_v54, %s8697_s28  ;;  %5136 = vmatprep.subr.msk.mxu0 %vm625_vm3, %v1177_v39  ;;  %v6680_v39 = vld [vmem:[%s6874_s29 + $0x40] sm:$0xff] }
 0x10d   : > { %5414 = vmatprep.subr.bf16.mxu1 %v5413_v8  ;;  %5137 = vmatpush1.msk.msra.mxu0 %vm625_vm3, %v1233_v37  ;;  %v6057_v14 = vpop.permute.xlu1 %6056  ;;  %v6679_v8 = vld [vmem:[%s6874_s29 + $0x58] sm:$0xff]  ;;  %v6330_v37 = vpack.i.bf16 %v6674_v42, %v6676_v6 }
 0x10e   : > { %5416 = vmatpush1.bf16.msra.mxu1 %v5415_v9  ;;  %v6059_v10 = vunpack.i.h.bf16 %v6057_v14  ;;  %v6058_v31 = vunpack.i.l.bf16 %v6057_v14  ;;  %v6052_v33 = vpop.permute.xlu0 %6051  ;;  %5450 = vmatprep.subr.bf16.mxu0 %v5449_v56  ;;  %v5457_v9 = vpack.c.bf16 %v6679_v8, %v6678_v26  ;;  %v5120_v56 = vld [vmem:[%s8677_s1 + $0x78] sm:$0x3f] }
 0x10f   : > { %v6054_v49 = vunpack.i.h.bf16 %v6052_v33  ;;  %v6053_v3 = vunpack.i.l.bf16 %v6052_v33  ;;  %2204 = vrot.lane.b32.xlu1 %v7499_v18, %s8699_s25  ;;  %1325 = vmatmul.mubr.f32.vlgmr.msra.gmra.mrb[8].mxu0 %v5128_v38  ;;  %v6681_v38 = vld [vmem:[%s6874_s29 + $0x50] sm:$0xff]  ;;  %v7582_v6 = vld [vmem:[%s6874_s29 + $0x78] sm:$0xff] }
 0x110   : > { %2202 = vrot.lane.b32.xlu0 %v7512_v50, %s8699_s25  ;;  %5452 = vmatpush1.bf16.msra.mxu0 %v5451_v12  ;;  %v5459_v12 = vpack.c.bf16 %v6681_v38, %v6680_v39  ;;  %s8714_s25 = smov 127  }
 0x111   : > { %v1533_v0 = vsel %vm1473_vm5, %v6054_v49, %v6059_v10  ;;  %v1532_v5 = vsel %vm1473_vm5, %v6053_v3, %v6058_v31  ;;  %v6067_v20 = vpop.permute.xlu1 %6066  ;;  %v1476_v11 = vsel %vm1473_vm5, %v6058_v31, %v6053_v3  ;;  %v1477_v7 = vsel %vm1473_vm5, %v6059_v10, %v6054_v49  ;;  %5454 = vmatprep.subr.bf16.mxu0 %v5453_v48 }
 0x112   : > { %v6069_v57 = vunpack.i.h.bf16 %v6067_v20  ;;  %v6068_v16 = vunpack.i.l.bf16 %v6067_v20  ;;  %v6062_v35 = vpop.permute.xlu0 %6061  ;;  %v5417_v25 = vpack.c.bf16 %v1477_v7, %v1476_v11  ;;  %v5419_v27 = vpack.c.bf16 %v1533_v0, %v1532_v5  ;;  %5139 = vmatprep.mubr.msk.f32.mxu0 %vm612_vm0, %v5131_v61  ;;  %1022 = vmatmul.mubr.f32.gmra.mrb[4].mxu1 %v5117_v1  ;;  %v7579_v1 = vld [vmem:[%s6874_s29 + $0x68] sm:$0xff]  ;;  %v7594_v0 = vld [vmem:[%s6874_s29 + $0x70] sm:$0xff] }
 0x113   : > { %v6064_v15 = vunpack.i.h.bf16 %v6062_v35  ;;  %v6063_v2 = vunpack.i.l.bf16 %v6062_v35  ;;  %6326 = vrot.lane.b32.xlu1 %v7505_v32, %s8695_s20  ;;  %1331 = vmatmul.mubr.f32.gmra.mrb[10].mxu0 %v5130_v21  ;;  %v5461_v62 = vpack.c.bf16 %v7582_v6, %v7579_v1  ;;  %v5133_v21 = vld [vmem:[%s8677_s1 + $0xa8] sm:$0xff] }
 0x114   : > { %6321 = vrot.lane.b32.xlu0 %v7518_v54, %s8695_s20  ;;  %5418 = vmatprep.subr.bf16.mxu1 %v5417_v25 }
 0x115   : > { %v1535_v14 = vsel %vm1473_vm5, %v6064_v15, %v6069_v57  ;;  %v1534_v32 = vsel %vm1473_vm5, %v6063_v2, %v6068_v16  ;;  %5420 = vmatpush1.bf16.msra.mxu1 %v5419_v27  ;;  %v6077_v22 = vpop.permute.xlu1 %6076  ;;  %v1478_v48 = vsel %vm1473_vm5, %v6068_v16, %v6063_v2  ;;  %v1479_v10 = vsel %vm1473_vm5, %v6069_v57, %v6064_v15 }
 0x116   : > { %v6079_v31 = vunpack.i.h.bf16 %v6077_v22  ;;  %v6078_v33 = vunpack.i.l.bf16 %v6077_v22  ;;  %v6072_v54 = vpop.permute.xlu0 %6071  ;;  %v5421_v42 = vpack.c.bf16 %v1479_v10, %v1478_v48  ;;  %v5423_v49 = vpack.c.bf16 %v1535_v14, %v1534_v32  ;;  %5456 = vmatpush1.bf16.msra.mxu0 %v5455_v19  ;;  %5126 = vmatprep.mubr.msk.f32.mxu1 %vm612_vm0, %v5120_v56  ;;  %v7591_v19 = vld [vmem:[%s6874_s29 + $0x60] sm:$0xff]  ;;  %v7605_v32 = vld [vmem:[%s6874_s29 + $0x88] sm:$0xff]  ;;  %v7608_v22 = vld [vmem:[%s6874_s29 + $0x98] sm:$0xff] }
 0x117   : > { %v6074_v3 = vunpack.i.h.bf16 %v6072_v54  ;;  %v6073_v61 = vunpack.i.l.bf16 %v6072_v54  ;;  %6336 = vrot.lane.b32.xlu1 %v6335_v24, %s8697_s28  ;;  %5458 = vmatprep.subr.bf16.mxu0 %v5457_v9  ;;  %v5463_v5 = vpack.c.bf16 %v7594_v0, %v7591_v19  ;;  %v6355_v14 = vpack.i.bf16 %v6679_v8, %v6681_v38  ;;  %v5119_v10 = vld [vmem:[%s8677_s1 + $0x70] sm:$0x3f] }
 0x118   : > { %6331 = vrot.lane.b32.xlu0 %v6330_v37, %s8697_s28  ;;  %5422 = vmatprep.subr.bf16.mxu1 %v5421_v42  ;;  %v5465_v48 = vpack.c.bf16 %v7608_v22, %v7605_v32 }
 0x119   : > { %v1537_v20 = vsel %vm1473_vm5, %v6074_v3, %v6079_v31  ;;  %v1536_v11 = vsel %vm1473_vm5, %v6073_v61, %v6078_v33  ;;  %5424 = vmatpush1.bf16.msra.mxu1 %v5423_v49  ;;  %v6087_v7 = vpop.permute.xlu1 %6086  ;;  %v1480_v57 = vsel %vm1473_vm5, %v6078_v33, %v6073_v61  ;;  %v1481_v16 = vsel %vm1473_vm5, %v6079_v31, %v6074_v3  ;;  %v7617_v31 = vld [vmem:[%s6874_s29 + $0x80] sm:$0xff] }
 0x11a   : > { %v6089_v35 = vunpack.i.h.bf16 %v6087_v7  ;;  %v6088_v25 = vunpack.i.l.bf16 %v6087_v7  ;;  %v6082_v27 = vpop.permute.xlu0 %6081  ;;  %v5425_v15 = vpack.c.bf16 %v1481_v16, %v1480_v57  ;;  %v5427_v2 = vpack.c.bf16 %v1537_v20, %v1536_v11  ;;  %5460 = vmatpush1.bf16.msra.mxu0 %v5459_v12  ;;  %5140 = vmatprep.mubr.msk.f32.mxu0 %vm612_vm0, %v5133_v21  ;;  %v5144_v11 = vld [vmem:[%s8677_s1 + $0xc8] sm:$0xff] }
 0x11b   : > { %v6084_v9 = vunpack.i.h.bf16 %v6082_v27  ;;  %v6083_v56 = vunpack.i.l.bf16 %v6082_v27  ;;  %6346 = vrot.lane.b32.xlu1 %v6335_v24, %s8695_s20  ;;  %5462 = vmatprep.subr.bf16.mxu0 %v5461_v62  ;;  %v6350_v12 = vpack.i.bf16 %v6678_v26, %v6680_v39  ;;  %v7620_v24 = vld [vmem:[%s6874_s29 + $0x90] sm:$0xff]  ;;  %v5469_v20 = vpack.c.bf16 %v7355_v46, %v7366_v36  ;;  %s8711_s29 = smov 16  }
 0x11c   : > { %6341 = vrot.lane.b32.xlu0 %v6330_v37, %s8695_s20  ;;  %5426 = vmatprep.subr.bf16.mxu1 %v5425_v15  ;;  %v5467_v8 = vpack.c.bf16 %v7620_v24, %v7617_v31  ;;  %v5471_v7 = vpack.c.bf16 %v7352_v63, %v7363_v47  ;;  %v6375_v47 = vpack.i.bf16 %v7582_v6, %v7594_v0 }
 0x11d   : > { %v1539_v38 = vsel %vm1473_vm5, %v6084_v9, %v6089_v35  ;;  %v1538_v33 = vsel %vm1473_vm5, %v6083_v56, %v6088_v25  ;;  %5428 = vmatpush1.bf16.msra.mxu1 %v5427_v2  ;;  %v6097_v54 = vpop.permute.xlu1 %6096  ;;  %v1482_v42 = vsel %vm1473_vm5, %v6088_v25, %v6083_v56  ;;  %v1483_v49 = vsel %vm1473_vm5, %v6089_v35, %v6084_v9 }
 0x11e   : > { %v6099_v37 = vunpack.i.h.bf16 %v6097_v54  ;;  %v6098_v3 = vunpack.i.l.bf16 %v6097_v54  ;;  %v6092_v26 = vpop.permute.xlu0 %6091  ;;  %v5429_v39 = vpack.c.bf16 %v1483_v49, %v1482_v42  ;;  %v5431_v61 = vpack.c.bf16 %v1539_v38, %v1538_v33  ;;  %5464 = vmatpush1.bf16.msra.mxu0 %v5463_v5  ;;  %1028 = vmatmul.mubr.f32.gmra.mrb[6].mxu1 %v5119_v10 }
 0x11f   : > { %v6094_v62 = vunpack.i.h.bf16 %v6092_v26  ;;  %v6093_v21 = vunpack.i.l.bf16 %v6092_v26  ;;  %6356 = vrot.lane.b32.xlu1 %v6355_v14, %s8697_s28  ;;  %5466 = vmatprep.subr.bf16.mxu0 %v5465_v48  ;;  %v5473_v56 = vpack.c.bf16 %v7382_v30, %v7394_v51  ;;  %v6370_v48 = vpack.i.bf16 %v7579_v1, %v7591_v19 }
 0x120   : > { %6351 = vrot.lane.b32.xlu0 %v6350_v12, %s8697_s28  ;;  %5430 = vmatprep.subr.bf16.mxu1 %v5429_v39  ;;  %v5475_v10 = vpack.c.bf16 %v7379_v52, %v7391_v53  ;;  %v5477_v52 = vpack.c.bf16 %v7418_v40, %v7430_v44  ;;  %v5479_v53 = vpack.c.bf16 %v7415_v43, %v7427_v41 }
 0x121   : > { %v1541_v5 = vsel %vm1473_vm5, %v6094_v62, %v6099_v37  ;;  %v1540_v57 = vsel %vm1473_vm5, %v6093_v21, %v6098_v3  ;;  %5432 = vmatpush1.bf16.msra.mxu1 %v5431_v61  ;;  %v6107_v16 = vpop.permute.xlu1 %6106  ;;  %v1484_v35 = vsel %vm1473_vm5, %v6098_v3, %v6093_v21  ;;  %v1485_v46 = vsel %vm1473_vm5, %v6099_v37, %v6094_v62 }
 0x122   : > { %v6109_v36 = vunpack.i.h.bf16 %v6107_v16  ;;  %v6108_v25 = vunpack.i.l.bf16 %v6107_v16  ;;  %v6102_v27 = vpop.permute.xlu0 %6101  ;;  %v5433_v15 = vpack.c.bf16 %v1485_v46, %v1484_v35  ;;  %v5435_v2 = vpack.c.bf16 %v1541_v5, %v1540_v57  ;;  %5468 = vmatpush1.bf16.msra.mxu0 %v5467_v8  ;;  %5153 = vmatprep.mubr.msk.f32.mxu1 %vm612_vm0, %v5144_v11  ;;  %v5132_v11 = vld [vmem:[%s8677_s1 + $0xa0] sm:$0xff] }
 0x123   : > { %v6104_v9 = vunpack.i.h.bf16 %v6102_v27  ;;  %v6103_v63 = vunpack.i.l.bf16 %v6102_v27  ;;  %6366 = vrot.lane.b32.xlu1 %v6355_v14, %s8695_s20  ;;  %5470 = vmatprep.subr.bf16.mxu0 %v5469_v20  ;;  %v6395_v43 = vpack.i.bf16 %v7608_v22, %v7620_v24  ;;  %v6390_v41 = vpack.i.bf16 %v7605_v32, %v7617_v31 }
 0x124   : > { %6361 = vrot.lane.b32.xlu0 %v6350_v12, %s8695_s20  ;;  %5434 = vmatprep.subr.bf16.mxu1 %v5433_v15  ;;  %v5483_v31 = vpack.c.bf16 %v7451_v58, %v7463_v60  ;;  %v5134_v58 = vld [vmem:[%s8677_s1 + $0xb0] sm:$0x3f] }
 0x125   : > { %v1543_v8 = vsel %vm1473_vm5, %v6104_v9, %v6109_v36  ;;  %v1542_v14 = vsel %vm1473_vm5, %v6103_v63, %v6108_v25  ;;  %5436 = vmatpush1.bf16.msra.mxu1 %v5435_v2  ;;  %v6117_v38 = vpop.permute.xlu1 %6116  ;;  %v1486_v6 = vsel %vm1473_vm5, %v6108_v25, %v6103_v63  ;;  %v1487_v0 = vsel %vm1473_vm5, %v6109_v36, %v6104_v9  ;;  %v5143_v9 = vld [vmem:[%s8677_s1 + $0xc0] sm:$0xff] }
 0x126   : > { %v6119_v30 = vunpack.i.h.bf16 %v6117_v38  ;;  %v6118_v51 = vunpack.i.l.bf16 %v6117_v38  ;;  %v6112_v12 = vpop.permute.xlu0 %6111  ;;  %v5437_v33 = vpack.c.bf16 %v1487_v0, %v1486_v6  ;;  %v5439_v54 = vpack.c.bf16 %v1543_v8, %v1542_v14  ;;  %5472 = vmatpush1.bf16.msra.mxu0 %v5471_v7 }
 0x127   : > { %v6114_v1 = vunpack.i.h.bf16 %v6112_v12  ;;  %v6113_v19 = vunpack.i.l.bf16 %v6112_v12  ;;  %6376 = vrot.lane.b32.xlu1 %v6375_v47, %s8697_s28  ;;  %5474 = vmatprep.subr.bf16.mxu0 %v5473_v56  ;;  %v5481_v7 = vpack.c.bf16 %v7454_v59, %v7466_v4  ;;  %v5135_v59 = vld [vmem:[%s8677_s1 + $0xb8] sm:$0x3f]  ;;  %v5158_v12 = vld [vmem:[%s8677_s1 + $0x100] sm:$0xff] }
 0x128   : > { %6371 = vrot.lane.b32.xlu0 %v6370_v48, %s8697_s28  ;;  %5438 = vmatprep.subr.bf16.mxu1 %v5437_v33 }
 0x129   : > { %v1545_v42 = vsel %vm1473_vm5, %v6114_v1, %v6119_v30  ;;  %v1544_v49 = vsel %vm1473_vm5, %v6113_v19, %v6118_v51  ;;  %5440 = vmatpush1.bf16.msra.mxu1 %v5439_v54  ;;  %v6127_v37 = vpop.permute.xlu1 %6126  ;;  %v1488_v3 = vsel %vm1473_vm5, %v6118_v51, %v6113_v19  ;;  %v1489_v26 = vsel %vm1473_vm5, %v6119_v30, %v6114_v1  ;;  %v5146_v1 = vld [vmem:[%s8677_s1 + $0xd8] sm:$0xff] }
 0x12a   : > { %v6129_v39 = vunpack.i.h.bf16 %v6127_v37  ;;  %v6128_v61 = vunpack.i.l.bf16 %v6127_v37  ;;  %v6122_v62 = vpop.permute.xlu0 %6121  ;;  %v5441_v40 = vpack.c.bf16 %v1489_v26, %v1488_v3  ;;  %v5443_v44 = vpack.c.bf16 %v1545_v42, %v1544_v49  ;;  %5476 = vmatpush1.bf16.msra.mxu0 %v5475_v10  ;;  %v5161_v19 = vld [vmem:[%s8677_s1 + $0x118] sm:$0xff]  ;;  %v5145_v42 = vld [vmem:[%s8677_s1 + $0xd0] sm:$0xff] }
 0x12b   : > { %v6124_v21 = vunpack.i.h.bf16 %v6122_v62  ;;  %v6123_v20 = vunpack.i.l.bf16 %v6122_v62  ;;  %6386 = vrot.lane.b32.xlu1 %v6375_v47, %s8695_s20  ;;  %5478 = vmatprep.subr.bf16.mxu0 %v5477_v52 }
 0x12c   : > { %6381 = vrot.lane.b32.xlu0 %v6370_v48, %s8695_s20  ;;  %5442 = vmatprep.subr.bf16.mxu1 %v5441_v40  ;;  %v5159_v48 = vld [vmem:[%s8677_s1 + $0x108] sm:$0xff] }
 0x12d   : > { %v1547_v5 = vsel %vm1473_vm5, %v6124_v21, %v6129_v39  ;;  %v1546_v57 = vsel %vm1473_vm5, %v6123_v20, %v6128_v61  ;;  %5444 = vmatpush1.bf16.msra.mxu1 %v5443_v44  ;;  %v1472_v22 = vpop.permute.xlu1 %1471  ;;  %v1490_v24 = vsel %vm1473_vm5, %v6128_v61, %v6123_v20  ;;  %v1491_v16 = vsel %vm1473_vm5, %v6129_v39, %v6124_v21  ;;  %v5148_v44 = vld [vmem:[%s8677_s1 + $0xe8] sm:$0xff] }
 0x12e   : > { %v1415_v35 = vpop.permute.xlu0 %1414  ;;  %v5445_v46 = vpack.c.bf16 %v1491_v16, %v1490_v24  ;;  %v5447_v32 = vpack.c.bf16 %v1547_v5, %v1546_v57  ;;  %5480 = vmatpush1.bf16.msra.mxu0 %v5479_v53 }
 0x12f   : > { %6396 = vrot.lane.b32.xlu1 %v6395_v43, %s8697_s28  ;;  %1337 = vmatmul.mubr.f32.gmra.mrb[12].mxu0 %v5132_v11  ;;  %v1492_v36 = vsel %vm1473_vm5, %v1472_v22, %v1415_v35  ;;  %v1548_v63 = vsel %vm1473_vm5, %v1415_v35, %v1472_v22 }
 0x130   : > { %6391 = vrot.lane.b32.xlu0 %v6390_v41, %s8697_s28  ;;  %5446 = vmatprep.subr.bf16.mxu1 %v5445_v46  ;;  %v5150_v46 = vld [vmem:[%s8677_s1 + $0xf8] sm:$0x3f] }
 0x131   : > { %5448 = vmatpush1.bf16.msra.mxu1 %v5447_v32  ;;  %v6137_v4 = vpop.permute.xlu1 %6136  ;;  %5482 = vmatprep.subr.bf16.mxu0 %v5481_v7  ;;  %v5147_v7 = vld [vmem:[%s8677_s1 + $0xe0] sm:$0xff] }
 0x132   : > { %v6139_v60 = vunpack.i.h.bf16 %v6137_v4  ;;  %v6138_v25 = vunpack.i.l.bf16 %v6137_v4  ;;  %v6132_v27 = vpop.permute.xlu0 %6131  ;;  %5151 = vmatprep.subr.msk.mxu1 %vm625_vm3, %v1492_v36  ;;  %5484 = vmatpush1.bf16.msra.mxu0 %v5483_v31 }
 0x133   : > { %v6134_v15 = vunpack.i.h.bf16 %v6132_v27  ;;  %v6133_v2 = vunpack.i.l.bf16 %v6132_v27  ;;  %6406 = vrot.lane.b32.xlu1 %v6395_v43, %s8695_s20  ;;  %5141 = vmatprep.mubr.msk.f32.mxu0 %vm612_vm0, %v5135_v59  ;;  %v5160_v43 = vld [vmem:[%s8677_s1 + $0x110] sm:$0xff]  ;;  %v5163_v59 = vld [vmem:[%s8677_s1 + $0x128] sm:$0xff] }
 0x134   : > { %v1893_v47 = vsel %vm1891_vm6, %v6138_v25, %v6139_v60  ;;  %6401 = vrot.lane.b32.xlu0 %v6390_v41, %s8695_s20  ;;  %v1968_v56 = vsel %vm1891_vm6, %v6139_v60, %v6138_v25  ;;  %1343 = vmatmul.mubr.f32.gmra.mrb[14].mxu0 %v5134_v58  ;;  %v5149_v58 = vld [vmem:[%s8677_s1 + $0xf0] sm:$0x3f] }
 0x135   : > { %v1892_v10 = vsel %vm1891_vm6, %v6133_v2, %v6134_v15  ;;  %5152 = vmatpush1.msk.msra.mxu1 %vm625_vm3, %v1548_v63  ;;  %v6147_v8 = vpop.permute.xlu1 %6146  ;;  %v1967_v14 = vsel %vm1891_vm6, %v6134_v15, %v6133_v2  ;;  %5166 = vmatprep.subr.msk.mxu0 %vm625_vm3, %v7499_v18 }
 0x136   : > { %v6149_v38 = vunpack.i.h.bf16 %v6147_v8  ;;  %v6148_v6 = vunpack.i.l.bf16 %v6147_v8  ;;  %v6142_v0 = vpop.permute.xlu0 %6141  ;;  %v5485_v30 = vpack.c.bf16 %v1968_v56, %v1967_v14  ;;  %1640 = vmatmul.mubr.f32.vlgmr.msra.gmra.mrb[8].mxu1 %v5143_v9  ;;  %v5487_v51 = vpack.c.bf16 %v1893_v47, %v1892_v10  ;;  %5167 = vmatpush1.msk.msra.mxu0 %vm625_vm3, %v7512_v50  ;;  %v5173_v56 = vld [vmem:[%s8677_s1 + $0x148] sm:$0xff]  ;;  %v5162_v8 = vld [vmem:[%s8677_s1 + $0x120] sm:$0xff] }
 0x137   : > { %v6144_v33 = vunpack.i.h.bf16 %v6142_v0  ;;  %v6143_v54 = vunpack.i.l.bf16 %v6142_v0  ;;  %6416 = vrot.lane.b32.xlu1 %v7359_v28, %s8697_s28  ;;  %5168 = vmatprep.mubr.msk.f32.mxu0 %vm612_vm0, %v5159_v48 }
 0x138   : > { %v2208_v52 = vsel %vm2206_vm7, %v6148_v6, %v6149_v38  ;;  %6411 = vrot.lane.b32.xlu0 %v7370_v29, %s8697_s28  ;;  %5486 = vmatprep.subr.bf16.mxu1 %v5485_v30  ;;  %v2283_v53 = vsel %vm2206_vm7, %v6149_v38, %v6148_v6  ;;  %v5165_v6 = vld [vmem:[%s8677_s1 + $0x138] sm:$0x3f] }
 0x139   : > { %v2207_v49 = vsel %vm2206_vm7, %v6143_v54, %v6144_v33  ;;  %5488 = vmatpush1.bf16.msra.mxu1 %v5487_v51  ;;  %v6157_v37 = vpop.permute.xlu1 %6156  ;;  %v2282_v3 = vsel %vm2206_vm7, %v6144_v33, %v6143_v54  ;;  %1783 = vmatmul.mubr.f32.vlgmr.msra.gmra.mrb[16].mxu0 %v5158_v12 }
 0x13a   : > { %v6159_v26 = vunpack.i.h.bf16 %v6157_v37  ;;  %v6158_v39 = vunpack.i.l.bf16 %v6157_v37  ;;  %v6152_v61 = vpop.permute.xlu0 %6151  ;;  %v5521_v62 = vpack.c.bf16 %v2283_v53, %v2282_v3  ;;  %v5523_v40 = vpack.c.bf16 %v2208_v52, %v2207_v49  ;;  %5154 = vmatprep.mubr.msk.f32.mxu1 %vm612_vm0, %v5146_v1  ;;  %5169 = vmatprep.mubr.msk.f32.mxu0 %vm612_vm0, %v5161_v19  ;;  %v5164_v52 = vld [vmem:[%s8677_s1 + $0x130] sm:$0x3f]  ;;  %v5188_v49 = vld [vmem:[%s8677_s1 + $0x188] sm:$0xff] }
 0x13b   : > { %v6154_v21 = vunpack.i.h.bf16 %v6152_v61  ;;  %v6153_v20 = vunpack.i.l.bf16 %v6152_v61  ;;  %6426 = vrot.lane.b32.xlu1 %v7359_v28, %s8695_s20  ;;  %1646 = vmatmul.mubr.f32.gmra.mrb[10].mxu1 %v5145_v42 }
 0x13c   : > { %v1895_v41 = vsel %vm1891_vm6, %v6158_v39, %v6159_v26  ;;  %6421 = vrot.lane.b32.xlu0 %v7370_v29, %s8695_s20  ;;  %5522 = vmatprep.subr.bf16.mxu0 %v5521_v62  ;;  %v1970_v11 = vsel %vm1891_vm6, %v6159_v26, %v6158_v39 }
 0x13d   : > { %v1894_v5 = vsel %vm1891_vm6, %v6153_v20, %v6154_v21  ;;  %5524 = vmatpush1.bf16.msra.mxu0 %v5523_v40  ;;  %v6167_v28 = vpop.permute.xlu1 %6166  ;;  %v1969_v57 = vsel %vm1891_vm6, %v6154_v21, %v6153_v20  ;;  %5155 = vmatprep.mubr.msk.f32.mxu1 %vm612_vm0, %v5148_v44 }
 0x13e   : > { %v6169_v22 = vunpack.i.h.bf16 %v6167_v28  ;;  %v6168_v24 = vunpack.i.l.bf16 %v6167_v28  ;;  %v6162_v16 = vpop.permute.xlu0 %6161  ;;  %v5489_v35 = vpack.c.bf16 %v1970_v11, %v1969_v57  ;;  %v5491_v29 = vpack.c.bf16 %v1895_v41, %v1894_v5  ;;  %1789 = vmatmul.mubr.f32.gmra.mrb[18].mxu0 %v5160_v43 }
 0x13f   : > { %v6164_v32 = vunpack.i.h.bf16 %v6162_v16  ;;  %v6163_v31 = vunpack.i.l.bf16 %v6162_v16  ;;  %6436 = vrot.lane.b32.xlu1 %v7386_v17, %s8697_s28  ;;  %1652 = vmatmul.mubr.f32.gmra.mrb[12].mxu1 %v5147_v7 }
 0x140   : > { %v2210_v4 = vsel %vm2206_vm7, %v6168_v24, %v6169_v22  ;;  %6431 = vrot.lane.b32.xlu0 %v7398_v34, %s8697_s28  ;;  %5490 = vmatprep.subr.bf16.mxu1 %v5489_v35  ;;  %v2285_v36 = vsel %vm2206_vm7, %v6169_v22, %v6168_v24 }
 0x141   : > { %v2209_v60 = vsel %vm2206_vm7, %v6163_v31, %v6164_v32  ;;  %5492 = vmatpush1.bf16.msra.mxu1 %v5491_v29  ;;  %v6177_v25 = vpop.permute.xlu1 %6176  ;;  %v2284_v27 = vsel %vm2206_vm7, %v6164_v32, %v6163_v31  ;;  %5156 = vmatprep.mubr.msk.f32.mxu1 %vm612_vm0, %v5150_v46 }
 0x142   : > { %v6179_v15 = vunpack.i.h.bf16 %v6177_v25  ;;  %v6178_v2 = vunpack.i.l.bf16 %v6177_v25  ;;  %v6172_v9 = vpop.permute.xlu0 %6171  ;;  %v5525_v63 = vpack.c.bf16 %v2285_v36, %v2284_v27  ;;  %v5527_v47 = vpack.c.bf16 %v2210_v4, %v2209_v60  ;;  %5170 = vmatprep.mubr.msk.f32.mxu0 %vm612_vm0, %v5163_v59 }
 0x143   : > { %v6174_v48 = vunpack.i.h.bf16 %v6172_v9  ;;  %v6173_v10 = vunpack.i.l.bf16 %v6172_v9  ;;  %6446 = vrot.lane.b32.xlu1 %v7386_v17, %s8695_s20  ;;  %1658 = vmatmul.mubr.f32.gmra.mrb[14].mxu1 %v5149_v58 }
 0x144   : > { %v1897_v14 = vsel %vm1891_vm6, %v6178_v2, %v6179_v15  ;;  %6441 = vrot.lane.b32.xlu0 %v7398_v34, %s8695_s20  ;;  %5526 = vmatprep.subr.bf16.mxu0 %v5525_v63  ;;  %v1972_v38 = vsel %vm1891_vm6, %v6179_v15, %v6178_v2 }
 0x145   : > { %v1896_v0 = vsel %vm1891_vm6, %v6173_v10, %v6174_v48  ;;  %5528 = vmatpush1.bf16.msra.mxu0 %v5527_v47  ;;  %v6187_v17 = vpop.permute.xlu1 %6186  ;;  %v1971_v30 = vsel %vm1891_vm6, %v6174_v48, %v6173_v10  ;;  %5182 = vmatprep.mubr.msk.f32.mxu1 %vm612_vm0, %v5173_v56 }
 0x146   : > { %v6189_v51 = vunpack.i.h.bf16 %v6187_v17  ;;  %v6188_v12 = vunpack.i.l.bf16 %v6187_v17  ;;  %v6182_v33 = vpop.permute.xlu0 %6181  ;;  %v5493_v54 = vpack.c.bf16 %v1972_v38, %v1971_v30  ;;  %v5495_v34 = vpack.c.bf16 %v1897_v14, %v1896_v0  ;;  %1795 = vmatmul.mubr.f32.gmra.mrb[20].mxu0 %v5162_v8 }
 0x147   : > { %v6184_v1 = vunpack.i.h.bf16 %v6182_v33  ;;  %v6183_v19 = vunpack.i.l.bf16 %v6182_v33  ;;  %6456 = vrot.lane.b32.xlu1 %v7422_v23, %s8697_s28  ;;  %5171 = vmatprep.mubr.msk.f32.mxu0 %vm612_vm0, %v5165_v6 }
 0x148   : > { %v2212_v53 = vsel %vm2206_vm7, %v6188_v12, %v6189_v51  ;;  %6451 = vrot.lane.b32.xlu0 %v7434_v45, %s8697_s28  ;;  %5494 = vmatprep.subr.bf16.mxu1 %v5493_v54  ;;  %v2287_v42 = vsel %vm2206_vm7, %v6189_v51, %v6188_v12 }
 0x149   : > { %v2211_v37 = vsel %vm2206_vm7, %v6183_v19, %v6184_v1  ;;  %5496 = vmatpush1.bf16.msra.mxu1 %v5495_v34  ;;  %v6197_v3 = vpop.permute.xlu1 %6196  ;;  %v2286_v26 = vsel %vm2206_vm7, %v6184_v1, %v6183_v19 }
 0x14a   : > { %v6199_v39 = vunpack.i.h.bf16 %v6197_v3  ;;  %v6198_v61 = vunpack.i.l.bf16 %v6197_v3  ;;  %v6192_v62 = vpop.permute.xlu0 %6191  ;;  %v5529_v40 = vpack.c.bf16 %v2287_v42, %v2286_v26  ;;  %v5531_v44 = vpack.c.bf16 %v2212_v53, %v2211_v37  ;;  %1801 = vmatmul.mubr.f32.gmra.mrb[22].mxu0 %v5164_v52 }
 0x14b   : > { %v6194_v21 = vunpack.i.h.bf16 %v6192_v62  ;;  %v6193_v20 = vunpack.i.l.bf16 %v6192_v62  ;;  %6466 = vrot.lane.b32.xlu1 %v7422_v23, %s8695_s20  ;;  %5197 = vmatprep.mubr.msk.f32.mxu0 %vm612_vm0, %v5188_v49 }
 0x14c   : > { %v1899_v43 = vsel %vm1891_vm6, %v6198_v61, %v6199_v39  ;;  %6461 = vrot.lane.b32.xlu0 %v7434_v45, %s8695_s20  ;;  %5530 = vmatprep.subr.bf16.mxu0 %v5529_v40  ;;  %v1974_v41 = vsel %vm1891_vm6, %v6199_v39, %v6198_v61 }
 0x14d   : > { %v1898_v11 = vsel %vm1891_vm6, %v6193_v20, %v6194_v21  ;;  %5532 = vmatpush1.bf16.msra.mxu0 %v5531_v44  ;;  %v6207_v7 = vpop.permute.xlu1 %6206  ;;  %v1973_v5 = vsel %vm1891_vm6, %v6194_v21, %v6193_v20 }
 0x14e   : > { %v6209_v28 = vunpack.i.h.bf16 %v6207_v7  ;;  %v6208_v57 = vunpack.i.l.bf16 %v6207_v7  ;;  %v6202_v22 = vpop.permute.xlu0 %6201  ;;  %v5497_v23 = vpack.c.bf16 %v1974_v41, %v1973_v5  ;;  %v5499_v24 = vpack.c.bf16 %v1899_v43, %v1898_v11 }
 0x14f   : > { %v6204_v16 = vunpack.i.h.bf16 %v6202_v22  ;;  %v6203_v35 = vunpack.i.l.bf16 %v6202_v22  ;;  %6476 = vrot.lane.b32.xlu1 %v7458_v55, %s8697_s28 }
 0x150   : > { %v2214_v45 = vsel %vm2206_vm7, %v6208_v57, %v6209_v28  ;;  %6471 = vrot.lane.b32.xlu0 %v7470_v13, %s8697_s28  ;;  %5498 = vmatprep.subr.bf16.mxu1 %v5497_v23  ;;  %v2289_v29 = vsel %vm2206_vm7, %v6209_v28, %v6208_v57 }
 0x151   : > { %v2213_v46 = vsel %vm2206_vm7, %v6203_v35, %v6204_v16  ;;  %5500 = vmatpush1.bf16.msra.mxu1 %v5499_v24  ;;  %v6217_v32 = vpop.permute.xlu1 %6216  ;;  %v2288_v31 = vsel %vm2206_vm7, %v6204_v16, %v6203_v35 }
 0x152   : > { %v6219_v59 = vunpack.i.h.bf16 %v6217_v32  ;;  %v6218_v4 = vunpack.i.l.bf16 %v6217_v32  ;;  %v6212_v36 = vpop.permute.xlu0 %6211  ;;  %v5533_v58 = vpack.c.bf16 %v2289_v29, %v2288_v31  ;;  %v5535_v60 = vpack.c.bf16 %v2214_v45, %v2213_v46 }
 0x153   : > { %v6214_v25 = vunpack.i.h.bf16 %v6212_v36  ;;  %v6213_v27 = vunpack.i.l.bf16 %v6212_v36  ;;  %6486 = vrot.lane.b32.xlu1 %v7458_v55, %s8695_s20 }
 0x154   : > { %v1901_v15 = vsel %vm1891_vm6, %v6218_v4, %v6219_v59  ;;  %6481 = vrot.lane.b32.xlu0 %v7470_v13, %s8695_s20  ;;  %5534 = vmatprep.subr.bf16.mxu0 %v5533_v58  ;;  %v1976_v2 = vsel %vm1891_vm6, %v6219_v59, %v6218_v4 }
 0x155   : > { %v1900_v9 = vsel %vm1891_vm6, %v6213_v27, %v6214_v25  ;;  %5536 = vmatpush1.bf16.msra.mxu0 %v5535_v60  ;;  %v6227_v63 = vpop.permute.xlu1 %6226  ;;  %v1975_v47 = vsel %vm1891_vm6, %v6214_v25, %v6213_v27 }
 0x156   : > { %v6229_v56 = vunpack.i.h.bf16 %v6227_v63  ;;  %v6228_v48 = vunpack.i.l.bf16 %v6227_v63  ;;  %v6222_v10 = vpop.permute.xlu0 %6221  ;;  %v5501_v8 = vpack.c.bf16 %v1976_v2, %v1975_v47  ;;  %v5503_v14 = vpack.c.bf16 %v1901_v15, %v1900_v9 }
 0x157   : > { %v6224_v55 = vunpack.i.h.bf16 %v6222_v10  ;;  %v6223_v38 = vunpack.i.l.bf16 %v6222_v10  ;;  %2519 = vrot.lane.b32.xlu1 %v7499_v18, %s8697_s28 }
 0x158   : > { %v2216_v13 = vsel %vm2206_vm7, %v6228_v48, %v6229_v56  ;;  %2517 = vrot.lane.b32.xlu0 %v7512_v50, %s8697_s28  ;;  %5502 = vmatprep.subr.bf16.mxu1 %v5501_v8  ;;  %v2291_v6 = vsel %vm2206_vm7, %v6229_v56, %v6228_v48  ;;  %s8717_s28 = smov 111  }
 0x159   : > { %v2215_v0 = vsel %vm2206_vm7, %v6223_v38, %v6224_v55  ;;  %5504 = vmatpush1.bf16.msra.mxu1 %v5503_v14  ;;  %v6237_v17 = vpop.permute.xlu1 %6236  ;;  %v2290_v30 = vsel %vm2206_vm7, %v6224_v55, %v6223_v38 }
 0x15a   : > { %v6239_v51 = vunpack.i.h.bf16 %v6237_v17  ;;  %v6238_v12 = vunpack.i.l.bf16 %v6237_v17  ;;  %v6232_v33 = vpop.permute.xlu0 %6231  ;;  %v5537_v54 = vpack.c.bf16 %v2291_v6, %v2290_v30  ;;  %v5539_v34 = vpack.c.bf16 %v2216_v13, %v2215_v0 }
 0x15b   : > { %v6234_v1 = vunpack.i.h.bf16 %v6232_v33  ;;  %v6233_v19 = vunpack.i.l.bf16 %v6232_v33  ;;  %2834 = vrot.lane.b32.xlu1 %v7499_v18, %s8695_s20 }
 0x15c   : > { %v1903_v52 = vsel %vm1891_vm6, %v6238_v12, %v6239_v51  ;;  %2832 = vrot.lane.b32.xlu0 %v7512_v50, %s8695_s20  ;;  %5538 = vmatprep.subr.bf16.mxu0 %v5537_v54  ;;  %v1978_v53 = vsel %vm1891_vm6, %v6239_v51, %v6238_v12 }
 0x15d   : > { %v1902_v42 = vsel %vm1891_vm6, %v6233_v19, %v6234_v1  ;;  %5540 = vmatpush1.bf16.msra.mxu0 %v5539_v34  ;;  %v6247_v49 = vpop.permute.xlu1 %6246  ;;  %v1977_v37 = vsel %vm1891_vm6, %v6234_v1, %v6233_v19 }
 0x15e   : > { %v6249_v3 = vunpack.i.h.bf16 %v6247_v49  ;;  %v6248_v26 = vunpack.i.l.bf16 %v6247_v49  ;;  %v6242_v39 = vpop.permute.xlu0 %6241  ;;  %v5505_v61 = vpack.c.bf16 %v1978_v53, %v1977_v37  ;;  %v5507_v62 = vpack.c.bf16 %v1903_v52, %v1902_v42 }
 0x15f   : > { %v6244_v18 = vunpack.i.h.bf16 %v6242_v39  ;;  %v6243_v40 = vunpack.i.l.bf16 %v6242_v39 }
 0x160   : > { %v2218_v44 = vsel %vm2206_vm7, %v6248_v26, %v6249_v3  ;;  %5506 = vmatprep.subr.bf16.mxu1 %v5505_v61  ;;  %v2293_v50 = vsel %vm2206_vm7, %v6249_v3, %v6248_v26 }
 0x161   : > { %v2217_v21 = vsel %vm2206_vm7, %v6243_v40, %v6244_v18  ;;  %5508 = vmatpush1.bf16.msra.mxu1 %v5507_v62  ;;  %v6257_v20 = vpop.permute.xlu1 %6256  ;;  %v2292_v43 = vsel %vm2206_vm7, %v6244_v18, %v6243_v40 }
 0x162   : > { %v6259_v41 = vunpack.i.h.bf16 %v6257_v20  ;;  %v6258_v11 = vunpack.i.l.bf16 %v6257_v20  ;;  %v6252_v7 = vpop.permute.xlu0 %6251  ;;  %v5541_v5 = vpack.c.bf16 %v2293_v50, %v2292_v43  ;;  %v5543_v28 = vpack.c.bf16 %v2218_v44, %v2217_v21 }
 0x163   : > { %v6254_v57 = vunpack.i.h.bf16 %v6252_v7  ;;  %v6253_v22 = vunpack.i.l.bf16 %v6252_v7 }
 0x164   : > { %v1905_v23 = vsel %vm1891_vm6, %v6258_v11, %v6259_v41  ;;  %5542 = vmatprep.subr.bf16.mxu0 %v5541_v5  ;;  %v1980_v24 = vsel %vm1891_vm6, %v6259_v41, %v6258_v11 }
 0x165   : > { %v1904_v16 = vsel %vm1891_vm6, %v6253_v22, %v6254_v57  ;;  %5544 = vmatpush1.bf16.msra.mxu0 %v5543_v28  ;;  %v6267_v35 = vpop.permute.xlu1 %6266  ;;  %v1979_v45 = vsel %vm1891_vm6, %v6254_v57, %v6253_v22 }
 0x166   : > { %v6269_v29 = vunpack.i.h.bf16 %v6267_v35  ;;  %v6268_v46 = vunpack.i.l.bf16 %v6267_v35  ;;  %v6262_v32 = vpop.permute.xlu0 %6261  ;;  %v5509_v31 = vpack.c.bf16 %v1980_v24, %v1979_v45  ;;  %v5511_v59 = vpack.c.bf16 %v1905_v23, %v1904_v16 }
 0x167   : > { %v6264_v4 = vunpack.i.h.bf16 %v6262_v32  ;;  %v6263_v36 = vunpack.i.l.bf16 %v6262_v32  ;;  %v5175_v32 = vld [vmem:[%s8677_s1 + $0x158] sm:$0xff] }
 0x168   : > { %v2220_v58 = vsel %vm2206_vm7, %v6268_v46, %v6269_v29  ;;  %5510 = vmatprep.subr.bf16.mxu1 %v5509_v31  ;;  %v2295_v60 = vsel %vm2206_vm7, %v6269_v29, %v6268_v46  ;;  %v5172_v46 = vld [vmem:[%s8677_s1 + $0x140] sm:$0xff] }
 0x169   : > { %v2219_v25 = vsel %vm2206_vm7, %v6263_v36, %v6264_v4  ;;  %5512 = vmatpush1.bf16.msra.mxu1 %v5511_v59  ;;  %v6277_v27 = vpop.permute.xlu1 %6276  ;;  %v2294_v15 = vsel %vm2206_vm7, %v6264_v4, %v6263_v36 }
 0x16a   : > { %v6279_v2 = vunpack.i.h.bf16 %v6277_v27  ;;  %v6278_v9 = vunpack.i.l.bf16 %v6277_v27  ;;  %v6272_v63 = vpop.permute.xlu0 %6271  ;;  %v5545_v47 = vpack.c.bf16 %v2295_v60, %v2294_v15  ;;  %v5547_v56 = vpack.c.bf16 %v2220_v58, %v2219_v25  ;;  %v5174_v25 = vld [vmem:[%s8677_s1 + $0x150] sm:$0xff] }
 0x16b   : > { %v6274_v48 = vunpack.i.h.bf16 %v6272_v63  ;;  %v6273_v10 = vunpack.i.l.bf16 %v6272_v63 }
 0x16c   : > { %v1907_v8 = vsel %vm1891_vm6, %v6278_v9, %v6279_v2  ;;  %5546 = vmatprep.subr.bf16.mxu0 %v5545_v47  ;;  %v1982_v14 = vsel %vm1891_vm6, %v6279_v2, %v6278_v9  ;;  %v5177_v2 = vld [vmem:[%s8677_s1 + $0x168] sm:$0xff] }
 0x16d   : > { %v1906_v55 = vsel %vm1891_vm6, %v6273_v10, %v6274_v48  ;;  %5548 = vmatpush1.bf16.msra.mxu0 %v5547_v56  ;;  %v6287_v38 = vpop.permute.xlu1 %6286  ;;  %v1981_v13 = vsel %vm1891_vm6, %v6274_v48, %v6273_v10 }
 0x16e   : > { %v6289_v6 = vunpack.i.h.bf16 %v6287_v38  ;;  %v6288_v0 = vunpack.i.l.bf16 %v6287_v38  ;;  %v6282_v17 = vpop.permute.xlu0 %6281  ;;  %v5513_v30 = vpack.c.bf16 %v1982_v14, %v1981_v13  ;;  %v5515_v51 = vpack.c.bf16 %v1907_v8, %v1906_v55  ;;  %v5176_v55 = vld [vmem:[%s8677_s1 + $0x160] sm:$0xff]  ;;  %v5179_v13 = vld [vmem:[%s8677_s1 + $0x178] sm:$0x3f] }
 0x16f   : > { %v6284_v12 = vunpack.i.h.bf16 %v6282_v17  ;;  %v6283_v33 = vunpack.i.l.bf16 %v6282_v17  ;;  %v5187_v38 = vld [vmem:[%s8677_s1 + $0x180] sm:$0xff] }
 0x170   : > { %v2222_v54 = vsel %vm2206_vm7, %v6288_v0, %v6289_v6  ;;  %5514 = vmatprep.subr.bf16.mxu1 %v5513_v30  ;;  %v2297_v34 = vsel %vm2206_vm7, %v6289_v6, %v6288_v0  ;;  %v5190_v6 = vld [vmem:[%s8677_s1 + $0x198] sm:$0xff] }
 0x171   : > { %v2221_v1 = vsel %vm2206_vm7, %v6283_v33, %v6284_v12  ;;  %5516 = vmatpush1.bf16.msra.mxu1 %v5515_v51  ;;  %v6297_v19 = vpop.permute.xlu1 %6296  ;;  %v2296_v52 = vsel %vm2206_vm7, %v6284_v12, %v6283_v33 }
 0x172   : > { %v6299_v53 = vunpack.i.h.bf16 %v6297_v19  ;;  %v6298_v42 = vunpack.i.l.bf16 %v6297_v19  ;;  %v6292_v49 = vpop.permute.xlu0 %6291  ;;  %v5549_v37 = vpack.c.bf16 %v2297_v34, %v2296_v52  ;;  %v5551_v3 = vpack.c.bf16 %v2222_v54, %v2221_v1  ;;  %v5178_v54 = vld [vmem:[%s8677_s1 + $0x170] sm:$0x3f]  ;;  %v5192_v52 = vld [vmem:[%s8677_s1 + $0x1a8] sm:$0xff] }
 0x173   : > { %v6294_v26 = vunpack.i.h.bf16 %v6292_v49  ;;  %v6293_v39 = vunpack.i.l.bf16 %v6292_v49  ;;  %v5189_v34 = vld [vmem:[%s8677_s1 + $0x190] sm:$0xff] }
 0x174   : > { %v1909_v61 = vsel %vm1891_vm6, %v6298_v42, %v6299_v53  ;;  %5550 = vmatprep.subr.bf16.mxu0 %v5549_v37  ;;  %v1984_v62 = vsel %vm1891_vm6, %v6299_v53, %v6298_v42  ;;  %v5203_v53 = vld [vmem:[%s8677_s1 + $0x1c8] sm:$0xff] }
 0x175   : > { %v1908_v18 = vsel %vm1891_vm6, %v6293_v39, %v6294_v26  ;;  %5552 = vmatpush1.bf16.msra.mxu0 %v5551_v3  ;;  %v6307_v40 = vpop.permute.xlu1 %6306  ;;  %v1983_v44 = vsel %vm1891_vm6, %v6294_v26, %v6293_v39 }
 0x176   : > { %v6309_v50 = vunpack.i.h.bf16 %v6307_v40  ;;  %v6308_v21 = vunpack.i.l.bf16 %v6307_v40  ;;  %v6302_v20 = vpop.permute.xlu0 %6301  ;;  %v5517_v43 = vpack.c.bf16 %v1984_v62, %v1983_v44  ;;  %v5519_v41 = vpack.c.bf16 %v1909_v61, %v1908_v18  ;;  %v5191_v44 = vld [vmem:[%s8677_s1 + $0x1a0] sm:$0xff] }
 0x177   : > { %v6304_v11 = vunpack.i.h.bf16 %v6302_v20  ;;  %v6303_v7 = vunpack.i.l.bf16 %v6302_v20  ;;  %v5194_v20 = vld [vmem:[%s8677_s1 + $0x1b8] sm:$0x3f] }
 0x178   : > { %v2224_v5 = vsel %vm2206_vm7, %v6308_v21, %v6309_v50  ;;  %5518 = vmatprep.subr.bf16.mxu1 %v5517_v43  ;;  %v2299_v28 = vsel %vm2206_vm7, %v6309_v50, %v6308_v21 }
 0x179   : > { %v2223_v57 = vsel %vm2206_vm7, %v6303_v7, %v6304_v11  ;;  %5520 = vmatpush1.bf16.msra.mxu1 %v5519_v41  ;;  %v1890_v22 = vpop.permute.xlu1 %1889  ;;  %v2298_v23 = vsel %vm2206_vm7, %v6304_v11, %v6303_v7 }
 0x17a   : > { %v1888_v24 = vpop.permute.xlu0 %1887  ;;  %v5553_v16 = vpack.c.bf16 %v2299_v28, %v2298_v23  ;;  %v5555_v35 = vpack.c.bf16 %v2224_v5, %v2223_v57 }
 0x17b   : > { %v1910_v45 = vsel %vm1891_vm6, %v1888_v24, %v1890_v22  ;;  %v1985_v29 = vsel %vm1891_vm6, %v1890_v22, %v1888_v24 }
 0x17c   : > { %5180 = vmatprep.subr.msk.mxu1 %vm625_vm3, %v1985_v29  ;;  %5554 = vmatprep.subr.bf16.mxu0 %v5553_v16  ;;  %v5193_v16 = vld [vmem:[%s8677_s1 + $0x1b0] sm:$0x3f] }
 0x17d   : > { %5181 = vmatpush1.msk.msra.mxu1 %vm625_vm3, %v1910_v45  ;;  %5556 = vmatpush1.bf16.msra.mxu0 %v5555_v35  ;;  %v6317_v31 = vpop.permute.xlu1 %6316  ;;  %v3075_v35 = vld [vmem:[%s8678_s2] sm:$0xff] }
 0x17e   : > { %v6319_v59 = vunpack.i.h.bf16 %v6317_v31  ;;  %v6318_v4 = vunpack.i.l.bf16 %v6317_v31  ;;  %v6312_v36 = vpop.permute.xlu0 %6311  ;;  %2077 = vmatmul.mubr.f32.vlgmr.msra.gmra.mrb[16].mxu1 %v5172_v46  ;;  %v5218_v46 = vld [vmem:[%s8677_s1 + $0x208] sm:$0xff] }
 0x17f   : > { %v6314_v58 = vunpack.i.h.bf16 %v6312_v36  ;;  %v6313_v60 = vunpack.i.l.bf16 %v6312_v36  ;;  %5183 = vmatprep.mubr.msk.f32.mxu1 %vm612_vm0, %v5175_v32  ;;  %v6762_v32 = vmov 0   ;;  %v3076_v31 = vld [vmem:[%s8678_s2 + $0x8] sm:$0xff] }
 0x180   : > { %v2523_v27 = vsel %vm2521_vm8, %v6318_v4, %v6319_v59  ;;  %v2598_v15 = vsel %vm2521_vm8, %v6319_v59, %v6318_v4  ;;  %6490 = vset.pattern.permute.xlu0 %v6762_v32  ;;  %6491 = vset.pattern.permute.xlu1 %v6762_v32 }
 0x181   : > { %v2522_v9 = vsel %vm2521_vm8, %v6313_v60, %v6314_v58  ;;  %v2205_v63 = vpop.permute.xlu1 %2204  ;;  %v2597_v47 = vsel %vm2521_vm8, %v6314_v58, %v6313_v60  ;;  %3081 = vperm.xlu0 %6490, %v3075_v35   ;;  %3086 = vperm.xlu1 %6491, %v3076_v31  }
 0x182   : > { %v5559_v56 = vpack.c.bf16 %v2523_v27, %v2522_v9  ;;  %v2203_v48 = vpop.permute.xlu0 %2202  ;;  %2083 = vmatmul.mubr.f32.gmra.mrb[18].mxu1 %v5174_v25  ;;  %v5557_v10 = vpack.c.bf16 %v2598_v15, %v2597_v47 }
 0x183   : > { %v2225_v8 = vsel %vm2206_vm7, %v2203_v48, %v2205_v63  ;;  %v2300_v14 = vsel %vm2206_vm7, %v2205_v63, %v2203_v48  ;;  %5184 = vmatprep.mubr.msk.f32.mxu1 %vm612_vm0, %v5177_v2  ;;  %v3078_v63 = vld [vmem:[%s8678_s2 + $0x18] sm:$0x3f]  ;;  %v3077_v48 = vld [vmem:[%s8678_s2 + $0x10] sm:$0xff] }
 0x184   : > { %5195 = vmatprep.subr.msk.mxu0 %vm625_vm3, %v2300_v14  ;;  %5558 = vmatprep.subr.bf16.mxu1 %v5557_v10 }
 0x185   : > { %5196 = vmatpush1.msk.msra.mxu0 %vm625_vm3, %v2225_v8  ;;  %5560 = vmatpush1.bf16.msra.mxu1 %v5559_v56  ;;  %v6327_v0 = vpop.permute.xlu1 %6326 }
 0x186   : > { %v6329_v17 = vunpack.i.h.bf16 %v6327_v0  ;;  %v6328_v30 = vunpack.i.l.bf16 %v6327_v0  ;;  %v6322_v51 = vpop.permute.xlu0 %6321  ;;  %2089 = vmatmul.mubr.f32.gmra.mrb[20].mxu1 %v5176_v55  ;;  %2392 = vmatmul.mubr.f32.vlgmr.msra.gmra.mrb[24].mxu0 %v5187_v38 }
 0x187   : > { %v6324_v12 = vunpack.i.h.bf16 %v6322_v51  ;;  %v6323_v33 = vunpack.i.l.bf16 %v6322_v51  ;;  %5185 = vmatprep.mubr.msk.f32.mxu1 %vm612_vm0, %v5179_v13  ;;  %5198 = vmatprep.mubr.msk.f32.mxu0 %vm612_vm0, %v5190_v6 }
 0x188   : > { %v2838_v1 = vsel %vm2836_vm9, %v6328_v30, %v6329_v17  ;;  %v2913_v19 = vsel %vm2836_vm9, %v6329_v17, %v6328_v30  ;;  %3096 = vperm.xlu0 %6490, %v3078_v63   ;;  %3091 = vperm.xlu1 %6491, %v3077_v48  }
 0x189   : > { %v2837_v42 = vsel %vm2836_vm9, %v6323_v33, %v6324_v12  ;;  %v6337_v49 = vpop.permute.xlu1 %6336  ;;  %v2912_v37 = vsel %vm2836_vm9, %v6324_v12, %v6323_v33 }
 0x18a   : > { %v5595_v3 = vpack.c.bf16 %v2838_v1, %v2837_v42  ;;  %v6339_v26 = vunpack.i.h.bf16 %v6337_v49  ;;  %v6338_v39 = vunpack.i.l.bf16 %v6337_v49  ;;  %v6332_v61 = vpop.permute.xlu0 %6331  ;;  %2095 = vmatmul.mubr.f32.gmra.mrb[22].mxu1 %v5178_v54  ;;  %2398 = vmatmul.mubr.f32.gmra.mrb[26].mxu0 %v5189_v34  ;;  %v5593_v62 = vpack.c.bf16 %v2913_v19, %v2912_v37 }
 0x18b   : > { %v6334_v18 = vunpack.i.h.bf16 %v6332_v61  ;;  %v6333_v40 = vunpack.i.l.bf16 %v6332_v61  ;;  %5199 = vmatprep.mubr.msk.f32.mxu0 %vm612_vm0, %v5192_v52  ;;  %5212 = vmatprep.mubr.msk.f32.mxu1 %vm612_vm0, %v5203_v53 }
 0x18c   : > { %v2525_v50 = vsel %vm2521_vm8, %v6338_v39, %v6339_v26  ;;  %5594 = vmatprep.subr.bf16.mxu0 %v5593_v62  ;;  %v2600_v21 = vsel %vm2521_vm8, %v6339_v26, %v6338_v39 }
 0x18d   : > { %v2524_v43 = vsel %vm2521_vm8, %v6333_v40, %v6334_v18  ;;  %5596 = vmatpush1.bf16.msra.mxu0 %v5595_v3  ;;  %v6347_v41 = vpop.permute.xlu1 %6346  ;;  %v2599_v11 = vsel %vm2521_vm8, %v6334_v18, %v6333_v40 }
 0x18e   : > { %v5563_v7 = vpack.c.bf16 %v2525_v50, %v2524_v43  ;;  %v6349_v5 = vunpack.i.h.bf16 %v6347_v41  ;;  %v6348_v28 = vunpack.i.l.bf16 %v6347_v41  ;;  %v6342_v57 = vpop.permute.xlu0 %6341  ;;  %2404 = vmatmul.mubr.f32.gmra.mrb[28].mxu0 %v5191_v44  ;;  %v5561_v22 = vpack.c.bf16 %v2600_v21, %v2599_v11 }
 0x18f   : > { %v6344_v23 = vunpack.i.h.bf16 %v6342_v57  ;;  %v6343_v24 = vunpack.i.l.bf16 %v6342_v57  ;;  %5200 = vmatprep.mubr.msk.f32.mxu0 %vm612_vm0, %v5194_v20 }
 0x190   : > { %v2840_v45 = vsel %vm2836_vm9, %v6348_v28, %v6349_v5  ;;  %5562 = vmatprep.subr.bf16.mxu1 %v5561_v22  ;;  %v2915_v29 = vsel %vm2836_vm9, %v6349_v5, %v6348_v28 }
 0x191   : > { %v2839_v59 = vsel %vm2836_vm9, %v6343_v24, %v6344_v23  ;;  %5564 = vmatpush1.bf16.msra.mxu1 %v5563_v7  ;;  %v6357_v4 = vpop.permute.xlu1 %6356  ;;  %v2914_v36 = vsel %vm2836_vm9, %v6344_v23, %v6343_v24 }
 0x192   : > { %v5599_v58 = vpack.c.bf16 %v2840_v45, %v2839_v59  ;;  %v6359_v60 = vunpack.i.h.bf16 %v6357_v4  ;;  %v6358_v25 = vunpack.i.l.bf16 %v6357_v4  ;;  %v6352_v27 = vpop.permute.xlu0 %6351  ;;  %2410 = vmatmul.mubr.f32.gmra.mrb[30].mxu0 %v5193_v16  ;;  %v5597_v15 = vpack.c.bf16 %v2915_v29, %v2914_v36 }
 0x193   : > { %v6354_v2 = vunpack.i.h.bf16 %v6352_v27  ;;  %v6353_v9 = vunpack.i.l.bf16 %v6352_v27  ;;  %5227 = vmatprep.mubr.msk.f32.mxu0 %vm612_vm0, %v5218_v46 }
 0x194   : > { %v2527_v47 = vsel %vm2521_vm8, %v6358_v25, %v6359_v60  ;;  %5598 = vmatprep.subr.bf16.mxu0 %v5597_v15  ;;  %v2602_v56 = vsel %vm2521_vm8, %v6359_v60, %v6358_v25 }
 0x195   : > { %v2526_v10 = vsel %vm2521_vm8, %v6353_v9, %v6354_v2  ;;  %5600 = vmatpush1.bf16.msra.mxu0 %v5599_v58  ;;  %v6367_v8 = vpop.permute.xlu1 %6366  ;;  %v2601_v14 = vsel %vm2521_vm8, %v6354_v2, %v6353_v9  ;;  %v7970_v55 = vpop.f32.mrb[0].mxu0 }
 0x196   : > { %v5567_v38 = vpack.c.bf16 %v2527_v47, %v2526_v10  ;;  %v6369_v13 = vunpack.i.h.bf16 %v6367_v8  ;;  %v6368_v6 = vunpack.i.l.bf16 %v6367_v8  ;;  %v6362_v0 = vpop.permute.xlu0 %6361  ;;  %v5565_v17 = vpack.c.bf16 %v2602_v56, %v2601_v14  ;;  %v7972_v30 = vpop.f32.mrb[1].mxu0 }
 0x197   : > { %v6364_v51 = vunpack.i.h.bf16 %v6362_v0  ;;  %v6363_v12 = vunpack.i.l.bf16 %v6362_v0 }
 0x198   : > { %v2842_v33 = vsel %vm2836_vm9, %v6368_v6, %v6369_v13  ;;  %5566 = vmatprep.subr.bf16.mxu1 %v5565_v17  ;;  %v2917_v54 = vsel %vm2836_vm9, %v6369_v13, %v6368_v6 }
 0x199   : > { %v2841_v34 = vsel %vm2836_vm9, %v6363_v12, %v6364_v51  ;;  %5568 = vmatpush1.bf16.msra.mxu1 %v5567_v38  ;;  %v6377_v1 = vpop.permute.xlu1 %6376  ;;  %v2916_v19 = vsel %vm2836_vm9, %v6364_v51, %v6363_v12  ;;  %v7978_v52 = vpop.f32.mrb[2].mxu0 }
 0x19a   : > { %v5603_v53 = vpack.c.bf16 %v2842_v33, %v2841_v34  ;;  %v6379_v42 = vunpack.i.h.bf16 %v6377_v1  ;;  %v6378_v49 = vunpack.i.l.bf16 %v6377_v1  ;;  %v6372_v37 = vpop.permute.xlu0 %6371  ;;  %v5601_v3 = vpack.c.bf16 %v2917_v54, %v2916_v19  ;;  %v7980_v26 = vpop.f32.mrb[3].mxu0 }
 0x19b   : > { %v6374_v39 = vunpack.i.h.bf16 %v6372_v37  ;;  %v6373_v61 = vunpack.i.l.bf16 %v6372_v37 }
 0x19c   : > { %v2529_v62 = vsel %vm2521_vm8, %v6378_v49, %v6379_v42  ;;  %5602 = vmatprep.subr.bf16.mxu0 %v5601_v3  ;;  %v2604_v18 = vsel %vm2521_vm8, %v6379_v42, %v6378_v49 }
 0x19d   : > { %v2528_v40 = vsel %vm2521_vm8, %v6373_v61, %v6374_v39  ;;  %5604 = vmatpush1.bf16.msra.mxu0 %v5603_v53  ;;  %v6387_v44 = vpop.permute.xlu1 %6386  ;;  %v2603_v50 = vsel %vm2521_vm8, %v6374_v39, %v6373_v61  ;;  %v7986_v21 = vpop.f32.mrb[4].mxu0 }
 0x19e   : > { %v5571_v20 = vpack.c.bf16 %v2529_v62, %v2528_v40  ;;  %v6389_v43 = vunpack.i.h.bf16 %v6387_v44  ;;  %v6388_v41 = vunpack.i.l.bf16 %v6387_v44  ;;  %v6382_v11 = vpop.permute.xlu0 %6381  ;;  %v5569_v7 = vpack.c.bf16 %v2604_v18, %v2603_v50  ;;  %v7988_v5 = vpop.f32.mrb[5].mxu0 }
 0x19f   : > { %v6384_v28 = vunpack.i.h.bf16 %v6382_v11  ;;  %v6383_v57 = vunpack.i.l.bf16 %v6382_v11 }
 0x1a0   : > { %v2844_v22 = vsel %vm2836_vm9, %v6388_v41, %v6389_v43  ;;  %5570 = vmatprep.subr.bf16.mxu1 %v5569_v7  ;;  %v2919_v23 = vsel %vm2836_vm9, %v6389_v43, %v6388_v41 }
 0x1a1   : > { %v2843_v24 = vsel %vm2836_vm9, %v6383_v57, %v6384_v28  ;;  %5572 = vmatpush1.bf16.msra.mxu1 %v5571_v20  ;;  %v6397_v16 = vpop.permute.xlu1 %6396  ;;  %v2918_v35 = vsel %vm2836_vm9, %v6384_v28, %v6383_v57  ;;  %v7994_v45 = vpop.f32.mrb[6].mxu0 }
 0x1a2   : > { %v5607_v29 = vpack.c.bf16 %v2844_v22, %v2843_v24  ;;  %v6399_v46 = vunpack.i.h.bf16 %v6397_v16  ;;  %v6398_v32 = vunpack.i.l.bf16 %v6397_v16  ;;  %v6392_v31 = vpop.permute.xlu0 %6391  ;;  %v5605_v59 = vpack.c.bf16 %v2919_v23, %v2918_v35  ;;  %v7996_v4 = vpop.f32.mrb[7].mxu0 }
 0x1a3   : > { %v6394_v36 = vunpack.i.h.bf16 %v6392_v31  ;;  %v6393_v58 = vunpack.i.l.bf16 %v6392_v31 }
 0x1a4   : > { %v2531_v60 = vsel %vm2521_vm8, %v6398_v32, %v6399_v46  ;;  %5606 = vmatprep.subr.bf16.mxu0 %v5605_v59  ;;  %v2606_v25 = vsel %vm2521_vm8, %v6399_v46, %v6398_v32 }
 0x1a5   : > { %v2530_v27 = vsel %vm2521_vm8, %v6393_v58, %v6394_v36  ;;  %5608 = vmatpush1.bf16.msra.mxu0 %v5607_v29  ;;  %v6407_v15 = vpop.permute.xlu1 %6406  ;;  %v2605_v2 = vsel %vm2521_vm8, %v6394_v36, %v6393_v58 }
 0x1a6   : > { %v5575_v9 = vpack.c.bf16 %v2531_v60, %v2530_v27  ;;  %v6409_v63 = vunpack.i.h.bf16 %v6407_v15  ;;  %v6408_v47 = vunpack.i.l.bf16 %v6407_v15  ;;  %v6402_v56 = vpop.permute.xlu0 %6401  ;;  %v5573_v48 = vpack.c.bf16 %v2606_v25, %v2605_v2 }
 0x1a7   : > { %v6404_v10 = vunpack.i.h.bf16 %v6402_v56  ;;  %v6403_v8 = vunpack.i.l.bf16 %v6402_v56 }
 0x1a8   : > { %v2846_v14 = vsel %vm2836_vm9, %v6408_v47, %v6409_v63  ;;  %5574 = vmatprep.subr.bf16.mxu1 %v5573_v48  ;;  %v2921_v38 = vsel %vm2836_vm9, %v6409_v63, %v6408_v47 }
 0x1a9   : > { %v2845_v13 = vsel %vm2836_vm9, %v6403_v8, %v6404_v10  ;;  %5576 = vmatpush1.bf16.msra.mxu1 %v5575_v9  ;;  %v6417_v6 = vpop.permute.xlu1 %6416  ;;  %v2920_v0 = vsel %vm2836_vm9, %v6404_v10, %v6403_v8 }
 0x1aa   : > { %v5611_v17 = vpack.c.bf16 %v2846_v14, %v2845_v13  ;;  %v6419_v51 = vunpack.i.h.bf16 %v6417_v6  ;;  %v6418_v12 = vunpack.i.l.bf16 %v6417_v6  ;;  %v6412_v33 = vpop.permute.xlu0 %6411  ;;  %v5609_v54 = vpack.c.bf16 %v2921_v38, %v2920_v0 }
 0x1ab   : > { %v6414_v34 = vunpack.i.h.bf16 %v6412_v33  ;;  %v6413_v1 = vunpack.i.l.bf16 %v6412_v33 }
 0x1ac   : > { %v2533_v19 = vsel %vm2521_vm8, %v6418_v12, %v6419_v51  ;;  %5610 = vmatprep.subr.bf16.mxu0 %v5609_v54  ;;  %v2608_v53 = vsel %vm2521_vm8, %v6419_v51, %v6418_v12 }
 0x1ad   : > { %v2532_v42 = vsel %vm2521_vm8, %v6413_v1, %v6414_v34  ;;  %5612 = vmatpush1.bf16.msra.mxu0 %v5611_v17  ;;  %v6427_v49 = vpop.permute.xlu1 %6426  ;;  %v2607_v37 = vsel %vm2521_vm8, %v6414_v34, %v6413_v1 }
 0x1ae   : > { %v5579_v3 = vpack.c.bf16 %v2533_v19, %v2532_v42  ;;  %v6429_v39 = vunpack.i.h.bf16 %v6427_v49  ;;  %v6428_v61 = vunpack.i.l.bf16 %v6427_v49  ;;  %v6422_v62 = vpop.permute.xlu0 %6421  ;;  %v5577_v18 = vpack.c.bf16 %v2608_v53, %v2607_v37 }
 0x1af   : > { %v6424_v40 = vunpack.i.h.bf16 %v6422_v62  ;;  %v6423_v44 = vunpack.i.l.bf16 %v6422_v62 }
 0x1b0   : > { %v2848_v50 = vsel %vm2836_vm9, %v6428_v61, %v6429_v39  ;;  %5578 = vmatprep.subr.bf16.mxu1 %v5577_v18  ;;  %v2923_v20 = vsel %vm2836_vm9, %v6429_v39, %v6428_v61 }
 0x1b1   : > { %v2847_v43 = vsel %vm2836_vm9, %v6423_v44, %v6424_v40  ;;  %5580 = vmatpush1.bf16.msra.mxu1 %v5579_v3  ;;  %v6437_v41 = vpop.permute.xlu1 %6436  ;;  %v2922_v11 = vsel %vm2836_vm9, %v6424_v40, %v6423_v44 }
 0x1b2   : > { %v5615_v7 = vpack.c.bf16 %v2848_v50, %v2847_v43  ;;  %v6439_v28 = vunpack.i.h.bf16 %v6437_v41  ;;  %v6438_v57 = vunpack.i.l.bf16 %v6437_v41  ;;  %v6432_v22 = vpop.permute.xlu0 %6431  ;;  %v5613_v23 = vpack.c.bf16 %v2923_v20, %v2922_v11 }
 0x1b3   : > { %v6434_v24 = vunpack.i.h.bf16 %v6432_v22  ;;  %v6433_v16 = vunpack.i.l.bf16 %v6432_v22 }
 0x1b4   : > { %v2535_v35 = vsel %vm2521_vm8, %v6438_v57, %v6439_v28  ;;  %5614 = vmatprep.subr.bf16.mxu0 %v5613_v23  ;;  %v2610_v29 = vsel %vm2521_vm8, %v6439_v28, %v6438_v57 }
 0x1b5   : > { %v2534_v46 = vsel %vm2521_vm8, %v6433_v16, %v6434_v24  ;;  %5616 = vmatpush1.bf16.msra.mxu0 %v5615_v7  ;;  %v6447_v32 = vpop.permute.xlu1 %6446  ;;  %v2609_v31 = vsel %vm2521_vm8, %v6434_v24, %v6433_v16 }
 0x1b6   : > { %v5583_v59 = vpack.c.bf16 %v2535_v35, %v2534_v46  ;;  %v6449_v36 = vunpack.i.h.bf16 %v6447_v32  ;;  %v6448_v58 = vunpack.i.l.bf16 %v6447_v32  ;;  %v6442_v60 = vpop.permute.xlu0 %6441  ;;  %v5581_v25 = vpack.c.bf16 %v2610_v29, %v2609_v31 }
 0x1b7   : > { %v6444_v27 = vunpack.i.h.bf16 %v6442_v60  ;;  %v6443_v15 = vunpack.i.l.bf16 %v6442_v60 }
 0x1b8   : > { %v2850_v2 = vsel %vm2836_vm9, %v6448_v58, %v6449_v36  ;;  %5582 = vmatprep.subr.bf16.mxu1 %v5581_v25  ;;  %v2925_v9 = vsel %vm2836_vm9, %v6449_v36, %v6448_v58  ;;  %v722_v36 = vlaneseq }
 0x1b9   : > { %v2849_v63 = vsel %vm2836_vm9, %v6443_v15, %v6444_v27  ;;  %5584 = vmatpush1.bf16.msra.mxu1 %v5583_v59  ;;  %v6457_v47 = vpop.permute.xlu1 %6456  ;;  %v2924_v56 = vsel %vm2836_vm9, %v6444_v27, %v6443_v15 }
 0x1ba   : > { %v5619_v48 = vpack.c.bf16 %v2850_v2, %v2849_v63  ;;  %v6459_v10 = vunpack.i.h.bf16 %v6457_v47  ;;  %v6458_v8 = vunpack.i.l.bf16 %v6457_v47  ;;  %v6452_v14 = vpop.permute.xlu0 %6451  ;;  %v5617_v38 = vpack.c.bf16 %v2925_v9, %v2924_v56  ;;  %v5202_v47 = vld [vmem:[%s8677_s1 + $0x1c0] sm:$0xff]  ;;  %v5205_v56 = vld [vmem:[%s8677_s1 + $0x1d8] sm:$0xff] }
 0x1bb   : > { %v6454_v13 = vunpack.i.h.bf16 %v6452_v14  ;;  %v6453_v6 = vunpack.i.l.bf16 %v6452_v14 }
 0x1bc   : > { %v2537_v0 = vsel %vm2521_vm8, %v6458_v8, %v6459_v10  ;;  %5618 = vmatprep.subr.bf16.mxu0 %v5617_v38  ;;  %v2612_v17 = vsel %vm2521_vm8, %v6459_v10, %v6458_v8 }
 0x1bd   : > { %v2536_v51 = vsel %vm2521_vm8, %v6453_v6, %v6454_v13  ;;  %5620 = vmatpush1.bf16.msra.mxu0 %v5619_v48  ;;  %v6467_v12 = vpop.permute.xlu1 %6466  ;;  %v2611_v33 = vsel %vm2521_vm8, %v6454_v13, %v6453_v6  ;;  %v723_v48 = vshrl.u32 %v722_v36, 7  ;;  %v5204_v13 = vld [vmem:[%s8677_s1 + $0x1d0] sm:$0xff]  ;;  %v5217_v6 = vld [vmem:[%s8677_s1 + $0x200] sm:$0xff] }
 0x1be   : > { %v5587_v54 = vpack.c.bf16 %v2537_v0, %v2536_v51  ;;  %v6469_v34 = vunpack.i.h.bf16 %v6467_v12  ;;  %v6468_v1 = vunpack.i.l.bf16 %v6467_v12  ;;  %v6462_v19 = vpop.permute.xlu0 %6461  ;;  %v5585_v53 = vpack.c.bf16 %v2612_v17, %v2611_v33  ;;  %v5207_v0 = vld [vmem:[%s8677_s1 + $0x1e8] sm:$0xff]  ;;  %v5220_v17 = vld [vmem:[%s8677_s1 + $0x218] sm:$0xff]  ;;  %v720_v12 = vld [vmem:[%s8683_s7] sm:$0x3] }
 0x1bf   : > { %v6464_v42 = vunpack.i.h.bf16 %v6462_v19  ;;  %v6463_v49 = vunpack.i.l.bf16 %v6462_v19  ;;  %v8064_v51 = vsub.s32 0, %v723_v48  ;;  %v8070_v33 = vsub.s32 1, %v723_v48  ;;  %v5209_v19 = vld [vmem:[%s8677_s1 + $0x1f8] sm:$0x3f] }
 0x1c0   : > { %v2852_v37 = vsel %vm2836_vm9, %v6468_v1, %v6469_v34  ;;  %5586 = vmatprep.subr.bf16.mxu1 %v5585_v53  ;;  %v2927_v3 = vsel %vm2836_vm9, %v6469_v34, %v6468_v1  ;;  %v5219_v34 = vld [vmem:[%s8677_s1 + $0x210] sm:$0xff]  ;;  %v5127_v1 = vld [vmem:[%s8683_s7 + $0x2] sm:$0x3]  ;;  %v5222_v53 = vld [vmem:[%s8677_s1 + $0x228] sm:$0xff] }
 0x1c1   : > { %v2851_v39 = vsel %vm2836_vm9, %v6463_v49, %v6464_v42  ;;  %5588 = vmatpush1.bf16.msra.mxu1 %v5587_v54  ;;  %v6477_v61 = vpop.permute.xlu1 %6476  ;;  %v2926_v62 = vsel %vm2836_vm9, %v6464_v42, %v6463_v49  ;;  %v5206_v54 = vld [vmem:[%s8677_s1 + $0x1e0] sm:$0xff]  ;;  %v8090_v42 = vrot.slane %v720_v12, %v8064_v51  ;;  %v8093_v49 = vrot.slane %v720_v12, %v8070_v33 }
 0x1c2   : > { %v5623_v18 = vpack.c.bf16 %v2852_v37, %v2851_v39  ;;  %v6479_v40 = vunpack.i.h.bf16 %v6477_v61  ;;  %v6478_v44 = vunpack.i.l.bf16 %v6477_v61  ;;  %v6472_v50 = vpop.permute.xlu0 %6471  ;;  %v5621_v20 = vpack.c.bf16 %v2927_v3, %v2926_v62  ;;  %v5208_v3 = vld [vmem:[%s8677_s1 + $0x1f0] sm:$0x3f]  ;;  %v5221_v39 = vld [vmem:[%s8677_s1 + $0x220] sm:$0xff]  ;;  %v5224_v62 = vld [vmem:[%s8677_s1 + $0x238] sm:$0x3f] }
 0x1c3   : > { %v6474_v43 = vunpack.i.h.bf16 %v6472_v50  ;;  %v6473_v41 = vunpack.i.l.bf16 %v6472_v50  ;;  %v8096_v37 = vrot.slane %v5127_v1, %v8064_v51  ;;  %v8107_v61 = vrot.slane %v5127_v1, %v8070_v33  ;;  %v5157_v1 = vld [vmem:[%s8683_s7 + $0x6] sm:$0x3] }
 0x1c4   : > { %v2539_v11 = vsel %vm2521_vm8, %v6478_v44, %v6479_v40  ;;  %5622 = vmatprep.subr.bf16.mxu0 %v5621_v20  ;;  %v2614_v7 = vsel %vm2521_vm8, %v6479_v40, %v6478_v44  ;;  %v733_v40 = vmul.f32 %v8093_v49, %v7972_v30  ;;  %v5142_v30 = vld [vmem:[%s8683_s7 + $0x4] sm:$0x3]  ;;  %v737_v36 = vmul.f32 %v8093_v49, %v7988_v5 }
 0x1c5   : > { %v2538_v28 = vsel %vm2521_vm8, %v6473_v41, %v6474_v43  ;;  %5624 = vmatpush1.bf16.msra.mxu0 %v5623_v18  ;;  %v6487_v57 = vpop.permute.xlu1 %6486  ;;  %v2613_v22 = vsel %vm2521_vm8, %v6474_v43, %v6473_v41  ;;  %v732_v18 = vmul.f32 %v8090_v42, %v7970_v55  ;;  %v5223_v43 = vld [vmem:[%s8677_s1 + $0x230] sm:$0x3f]  ;;  %v734_v55 = vmul.f32 %v8090_v42, %v7978_v52 }
 0x1c6   : > { %v5591_v23 = vpack.c.bf16 %v2539_v11, %v2538_v28  ;;  %v6489_v24 = vunpack.i.h.bf16 %v6487_v57  ;;  %v6488_v16 = vunpack.i.l.bf16 %v6487_v57  ;;  %v6482_v35 = vpop.permute.xlu0 %6481  ;;  %v5589_v29 = vpack.c.bf16 %v2614_v7, %v2613_v22 }
 0x1c7   : > { %v6484_v46 = vunpack.i.h.bf16 %v6482_v35  ;;  %v6483_v32 = vunpack.i.l.bf16 %v6482_v35  ;;  %v735_v7 = vmul.f32 %v8093_v49, %v7980_v26  ;;  %v8135_v35 = vrot.slane %v5142_v30, %v8070_v33 }
 0x1c8   : > { %v2854_v31 = vsel %vm2836_vm9, %v6488_v16, %v6489_v24  ;;  %5590 = vmatprep.subr.bf16.mxu1 %v5589_v29  ;;  %v2929_v59 = vsel %vm2836_vm9, %v6489_v24, %v6488_v16  ;;  %v8132_v16 = vrot.slane %v5142_v30, %v8064_v51  ;;  %v738_v5 = vmul.f32 %v8090_v42, %v7994_v45 }
 0x1c9   : > { %v2853_v58 = vsel %vm2836_vm9, %v6483_v32, %v6484_v46  ;;  %5592 = vmatpush1.bf16.msra.mxu1 %v5591_v23  ;;  %v2520_v60 = vpop.permute.xlu1 %2519  ;;  %v2928_v25 = vsel %vm2836_vm9, %v6484_v46, %v6483_v32 }
 0x1ca   : > { %v5627_v27 = vpack.c.bf16 %v2854_v31, %v2853_v58  ;;  %v2518_v15 = vpop.permute.xlu0 %2517  ;;  %v5625_v2 = vpack.c.bf16 %v2929_v59, %v2928_v25  ;;  %v736_v31 = vmul.f32 %v8090_v42, %v7986_v21 }
 0x1cb   : > { %v2540_v9 = vsel %vm2521_vm8, %v2518_v15, %v2520_v60  ;;  %v2615_v63 = vsel %vm2521_vm8, %v2520_v60, %v2518_v15 }
 0x1cc   : > { %5210 = vmatprep.subr.msk.mxu1 %vm625_vm3, %v2615_v63  ;;  %5626 = vmatprep.subr.bf16.mxu0 %v5625_v2 }
 0x1cd   : > { %5211 = vmatpush1.msk.msra.mxu1 %vm625_vm3, %v2540_v9  ;;  %5628 = vmatpush1.bf16.msra.mxu0 %v5627_v27  ;;  %v2835_v10 = vpop.permute.xlu1 %2834 }
 0x1ce   : > { %v2833_v8 = vpop.permute.xlu0 %2832  ;;  %2707 = vmatmul.mubr.f32.vlgmr.msra.gmra.mrb[24].mxu1 %v5202_v47 }
 0x1cf   : > { %v2855_v14 = vsel %vm2836_vm9, %v2833_v8, %v2835_v10  ;;  %v2930_v38 = vsel %vm2836_vm9, %v2835_v10, %v2833_v8  ;;  %5213 = vmatprep.mubr.msk.f32.mxu1 %vm612_vm0, %v5205_v56 }
 0x1d0   : > { %5225 = vmatprep.subr.msk.mxu0 %vm625_vm3, %v2930_v38 }
 0x1d1   : > { %5226 = vmatpush1.msk.msra.mxu0 %vm625_vm3, %v2855_v14  ;;  %v739_v14 = vmul.f32 %v8093_v49, %v7996_v4  ;;  %v8159_v4 = vrot.slane %v5157_v1, %v8064_v51 }
 0x1d2   : > { %2713 = vmatmul.mubr.f32.gmra.mrb[26].mxu1 %v5204_v13  ;;  %3022 = vmatmul.mubr.f32.vlgmr.msra.gmra.mrb[32].mxu0 %v5217_v6 }
 0x1d3   : > { %5214 = vmatprep.mubr.msk.f32.mxu1 %vm612_vm0, %v5207_v0  ;;  %5228 = vmatprep.mubr.msk.f32.mxu0 %vm612_vm0, %v5220_v17 }
 0x1d6   : > { %2719 = vmatmul.mubr.f32.gmra.mrb[28].mxu1 %v5206_v54  ;;  %3028 = vmatmul.mubr.f32.gmra.mrb[34].mxu0 %v5219_v34 }
 0x1d7   : > { %5215 = vmatprep.mubr.msk.f32.mxu1 %vm612_vm0, %v5209_v19  ;;  %5229 = vmatprep.mubr.msk.f32.mxu0 %vm612_vm0, %v5222_v53 }
 0x1d9   : > { %v1011_v44 = vpop.f32.mrb[0].mxu1 }
 0x1da   : > { %2725 = vmatmul.mubr.f32.gmra.mrb[30].mxu1 %v5208_v3  ;;  %3034 = vmatmul.mubr.f32.gmra.mrb[36].mxu0 %v5221_v39  ;;  %v1047_v50 = vmul.f32 %v8096_v37, %v1011_v44  ;;  %v1013_v20 = vpop.f32.mrb[1].mxu1  ;;  %v8162_v39 = vrot.slane %v5157_v1, %v8070_v33 }
 0x1db   : > { %5230 = vmatprep.mubr.msk.f32.mxu0 %vm612_vm0, %v5224_v62  ;;  %v1048_v41 = vmul.f32 %v8107_v61, %v1013_v20  ;;  %vm5032_vm0 = vcmask 73728  }
 0x1dc   : > { %v1055_v11 = vadd.f32 %v1047_v50, %v732_v18 }
 0x1dd   : > { %v1056_v28 = vadd.f32 %v1048_v41, %v733_v40  ;;  %v1017_v57 = vpop.f32.mrb[2].mxu1 }
 0x1de   : > { %3040 = vmatmul.mubr.f32.gmra.mrb[38].mxu0 %v5223_v43  ;;  %v1049_v22 = vmul.f32 %v8096_v37, %v1017_v57  ;;  %v1019_v23 = vpop.f32.mrb[3].mxu1 }
 0x1df   : > { %v1050_v24 = vmul.f32 %v8107_v61, %v1019_v23 }
 0x1e0   : > { %v1057_v52 = vadd.f32 %v1049_v22, %v734_v55 }
 0x1e1   : > { %v1058_v29 = vadd.f32 %v1050_v24, %v735_v7 }
 0x1e2   : > { %v1326_v46 = vpop.f32.mrb[8].mxu0 }
 0x1e3   : > { %v1362_v32 = vmul.f32 %v8132_v16, %v1326_v46  ;;  %v1328_v26 = vpop.f32.mrb[9].mxu0 }
 0x1e4   : > { %v1363_v59 = vmul.f32 %v8135_v35, %v1328_v26 }
 0x1e5   : > { %v1023_v58 = vpop.f32.mrb[4].mxu1  ;;  %v1370_v60 = vadd.f32 %v1362_v32, %v1055_v11 }
 0x1e6   : > { %v1051_v25 = vmul.f32 %v8096_v37, %v1023_v58  ;;  %v1025_v27 = vpop.f32.mrb[5].mxu1  ;;  %v1371_v15 = vadd.f32 %v1363_v59, %v1056_v28  ;;  %v1332_v2 = vpop.f32.mrb[10].mxu0 }
 0x1e7   : > { %v1052_v9 = vmul.f32 %v8107_v61, %v1025_v27  ;;  %v1364_v63 = vmul.f32 %v8132_v16, %v1332_v2  ;;  %v1334_v47 = vpop.f32.mrb[11].mxu0 }
 0x1e8   : > { %v1059_v56 = vadd.f32 %v1051_v25, %v736_v31  ;;  %v1365_v21 = vmul.f32 %v8135_v35, %v1334_v47 }
 0x1e9   : > { %v1060_v48 = vadd.f32 %v1052_v9, %v737_v36  ;;  %v1372_v10 = vadd.f32 %v1364_v63, %v1057_v52 }
 0x1ea   : > { %v1373_v8 = vadd.f32 %v1365_v21, %v1058_v29 }
 0x1f1   : > { %v1029_v38 = vpop.f32.mrb[6].mxu1 }
 0x1f2   : > { %v1053_v13 = vmul.f32 %v8096_v37, %v1029_v38  ;;  %v1031_v6 = vpop.f32.mrb[7].mxu1 }
 0x1f3   : > { %v1054_v0 = vmul.f32 %v8107_v61, %v1031_v6 }
 0x1f4   : > { %v1061_v17 = vadd.f32 %v1053_v13, %v738_v5 }
 0x1f5   : > { %v1062_v12 = vadd.f32 %v1054_v0, %v739_v14 }
 0x202   : > { %v1338_v54 = vpop.f32.mrb[12].mxu0 }
 0x203   : > { %v1366_v34 = vmul.f32 %v8132_v16, %v1338_v54  ;;  %v1340_v19 = vpop.f32.mrb[13].mxu0 }
 0x204   : > { %v1367_v45 = vmul.f32 %v8135_v35, %v1340_v19 }
 0x205   : > { %v1374_v53 = vadd.f32 %v1366_v34, %v1059_v56 }
 0x206   : > { %v1375_v3 = vadd.f32 %v1367_v45, %v1060_v48 }
 0x207   : > { %v1344_v62 = vpop.f32.mrb[14].mxu0 }
 0x208   : > { %v1368_v18 = vmul.f32 %v8132_v16, %v1344_v62  ;;  %v1346_v40 = vpop.f32.mrb[15].mxu0 }
 0x209   : > { %v1641_v44 = vpop.f32.mrb[8].mxu1  ;;  %v1369_v50 = vmul.f32 %v8135_v35, %v1346_v40 }
 0x20a   : > { %v1677_v20 = vmul.f32 %v8159_v4, %v1641_v44  ;;  %v1643_v43 = vpop.f32.mrb[9].mxu1  ;;  %v1376_v41 = vadd.f32 %v1368_v18, %v1061_v17 }
 0x20b   : > { %v1678_v55 = vmul.f32 %v8162_v39, %v1643_v43  ;;  %v1377_v11 = vadd.f32 %v1369_v50, %v1062_v12  ;;  %v5186_v12 = vld [vmem:[%s8683_s7 + $0xa] sm:$0x3] }
 0x20c   : > { %v1685_v30 = vadd.f32 %v1677_v20, %v1370_v60  ;;  %v1784_v7 = vpop.f32.mrb[16].mxu0  ;;  %v8178_v54 = vrot.slane %v5186_v12, %v8064_v51  ;;  %v8181_v34 = vrot.slane %v5186_v12, %v8070_v33 }
 0x20d   : > { %v1686_v28 = vadd.f32 %v1678_v55, %v1371_v15  ;;  %v1786_v57 = vpop.f32.mrb[17].mxu0 }
 0x20e   : > { %v1807_v22 = vadd.f32 %v1784_v7, %v1685_v30  ;;  %v1647_v23 = vpop.f32.mrb[10].mxu1 }
 0x20f   : > { %v1808_v24 = vadd.f32 %v1786_v57, %v1686_v28  ;;  %v1679_v52 = vmul.f32 %v8159_v4, %v1647_v23  ;;  %v1649_v29 = vpop.f32.mrb[11].mxu1 }
 0x210   : > { %v1680_v46 = vmul.f32 %v8162_v39, %v1649_v29 }
 0x211   : > { %v1687_v32 = vadd.f32 %v1679_v52, %v1372_v10  ;;  %v1790_v26 = vpop.f32.mrb[18].mxu0 }
 0x212   : > { %v1653_v31 = vpop.f32.mrb[12].mxu1  ;;  %v1688_v59 = vadd.f32 %v1680_v46, %v1373_v8  ;;  %v1792_v36 = vpop.f32.mrb[19].mxu0 }
 0x213   : > { %v1681_v58 = vmul.f32 %v8159_v4, %v1653_v31  ;;  %v1809_v25 = vadd.f32 %v1790_v26, %v1687_v32  ;;  %v1655_v60 = vpop.f32.mrb[13].mxu1 }
 0x214   : > { %v1682_v27 = vmul.f32 %v8162_v39, %v1655_v60  ;;  %v1810_v15 = vadd.f32 %v1792_v36, %v1688_v59 }
 0x215   : > { %v1689_v2 = vadd.f32 %v1681_v58, %v1374_v53 }
 0x216   : > { %v1659_v9 = vpop.f32.mrb[14].mxu1  ;;  %v1690_v63 = vadd.f32 %v1682_v27, %v1375_v3  ;;  %v5201_v3 = vld [vmem:[%s8683_s7 + $0xc] sm:$0x3] }
 0x217   : > { %v1683_v47 = vmul.f32 %v8159_v4, %v1659_v9  ;;  %v1661_v56 = vpop.f32.mrb[15].mxu1  ;;  %v8190_v20 = vrot.slane %v5201_v3, %v8064_v51 }
 0x218   : > { %v1684_v21 = vmul.f32 %v8162_v39, %v1661_v56 }
 0x219   : > { %v1796_v48 = vpop.f32.mrb[20].mxu0  ;;  %v1691_v10 = vadd.f32 %v1683_v47, %v1376_v41  ;;  %v8194_v41 = vrot.slane %v5201_v3, %v8070_v33 }
 0x21a   : > { %v1811_v5 = vadd.f32 %v1796_v48, %v1689_v2  ;;  %v1798_v8 = vpop.f32.mrb[21].mxu0  ;;  %v1692_v14 = vadd.f32 %v1684_v21, %v1377_v11 }
 0x21b   : > { %v1812_v38 = vadd.f32 %v1798_v8, %v1690_v63 }
 0x21d   : > { %v1802_v13 = vpop.f32.mrb[22].mxu0 }
 0x21e   : > { %v1813_v6 = vadd.f32 %v1802_v13, %v1691_v10  ;;  %v1804_v0 = vpop.f32.mrb[23].mxu0 }
 0x21f   : > { %v1814_v17 = vadd.f32 %v1804_v0, %v1692_v14 }
 0x251   : > { %v2078_v1 = vpop.f32.mrb[16].mxu1 }
 0x252   : > { %v2114_v19 = vmul.f32 %v8178_v54, %v2078_v1  ;;  %v2080_v45 = vpop.f32.mrb[17].mxu1 }
 0x253   : > { %v2115_v53 = vmul.f32 %v8181_v34, %v2080_v45  ;;  %v5231_v45 = vld [vmem:[%s8683_s7 + $0x10] sm:$0x3] }
 0x254   : > { %v2122_v62 = vadd.f32 %v2114_v19, %v1807_v22 }
 0x255   : > { %v2123_v18 = vadd.f32 %v2115_v53, %v1808_v24  ;;  %v2084_v40 = vpop.f32.mrb[18].mxu1 }
 0x256   : > { %v2116_v44 = vmul.f32 %v8178_v54, %v2084_v40  ;;  %v2086_v50 = vpop.f32.mrb[19].mxu1 }
 0x257   : > { %v2117_v43 = vmul.f32 %v8181_v34, %v2086_v50 }
 0x258   : > { %v2124_v55 = vadd.f32 %v2116_v44, %v1809_v25  ;;  %v8226_v44 = vrot.slane %v5231_v45, %v8070_v33 }
 0x259   : > { %v2125_v11 = vadd.f32 %v2117_v43, %v1810_v15  ;;  %v2090_v30 = vpop.f32.mrb[20].mxu1  ;;  %v2393_v7 = vpop.f32.mrb[24].mxu0 }
 0x25a   : > { %v2118_v28 = vmul.f32 %v8178_v54, %v2090_v30  ;;  %v2429_v57 = vmul.f32 %v8190_v20, %v2393_v7  ;;  %v2092_v22 = vpop.f32.mrb[21].mxu1  ;;  %v2395_v23 = vpop.f32.mrb[25].mxu0 }
 0x25b   : > { %v2119_v24 = vmul.f32 %v8181_v34, %v2092_v22  ;;  %v2430_v52 = vmul.f32 %v8194_v41, %v2395_v23  ;;  %v3082_v23 = vpop.permute.xlu0 %3081 }
 0x25c   : > { %v2126_v29 = vadd.f32 %v2118_v28, %v1811_v5  ;;  %v2437_v46 = vadd.f32 %v2429_v57, %v2122_v62 }
 0x25d   : > { %v2127_v32 = vadd.f32 %v2119_v24, %v1812_v38  ;;  %v2438_v26 = vadd.f32 %v2430_v52, %v2123_v18  ;;  %v2096_v31 = vpop.f32.mrb[22].mxu1  ;;  %v2399_v59 = vpop.f32.mrb[26].mxu0  ;;  %v8222_v18 = vrot.slane %v5231_v45, %v8064_v51 }
 0x25e   : > { %v2120_v36 = vmul.f32 %v8178_v54, %v2096_v31  ;;  %v2431_v58 = vmul.f32 %v8190_v20, %v2399_v59  ;;  %v2098_v25 = vpop.f32.mrb[23].mxu1  ;;  %v2401_v60 = vpop.f32.mrb[27].mxu0 }
 0x25f   : > { %v2121_v27 = vmul.f32 %v8181_v34, %v2098_v25  ;;  %v2432_v15 = vmul.f32 %v8194_v41, %v2401_v60  ;;  %v3087_v60 = vpop.permute.xlu1 %3086 }
 0x260   : > { %v2128_v2 = vadd.f32 %v2120_v36, %v1813_v6  ;;  %v2439_v9 = vadd.f32 %v2431_v58, %v2124_v55  ;;  %v5216_v6 = vld [vmem:[%s8683_s7 + $0xe] sm:$0x3] }
 0x261   : > { %v2129_v63 = vadd.f32 %v2121_v27, %v1814_v17  ;;  %v2440_v47 = vadd.f32 %v2432_v15, %v2125_v11  ;;  %v2405_v56 = vpop.f32.mrb[28].mxu0  ;;  %v8212_v17 = vrot.slane %v5216_v6, %v8064_v51  ;;  %v8215_v19 = vrot.slane %v5216_v6, %v8070_v33 }
 0x262   : > { %v2433_v21 = vmul.f32 %v8190_v20, %v2405_v56  ;;  %v2407_v48 = vpop.f32.mrb[29].mxu0 }
 0x263   : > { %v2434_v10 = vmul.f32 %v8194_v41, %v2407_v48 }
 0x264   : > { %v2441_v5 = vadd.f32 %v2433_v21, %v2126_v29 }
 0x265   : > { %v2442_v8 = vadd.f32 %v2434_v10, %v2127_v32  ;;  %v2411_v14 = vpop.f32.mrb[30].mxu0 }
 0x266   : > { %v2435_v38 = vmul.f32 %v8190_v20, %v2411_v14  ;;  %v2413_v13 = vpop.f32.mrb[31].mxu0 }
 0x267   : > { %v2436_v0 = vmul.f32 %v8194_v41, %v2413_v13 }
 0x268   : > { %v2443_v12 = vadd.f32 %v2435_v38, %v2128_v2 }
 0x269   : > { %v2444_v1 = vadd.f32 %v2436_v0, %v2129_v63 }
 0x2a1   : > { %v2708_v53 = vpop.f32.mrb[24].mxu1 }
 0x2a2   : > { %v2744_v3 = vmul.f32 %v8212_v17, %v2708_v53  ;;  %v2710_v62 = vpop.f32.mrb[25].mxu1 }
 0x2a3   : > { %v2745_v40 = vmul.f32 %v8215_v19, %v2710_v62 }
 0x2a4   : > { %v2752_v50 = vadd.f32 %v2744_v3, %v2437_v46 }
 0x2a5   : > { %v2753_v43 = vadd.f32 %v2745_v40, %v2438_v26  ;;  %v2714_v55 = vpop.f32.mrb[26].mxu1  ;;  %v3023_v11 = vpop.f32.mrb[32].mxu0 }
 0x2a6   : > { %v2746_v30 = vmul.f32 %v8212_v17, %v2714_v55  ;;  %v3059_v7 = vmul.f32 %v8222_v18, %v3023_v11  ;;  %v2716_v28 = vpop.f32.mrb[27].mxu1  ;;  %v3025_v57 = vpop.f32.mrb[33].mxu0 }
 0x2a7   : > { %v2747_v22 = vmul.f32 %v8215_v19, %v2716_v28  ;;  %v3060_v51 = vmul.f32 %v8226_v44, %v3025_v57 }
 0x2a8   : > { %v2754_v24 = vadd.f32 %v2746_v30, %v2439_v9  ;;  %v3067_v52 = vadd.f32 %v3059_v7, %v2752_v50 }
 0x2a9   : > { %v2755_v29 = vadd.f32 %v2747_v22, %v2440_v47  ;;  %v3068_v33 = vadd.f32 %v3060_v51, %v2753_v43  ;;  %v2720_v32 = vpop.f32.mrb[28].mxu1  ;;  %v3029_v46 = vpop.f32.mrb[34].mxu0 }
 0x2aa   : > { %v3099_v26 = vadd.f32 %v3082_v23, %v3067_v52  ;;  %v2748_v31 = vmul.f32 %v8212_v17, %v2720_v32  ;;  %v3061_v59 = vmul.f32 %v8222_v18, %v3029_v46  ;;  %v2722_v36 = vpop.f32.mrb[29].mxu1  ;;  %v3031_v58 = vpop.f32.mrb[35].mxu0 }
 0x2ab   : > { %v3100_v25 = vadd.f32 %v3082_v23, %v3068_v33  ;;  %v2749_v27 = vmul.f32 %v8215_v19, %v2722_v36  ;;  %v3062_v15 = vmul.f32 %v8226_v44, %v3031_v58  ;;  %v3092_v43 = vpop.permute.xlu1 %3091 }
 0x2ac   : > { %v8236_v2 = vmax.f32 %v3099_v26, 0.0  ;;  %v2756_v9 = vadd.f32 %v2748_v31, %v2441_v5  ;;  %v3069_v63 = vadd.f32 %v3061_v59, %v2754_v24 }
 0x2ad   : > { %v8238_v47 = vmax.f32 %v3100_v25, 0.0  ;;  %v2757_v56 = vadd.f32 %v2749_v27, %v2442_v8  ;;  %v3070_v21 = vadd.f32 %v3062_v15, %v2755_v29  ;;  %v2726_v48 = vpop.f32.mrb[30].mxu1  ;;  %v3035_v10 = vpop.f32.mrb[36].mxu0 }
 0x2ae   : > { %v3101_v14 = vadd.f32 %v3087_v60, %v3069_v63  ;;  %v2750_v38 = vmul.f32 %v8212_v17, %v2726_v48  ;;  %v3063_v13 = vmul.f32 %v8222_v18, %v3035_v10  ;;  %v2728_v0 = vpop.f32.mrb[31].mxu1  ;;  %v3037_v6 = vpop.f32.mrb[37].mxu0 }
 0x2af   : > { %v3102_v45 = vadd.f32 %v3087_v60, %v3070_v21  ;;  %v2751_v53 = vmul.f32 %v8215_v19, %v2728_v0  ;;  %v3064_v3 = vmul.f32 %v8226_v44, %v3037_v6  ;;  %v8246_v5 = vpack.i.bf16 %v8238_v47, %v8236_v2  ;;  %v4165_v21 = vld [vmem:[%s8680_s4] sm:$0x3f] }
 0x2b0   : > { %v8248_v8 = vmax.f32 %v3101_v14, 0.0  ;;  %v2758_v62 = vadd.f32 %v2750_v38, %v2443_v12  ;;  %v3071_v40 = vadd.f32 %v3063_v13, %v2756_v9 }
 0x2b1   : > { %v8250_v50 = vmax.f32 %v3102_v45, 0.0  ;;  %v2759_v55 = vadd.f32 %v2751_v53, %v2444_v1  ;;  %v3072_v11 = vadd.f32 %v3064_v3, %v2757_v56  ;;  %v3041_v30 = vpop.f32.mrb[38].mxu0  ;;  %v3097_v1 = vpop.permute.xlu0 %3096  ;;  %v6763_v56 = vmov 0.0  }
 0x2b2   : > { %v3103_v7 = vadd.f32 %v3092_v43, %v3071_v40  ;;  %v3065_v28 = vmul.f32 %v8222_v18, %v3041_v30  ;;  %v3043_v57 = vpop.f32.mrb[39].mxu0  ;;  %v6492_v22 = vpack.i.bf16 %v8248_v8, %v8236_v2  ;;  %v5671_v25 = vpack.c.bf16 %v8248_v8, %v8236_v2  ;;  %3232 = vmatprep.mubr.f32.mxu1 %v6763_v56 }
 0x2b3   : > { %v3104_v51 = vadd.f32 %v3092_v43, %v3072_v11  ;;  %v3066_v23 = vmul.f32 %v8226_v44, %v3043_v57  ;;  %v6507_v12 = vpack.i.bf16 %v8250_v50, %v8238_v47  ;;  %v6567_v46 = vpack.i.bf16 %v8250_v50, %v8248_v8  ;;  %3794 = vmatprep.mubr.f32.mxu0 %v6763_v56 }
 0x2b4   : > { %v8258_v24 = vmax.f32 %v3103_v7, 0.0  ;;  %v3073_v52 = vadd.f32 %v3065_v28, %v2758_v62  ;;  %6493 = vrot.lane.b32.xlu0 %v6492_v22, %s8703_s30  ;;  %v5669_v58 = vpack.c.bf16 %v8250_v50, %v8238_v47 }
 0x2b5   : > { %v8261_v29 = vmax.f32 %v3104_v51, 0.0  ;;  %v3074_v33 = vadd.f32 %v3066_v23, %v2759_v55  ;;  %6508 = vrot.lane.b32.xlu1 %v6507_v12, %s8703_s30 }
 0x2b6   : > { %v3105_v32 = vadd.f32 %v3097_v1, %v3073_v52 }
 0x2b7   : > { %v3106_v26 = vadd.f32 %v3097_v1, %v3074_v33  ;;  %v6592_v31 = vpack.i.bf16 %v8261_v29, %v8258_v24 }
 0x2b8   : > { %v8268_v59 = vmax.f32 %v3105_v32, 0.0  ;;  %6498 = vrot.lane.b32.xlu0 %v6492_v22, %s8711_s29 }
 0x2b9   : > { %v8271_v36 = vmax.f32 %v3106_v26, 0.0  ;;  %6513 = vrot.lane.b32.xlu1 %v6507_v12, %s8711_s29 }
 0x2ba   : > { %v6522_v60 = vpack.i.bf16 %v8268_v59, %v8258_v24  ;;  %v5676_v63 = vpack.c.bf16 %v8268_v59, %v8258_v24 }
 0x2bb   : > { %v6537_v27 = vpack.i.bf16 %v8271_v36, %v8261_v29  ;;  %v6632_v15 = vpack.i.bf16 %v8271_v36, %v8268_v59  ;;  %v5673_v9 = vpack.c.bf16 %v8271_v36, %v8261_v29 }
 0x2bc   : > { %6503 = vrot.lane.b32.xlu0 %v6492_v22, %s8712_s27 }
 0x2bd   : > { %6518 = vrot.lane.b32.xlu1 %v6507_v12, %s8712_s27 }
 0x2c0   : > { %6523 = vrot.lane.b32.xlu0 %v6522_v60, %s8703_s30 }
 0x2c1   : > { %6538 = vrot.lane.b32.xlu1 %v6537_v27, %s8703_s30  ;;  %s8720_s30 = smov 17  }
 0x2c4   : > { %6528 = vrot.lane.b32.xlu0 %v6522_v60, %s8711_s29 }
 0x2c5   : > { %6543 = vrot.lane.b32.xlu1 %v6507_v12, %s8713_s11 }
 0x2c8   : > { %6533 = vrot.lane.b32.xlu0 %v6522_v60, %s8712_s27 }
 0x2c9   : > { %6558 = vrot.lane.b32.xlu1 %v6537_v27, %s8711_s29 }
 0x2cc   : > { %6548 = vrot.lane.b32.xlu0 %v6492_v22, %s8713_s11 }
 0x2cd   : > { %6563 = vrot.lane.b32.xlu1 %v8246_v5, %s8714_s25 }
 0x2d0   : > { %6553 = vrot.lane.b32.xlu0 %v6522_v60, %s8713_s11 }
 0x2d1   : > { %6573 = vrot.lane.b32.xlu1 %v6537_v27, %s8712_s27 }
 0x2d4   : > { %6568 = vrot.lane.b32.xlu0 %v6567_v46, %s8714_s25 }
 0x2d5   : > { %6578 = vrot.lane.b32.xlu1 %v8246_v5, %s8715_s21 }
 0x2d8   : > { %6583 = vrot.lane.b32.xlu0 %v6567_v46, %s8715_s21 }
 0x2d9   : > { %6588 = vrot.lane.b32.xlu1 %v6537_v27, %s8713_s11 }
 0x2dc   : > { %6608 = vrot.lane.b32.xlu0 %v6567_v46, %s8716_s12 }
 0x2dd   : > { %6593 = vrot.lane.b32.xlu1 %v6592_v31, %s8714_s25 }
 0x2e0   : > { %6618 = vrot.lane.b32.xlu0 %v6567_v46, %s8717_s28 }
 0x2e1   : > { %6598 = vrot.lane.b32.xlu1 %v6592_v31, %s8715_s21 }
 0x2e4   : > { %6633 = vrot.lane.b32.xlu0 %v6632_v15, %s8714_s25 }
 0x2e5   : > { %6603 = vrot.lane.b32.xlu1 %v8246_v5, %s8716_s12 }
 0x2e8   : > { %6638 = vrot.lane.b32.xlu0 %v6632_v15, %s8715_s21 }
 0x2e9   : > { %6613 = vrot.lane.b32.xlu1 %v8246_v5, %s8717_s28 }
 0x2ec   : > { %6643 = vrot.lane.b32.xlu0 %v6632_v15, %s8716_s12 }
 0x2ed   : > { %6623 = vrot.lane.b32.xlu1 %v6592_v31, %s8716_s12 }
 0x2f0   : > { %6648 = vrot.lane.b32.xlu0 %v6632_v15, %s8717_s28 }
 0x2f1   : > { %6628 = vrot.lane.b32.xlu1 %v6592_v31, %s8717_s28 }
 0x2f5   : > { %4168 = vperm.xlu1 %6491, %v4165_v21  }
 0x326   : > { %v6494_v48 = vpop.permute.xlu0 %6493 }
 0x327   : > { %v6496_v10 = vunpack.i.h.bf16 %v6494_v48  ;;  %v6495_v14 = vunpack.i.l.bf16 %v6494_v48  ;;  %v6509_v38 = vpop.permute.xlu1 %6508 }
 0x328   : > { %v6511_v13 = vunpack.i.h.bf16 %v6509_v38  ;;  %v6510_v0 = vunpack.i.l.bf16 %v6509_v38 }
 0x32a   : > { %v3155_v6 = vsel %vm528_vm1, %v6511_v13, %v6496_v10  ;;  %v3154_v45 = vsel %vm528_vm1, %v6510_v0, %v6495_v14  ;;  %v6499_v53 = vpop.permute.xlu0 %6498  ;;  %v3143_v3 = vsel %vm528_vm1, %v6495_v14, %v6510_v0  ;;  %v3144_v5 = vsel %vm528_vm1, %v6496_v10, %v6511_v13 }
 0x32b   : > { %v5631_v62 = vpack.c.bf16 %v3155_v6, %v3154_v45  ;;  %v6514_v40 = vpop.permute.xlu1 %6513  ;;  %v5629_v43 = vpack.c.bf16 %v3144_v5, %v3143_v3  ;;  %v6501_v30 = vunpack.i.h.bf16 %v6499_v53  ;;  %v6500_v7 = vunpack.i.l.bf16 %v6499_v53  ;;  %v3158_v5 = vld [vmem:[%s8679_s3] sm:$0x3f] }
 0x32c   : > { %v6516_v28 = vunpack.i.h.bf16 %v6514_v40  ;;  %v6515_v57 = vunpack.i.l.bf16 %v6514_v40 }
 0x32d   : > { %5630 = vmatprep.subr.bf16.mxu1 %v5629_v43 }
 0x32e   : > { %v6504_v55 = vpop.permute.xlu0 %6503  ;;  %5632 = vmatpush1.bf16.msra.mxu1 %v5631_v62  ;;  %v3263_v33 = vsel %vm843_vm2, %v6500_v7, %v6515_v57  ;;  %v3264_v32 = vsel %vm843_vm2, %v6501_v30, %v6516_v28  ;;  %v3275_v14 = vsel %vm843_vm2, %v6516_v28, %v6501_v30  ;;  %v3274_v38 = vsel %vm843_vm2, %v6515_v57, %v6500_v7 }
 0x32f   : > { %v6519_v11 = vpop.permute.xlu1 %6518  ;;  %v6506_v13 = vunpack.i.h.bf16 %v6504_v55  ;;  %v6505_v0 = vunpack.i.l.bf16 %v6504_v55  ;;  %v5639_v53 = vpack.c.bf16 %v3264_v32, %v3263_v33  ;;  %v5641_v62 = vpack.c.bf16 %v3275_v14, %v3274_v38 }
 0x330   : > { %v6521_v6 = vunpack.i.h.bf16 %v6519_v11  ;;  %v6520_v45 = vunpack.i.l.bf16 %v6519_v11 }
 0x332   : > { %v6524_v22 = vpop.permute.xlu0 %6523  ;;  %v3383_v7 = vsel %vm1158_vm4, %v6505_v0, %v6520_v45  ;;  %v3384_v28 = vsel %vm1158_vm4, %v6506_v13, %v6521_v6 }
 0x333   : > { %v6526_v51 = vunpack.i.h.bf16 %v6524_v22  ;;  %v6525_v23 = vunpack.i.l.bf16 %v6524_v22  ;;  %v6539_v12 = vpop.permute.xlu1 %6538 }
 0x334   : > { %v6541_v52 = vunpack.i.h.bf16 %v6539_v12  ;;  %v6540_v1 = vunpack.i.l.bf16 %v6539_v12 }
 0x336   : > { %v3146_v46 = vsel %vm528_vm1, %v6526_v51, %v6541_v52  ;;  %v3157_v26 = vsel %vm528_vm1, %v6541_v52, %v6526_v51  ;;  %v3145_v31 = vsel %vm528_vm1, %v6525_v23, %v6540_v1  ;;  %v3156_v60 = vsel %vm528_vm1, %v6540_v1, %v6525_v23  ;;  %v6529_v27 = vpop.permute.xlu0 %6528 }
 0x337   : > { %v5633_v21 = vpack.c.bf16 %v3146_v46, %v3145_v31  ;;  %v5636_v48 = vpack.c.bf16 %v3157_v26, %v3156_v60  ;;  %v8340_v10 = vpop.permute.xlu1 %6543  ;;  %v6531_v43 = vunpack.i.h.bf16 %v6529_v27  ;;  %v6530_v55 = vunpack.i.l.bf16 %v6529_v27 }
 0x338   : > { %v3395_v52 = vsel %vm1158_vm4, %v6521_v6, %v6506_v13  ;;  %v3394_v1 = vsel %vm1158_vm4, %v6520_v45, %v6505_v0  ;;  %v5649_v60 = vpack.c.bf16 %v3384_v28, %v3383_v7  ;;  %v6546_v14 = vunpack.i.h.bf16 %v8340_v10 }
 0x339   : > { %5635 = vmatprep.subr.msk.bf16.mxu1 %vm8336_vm11, %v5633_v21  ;;  %v5651_v27 = vpack.c.bf16 %v3395_v52, %v3394_v1  ;;  %v6545_v38 = vunpack.i.l.bf16 %v8340_v10 }
 0x33a   : > { %v6534_v3 = vpop.permute.xlu0 %6533  ;;  %5638 = vmatpush1.bf16.msk.msra.mxu1 %vm8336_vm11, %v5636_v48  ;;  %v5235_v48 = vld [vmem:[%s8679_s3 + $0x8] sm:$0x3f] }
 0x33b   : > { %v6559_v40 = vpop.permute.xlu1 %6558  ;;  %5640 = vmatprep.subr.bf16.mxu1 %v5639_v53  ;;  %v6536_v13 = vunpack.i.h.bf16 %v6534_v3  ;;  %v6535_v0 = vunpack.i.l.bf16 %v6534_v3 }
 0x33c   : > { %v6561_v30 = vunpack.i.h.bf16 %v6559_v40  ;;  %v6560_v11 = vunpack.i.l.bf16 %v6559_v40 }
 0x33d   : > { %5234 = vmatmul.mubr.msk.f32.vlgmr.msra.gmra.mrb[32].mxu1 %vm3159_vm12, %v3158_v5 }
 0x33e   : > { %v3266_v57 = vsel %vm843_vm2, %v6531_v43, %v6561_v30  ;;  %v3277_v22 = vsel %vm843_vm2, %v6561_v30, %v6531_v43  ;;  %v3265_v51 = vsel %vm843_vm2, %v6530_v55, %v6560_v11  ;;  %v3276_v23 = vsel %vm843_vm2, %v6560_v11, %v6530_v55  ;;  %v6549_v12 = vpop.permute.xlu0 %6548  ;;  %5642 = vmatpush1.bf16.msra.mxu1 %v5641_v62 }
 0x33f   : > { %v5643_v33 = vpack.c.bf16 %v3266_v57, %v3265_v51  ;;  %v5646_v32 = vpack.c.bf16 %v3277_v22, %v3276_v23  ;;  %v6564_v46 = vpop.permute.xlu1 %6563  ;;  %3352 = vmatprep.mubr.f32.mxu1 %v6763_v56  ;;  %v6551_v26 = vunpack.i.h.bf16 %v6549_v12  ;;  %v6550_v31 = vunpack.i.l.bf16 %v6549_v12 }
 0x340   : > { %v6566_v45 = vunpack.i.h.bf16 %v6564_v46  ;;  %v6565_v53 = vunpack.i.l.bf16 %v6564_v46 }
 0x341   : > { %5645 = vmatprep.subr.msk.bf16.mxu1 %vm8336_vm11, %v5643_v33  ;;  %v3503_v40 = vsel %vm1473_vm5, %v6550_v31, %v6545_v38  ;;  %v3504_v43 = vsel %vm1473_vm5, %v6551_v26, %v6546_v14  ;;  %v3514_v23 = vsel %vm1473_vm5, %v6545_v38, %v6550_v31  ;;  %v3515_v12 = vsel %vm1473_vm5, %v6546_v14, %v6551_v26  ;;  %v5239_v26 = vld [vmem:[%s8679_s3 + $0x10] sm:$0x3f] }
 0x342   : > { %v6554_v21 = vpop.permute.xlu0 %6553  ;;  %5648 = vmatpush1.bf16.msk.msra.mxu1 %vm8336_vm11, %v5646_v32  ;;  %v3701_v52 = vsel %vm1891_vm6, %v6565_v53, %v6566_v45  ;;  %v5659_v33 = vpack.c.bf16 %v3504_v43, %v3503_v40  ;;  %v3716_v32 = vsel %vm1891_vm6, %v6566_v45, %v6565_v53 }
 0x343   : > { %v6574_v6 = vpop.permute.xlu1 %6573  ;;  %5650 = vmatprep.subr.bf16.mxu1 %v5649_v60  ;;  %v6556_v38 = vunpack.i.h.bf16 %v6554_v21 }
 0x344   : > { %v6576_v5 = vunpack.i.h.bf16 %v6574_v6  ;;  %v6575_v62 = vunpack.i.l.bf16 %v6574_v6 }
 0x345   : > { %5238 = vmatmul.mubr.msk.f32.vlgmr.msra.gmra.mrb[34].mxu1 %vm3159_vm12, %v5235_v48  ;;  %v5661_v48 = vpack.c.bf16 %v3515_v12, %v3514_v23 }
 0x346   : > { %v3386_v55 = vsel %vm1158_vm4, %v6536_v13, %v6576_v5  ;;  %v3397_v30 = vsel %vm1158_vm4, %v6576_v5, %v6536_v13  ;;  %v3385_v10 = vsel %vm1158_vm4, %v6535_v0, %v6575_v62  ;;  %v3396_v3 = vsel %vm1158_vm4, %v6575_v62, %v6535_v0  ;;  %v6569_v11 = vpop.permute.xlu0 %6568  ;;  %5652 = vmatpush1.bf16.msra.mxu1 %v5651_v27 }
 0x347   : > { %v5653_v7 = vpack.c.bf16 %v3386_v55, %v3385_v10  ;;  %v5656_v28 = vpack.c.bf16 %v3397_v30, %v3396_v3  ;;  %v6571_v57 = vunpack.i.h.bf16 %v6569_v11  ;;  %v6570_v22 = vunpack.i.l.bf16 %v6569_v11  ;;  %v6579_v51 = vpop.permute.xlu1 %6578  ;;  %3472 = vmatprep.mubr.f32.mxu1 %v6763_v56 }
 0x348   : > { %v6555_v13 = vunpack.i.l.bf16 %v6554_v21  ;;  %v6581_v3 = vunpack.i.h.bf16 %v6579_v51  ;;  %v6580_v11 = vunpack.i.l.bf16 %v6579_v51 }
 0x349   : > { %v3702_v1 = vsel %vm1891_vm6, %v6570_v22, %v6571_v57  ;;  %5655 = vmatprep.subr.msk.bf16.mxu1 %vm8336_vm11, %v5653_v7  ;;  %v3717_v46 = vsel %vm1891_vm6, %v6571_v57, %v6570_v22 }
 0x34a   : > { %v5681_v60 = vpack.c.bf16 %v3702_v1, %v3701_v52  ;;  %v6584_v27 = vpop.permute.xlu0 %6583  ;;  %5658 = vmatpush1.bf16.msk.msra.mxu1 %vm8336_vm11, %v5656_v28  ;;  %v5679_v31 = vpack.c.bf16 %v3717_v46, %v3716_v32  ;;  %v5243_v28 = vld [vmem:[%s8679_s3 + $0x18] sm:$0x3f]  ;;  %v3836_v51 = vsel %vm2206_vm7, %v6581_v3, %v6580_v11 }
 0x34b   : > { %v6589_v14 = vpop.permute.xlu1 %6588  ;;  %5660 = vmatprep.subr.bf16.mxu1 %v5659_v33  ;;  %v6586_v45 = vunpack.i.h.bf16 %v6584_v27  ;;  %v6585_v53 = vunpack.i.l.bf16 %v6584_v27  ;;  %v3821_v33 = vsel %vm2206_vm7, %v6580_v11, %v6581_v3  ;;  %v5251_v3 = vld [vmem:[%s8679_s3 + $0x28] sm:$0x3f] }
 0x34c   : > { %v6591_v0 = vunpack.i.h.bf16 %v6589_v14  ;;  %v6590_v6 = vunpack.i.l.bf16 %v6589_v14  ;;  %5680 = vmatprep.subr.bf16.mxu0 %v5679_v31 }
 0x34d   : > { %5242 = vmatmul.mubr.msk.f32.vlgmr.msra.gmra.mrb[36].mxu1 %vm3159_vm12, %v5239_v26  ;;  %5682 = vmatpush1.bf16.msra.mxu0 %v5681_v60  ;;  %v3837_v57 = vsel %vm2206_vm7, %v6586_v45, %v6585_v53  ;;  %v3822_v32 = vsel %vm2206_vm7, %v6585_v53, %v6586_v45 }
 0x34e   : > { %v3506_v5 = vsel %vm1473_vm5, %v6556_v38, %v6591_v0  ;;  %v3517_v62 = vsel %vm1473_vm5, %v6591_v0, %v6556_v38  ;;  %v3505_v40 = vsel %vm1473_vm5, %v6555_v13, %v6590_v6  ;;  %v6609_v43 = vpop.permute.xlu0 %6608  ;;  %5662 = vmatpush1.bf16.msra.mxu1 %v5661_v48  ;;  %v3516_v55 = vsel %vm1473_vm5, %v6590_v6, %v6555_v13 }
 0x34f   : > { %v5663_v30 = vpack.c.bf16 %v3506_v5, %v3505_v40  ;;  %v6594_v21 = vpop.permute.xlu1 %6593  ;;  %3592 = vmatprep.mubr.f32.mxu1 %v6763_v56  ;;  %v5666_v10 = vpack.c.bf16 %v3517_v62, %v3516_v55  ;;  %v6611_v22 = vunpack.i.h.bf16 %v6609_v43  ;;  %v6610_v23 = vunpack.i.l.bf16 %v6609_v43 }
 0x350   : > { %v6596_v12 = vunpack.i.h.bf16 %v6594_v21  ;;  %v6595_v52 = vunpack.i.l.bf16 %v6594_v21  ;;  %v5689_v60 = vpack.c.bf16 %v3837_v57, %v3836_v51  ;;  %v5691_v53 = vpack.c.bf16 %v3822_v32, %v3821_v33 }
 0x351   : > { %5665 = vmatprep.subr.msk.bf16.mxu1 %vm8336_vm11, %v5663_v30  ;;  %v3957_v31 = vsel %vm2521_vm8, %v6611_v22, %v6610_v23  ;;  %v3942_v55 = vsel %vm2521_vm8, %v6610_v23, %v6611_v22 }
 0x352   : > { %v8399_v7 = vpop.permute.xlu0 %6618  ;;  %5668 = vmatpush1.bf16.msk.msra.mxu1 %vm8336_vm11, %v5666_v10  ;;  %v3703_v27 = vsel %vm1891_vm6, %v6595_v52, %v6596_v12  ;;  %v3718_v26 = vsel %vm1891_vm6, %v6596_v12, %v6595_v52 }
 0x353   : > { %v6599_v1 = vpop.permute.xlu1 %6598  ;;  %5670 = vmatprep.subr.bf16.mxu1 %v5669_v58  ;;  %v6621_v2 = vunpack.i.h.bf16 %v8399_v7  ;;  %v6620_v0 = vunpack.i.l.bf16 %v8399_v7 }
 0x354   : > { %v6601_v48 = vunpack.i.h.bf16 %v6599_v1  ;;  %v6600_v14 = vunpack.i.l.bf16 %v6599_v1 }
 0x355   : > { %5246 = vmatmul.mubr.msk.f32.vlgmr.msra.gmra.mrb[38].mxu1 %vm3159_vm12, %v5243_v28  ;;  %v4077_v57 = vsel %vm2836_vm9, %v6621_v2, %v6620_v0 }
 0x356   : > { %v6634_v46 = vpop.permute.xlu0 %6633  ;;  %5672 = vmatpush1.bf16.msra.mxu1 %v5671_v25  ;;  %3676 = vmatprep.mubr.f32.mxu1 %v6763_v56  ;;  %v3823_v11 = vsel %vm2206_vm7, %v6600_v14, %v6601_v48 }
 0x357   : > { %v6636_v47 = vunpack.i.h.bf16 %v6634_v46  ;;  %v6635_v50 = vunpack.i.l.bf16 %v6634_v46  ;;  %v6604_v58 = vpop.permute.xlu1 %6603  ;;  %5675 = vmatprep.subr.msk.bf16.mxu1 %vm8336_vm11, %v5673_v9  ;;  %v5247_v9 = vld [vmem:[%s8679_s3 + $0x20] sm:$0x3f] }
 0x358   : > { %v6606_v8 = vunpack.i.h.bf16 %v6604_v58  ;;  %v6605_v25 = vunpack.i.l.bf16 %v6604_v58 }
 0x359   : > { %v3704_v38 = vsel %vm1891_vm6, %v6635_v50, %v6636_v47  ;;  %v3719_v13 = vsel %vm1891_vm6, %v6636_v47, %v6635_v50  ;;  %v4062_v50 = vsel %vm2836_vm9, %v6620_v0, %v6621_v2 }
 0x35a   : > { %v5683_v29 = vpack.c.bf16 %v3719_v13, %v3718_v26  ;;  %v5686_v36 = vpack.c.bf16 %v3704_v38, %v3703_v27  ;;  %v6639_v6 = vpop.permute.xlu0 %6638  ;;  %5678 = vmatpush1.bf16.msk.msra.mxu1 %vm8336_vm11, %v5676_v63  ;;  %v3956_v45 = vsel %vm2521_vm8, %v6606_v8, %v6605_v25  ;;  %v3941_v30 = vsel %vm2521_vm8, %v6605_v25, %v6606_v8  ;;  %v5255_v8 = vld [vmem:[%s8679_s3 + $0x30] sm:$0x3f] }
 0x35b   : > { %v6641_v5 = vunpack.i.h.bf16 %v6639_v6  ;;  %v6640_v62 = vunpack.i.l.bf16 %v6639_v6  ;;  %v6614_v40 = vpop.permute.xlu1 %6613  ;;  %5690 = vmatprep.subr.bf16.mxu1 %v5689_v60  ;;  %v5699_v43 = vpack.c.bf16 %v3957_v31, %v3956_v45  ;;  %v3838_v63 = vsel %vm2206_vm7, %v6601_v48, %v6600_v14 }
 0x35c   : > { %v6616_v24 = vunpack.i.h.bf16 %v6614_v40  ;;  %v6615_v59 = vunpack.i.l.bf16 %v6614_v40  ;;  %5685 = vmatprep.subr.msk.bf16.mxu0 %vm8336_vm11, %v5683_v29  ;;  %v5701_v22 = vpack.c.bf16 %v3942_v55, %v3941_v30  ;;  %v5263_v40 = vld [vmem:[%s8679_s3 + $0x40] sm:$0x3f] }
 0x35d   : > { %v3824_v21 = vsel %vm2206_vm7, %v6640_v62, %v6641_v5  ;;  %v3839_v10 = vsel %vm2206_vm7, %v6641_v5, %v6640_v62  ;;  %5250 = vmatmul.mubr.msk.f32.vlgmr.msra.gmra.mrb[40].mxu1 %vm3159_vm12, %v5247_v9  ;;  %5688 = vmatpush1.bf16.msk.msra.mxu0 %vm8336_vm11, %v5686_v36 }
 0x35e   : > { %v5693_v7 = vpack.c.bf16 %v3839_v10, %v3838_v63  ;;  %v6644_v28 = vpop.permute.xlu0 %6643  ;;  %5692 = vmatpush1.bf16.msra.mxu1 %v5691_v53  ;;  %5700 = vmatprep.subr.bf16.mxu0 %v5699_v43  ;;  %v4076_v1 = vsel %vm2836_vm9, %v6616_v24, %v6615_v59  ;;  %v5696_v51 = vpack.c.bf16 %v3824_v21, %v3823_v11  ;;  %v5259_v53 = vld [vmem:[%s8679_s3 + $0x38] sm:$0x3f] }
 0x35f   : > { %v6646_v23 = vunpack.i.h.bf16 %v6644_v28  ;;  %v6645_v12 = vunpack.i.l.bf16 %v6644_v28  ;;  %v6624_v52 = vpop.permute.xlu1 %6623  ;;  %3914 = vmatprep.mubr.f32.mxu1 %v6763_v56  ;;  %v4061_v33 = vsel %vm2836_vm9, %v6615_v59, %v6616_v24  ;;  %v5709_v47 = vpack.c.bf16 %v4077_v57, %v4076_v1 }
 0x360   : > { %v6626_v32 = vunpack.i.h.bf16 %v6624_v52  ;;  %v6625_v46 = vunpack.i.l.bf16 %v6624_v52  ;;  %5254 = vmatmul.mubr.msk.f32.vlgmr.msra.gmra.mrb[40].mxu0 %vm3159_vm12, %v5251_v3  ;;  %5695 = vmatprep.subr.msk.bf16.mxu1 %vm8336_vm11, %v5693_v7  ;;  %v5711_v29 = vpack.c.bf16 %v4062_v50, %v4061_v33 }
 0x361   : > { %v3944_v60 = vsel %vm2521_vm8, %v6645_v12, %v6646_v23  ;;  %v3959_v27 = vsel %vm2521_vm8, %v6646_v23, %v6645_v12  ;;  %5702 = vmatpush1.bf16.msra.mxu0 %v5701_v22  ;;  %4034 = vmatprep.mubr.f32.mxu0 %v6763_v56 }
 0x362   : > { %v3943_v58 = vsel %vm2521_vm8, %v6625_v46, %v6626_v32  ;;  %v3958_v31 = vsel %vm2521_vm8, %v6626_v32, %v6625_v46  ;;  %v6649_v26 = vpop.permute.xlu0 %6648  ;;  %5698 = vmatpush1.bf16.msk.msra.mxu1 %vm8336_vm11, %v5696_v51 }
 0x363   : > { %v5703_v25 = vpack.c.bf16 %v3959_v27, %v3958_v31  ;;  %v5706_v48 = vpack.c.bf16 %v3944_v60, %v3943_v58  ;;  %v6651_v14 = vunpack.i.h.bf16 %v6649_v26  ;;  %v6650_v38 = vunpack.i.l.bf16 %v6649_v26  ;;  %v6629_v13 = vpop.permute.xlu1 %6628  ;;  %5710 = vmatprep.subr.bf16.mxu1 %v5709_v47 }
 0x364   : > { %v6631_v2 = vunpack.i.h.bf16 %v6629_v13  ;;  %v6630_v0 = vunpack.i.l.bf16 %v6629_v13 }
 0x365   : > { %v4064_v36 = vsel %vm2836_vm9, %v6650_v38, %v6651_v14  ;;  %v4079_v6 = vsel %vm2836_vm9, %v6651_v14, %v6650_v38  ;;  %5258 = vmatmul.mubr.msk.f32.vlgmr.msra.gmra.mrb[42].mxu1 %vm3159_vm12, %v5255_v8  ;;  %5705 = vmatprep.subr.msk.bf16.mxu0 %vm8336_vm11, %v5703_v25 }
 0x366   : > { %v4063_v9 = vsel %vm2836_vm9, %v6630_v0, %v6631_v2  ;;  %v4078_v45 = vsel %vm2836_vm9, %v6631_v2, %v6630_v0  ;;  %5708 = vmatpush1.bf16.msk.msra.mxu0 %vm8336_vm11, %v5706_v48  ;;  %5712 = vmatpush1.bf16.msra.mxu1 %v5711_v29 }
 0x367   : > { %v5713_v5 = vpack.c.bf16 %v4079_v6, %v4078_v45  ;;  %v5716_v62 = vpack.c.bf16 %v4064_v36, %v4063_v9  ;;  %4154 = vmatprep.mubr.f32.mxu1 %v6763_v56 }
 0x369   : > { %5262 = vmatmul.mubr.msk.f32.vlgmr.msra.gmra.mrb[42].mxu0 %vm3159_vm12, %v5259_v53  ;;  %5715 = vmatprep.subr.msk.bf16.mxu1 %vm8336_vm11, %v5713_v5 }
 0x36a   : > { %5718 = vmatpush1.bf16.msk.msra.mxu1 %vm8336_vm11, %v5716_v62  ;;  %4259 = vmatprep.mubr.f32.mxu0 %v6763_v56 }
 0x36d   : > { %5266 = vmatmul.mubr.msk.f32.vlgmr.msra.gmra.mrb[44].mxu1 %vm3159_vm12, %v5263_v40 }
 0x36e   : > { %4352 = vmatprep.mubr.f32.mxu1 %v6763_v56 }
 0x410   : > { %v3234_v43 = vpop.f32.mrb[32].mxu1 }
 0x411   : > { %v3236_v55 = vpop.f32.mrb[33].mxu1  ;;  %v3239_v24 = vmul.f32 %v3234_v43, %v8090_v42 }
 0x412   : > { %v3240_v15 = vmul.f32 %v3236_v55, %v8093_v49 }
 0x418   : > { %v3354_v30 = vpop.f32.mrb[34].mxu1 }
 0x419   : > { %v3359_v59 = vmul.f32 %v3354_v30, %v8096_v37  ;;  %v3356_v63 = vpop.f32.mrb[35].mxu1  ;;  %v4169_v30 = vpop.permute.xlu1 %4168 }
 0x41a   : > { %v3360_v21 = vmul.f32 %v3356_v63, %v8107_v61 }
 0x41b   : > { %v3361_v10 = vadd.f32 %v3359_v59, %v3239_v24 }
 0x41c   : > { %v3362_v3 = vadd.f32 %v3360_v21, %v3240_v15 }
 0x420   : > { %v3474_v11 = vpop.f32.mrb[36].mxu1 }
 0x421   : > { %v3479_v7 = vmul.f32 %v3474_v11, %v8132_v16  ;;  %v3476_v28 = vpop.f32.mrb[37].mxu1 }
 0x422   : > { %v3480_v57 = vmul.f32 %v3476_v28, %v8135_v35 }
 0x423   : > { %v3481_v22 = vadd.f32 %v3479_v7, %v3361_v10  ;;  %v5003_v10 = vld [vmem:[%s8682_s6] sm:$0x7] }
 0x424   : > { %v3482_v23 = vadd.f32 %v3480_v57, %v3362_v3 }
 0x428   : > { %v3594_v12 = vpop.f32.mrb[38].mxu1 }
 0x429   : > { %v3599_v52 = vmul.f32 %v3594_v12, %v8159_v4  ;;  %v3596_v1 = vpop.f32.mrb[39].mxu1 }
 0x42a   : > { %v3600_v51 = vmul.f32 %v3596_v1, %v8162_v39 }
 0x42b   : > { %v3601_v33 = vadd.f32 %v3599_v52, %v3481_v22 }
 0x42c   : > { %v3602_v32 = vadd.f32 %v3600_v51, %v3482_v23  ;;  %v4185_v23 = vld [vmem:[%s8681_s5] sm:$0x7] }
 0x430   : > { %v3678_v46 = vpop.f32.mrb[40].mxu1 }
 0x431   : > { %v3683_v60 = vadd.f32 %v3678_v46, %v3601_v33  ;;  %v3680_v27 = vpop.f32.mrb[41].mxu1  ;;  %v5270_v33 = vld [vmem:[%s8681_s5 + $0x4] sm:$0x7] }
 0x432   : > { %v3684_v47 = vadd.f32 %v3680_v27, %v3602_v32 }
 0x433   : > { %v3796_v50 = vpop.f32.mrb[40].mxu0 }
 0x434   : > { %v3801_v58 = vmul.f32 %v3796_v50, %v8178_v54  ;;  %v3798_v31 = vpop.f32.mrb[41].mxu0 }
 0x435   : > { %v3802_v26 = vmul.f32 %v3798_v31, %v8181_v34 }
 0x436   : > { %v3803_v8 = vadd.f32 %v3801_v58, %v3683_v60 }
 0x437   : > { %v3804_v25 = vadd.f32 %v3802_v26, %v3684_v47  ;;  %v5274_v47 = vld [vmem:[%s8681_s5 + $0x8] sm:$0x7] }
 0x438   : > { %v3916_v48 = vpop.f32.mrb[42].mxu1 }
 0x439   : > { %v3921_v14 = vmul.f32 %v3916_v48, %v8190_v20  ;;  %v3918_v38 = vpop.f32.mrb[43].mxu1 }
 0x43a   : > { %v3922_v13 = vmul.f32 %v3918_v38, %v8194_v41 }
 0x43b   : > { %v3923_v29 = vadd.f32 %v3921_v14, %v3803_v8  ;;  %v5278_v8 = vld [vmem:[%s8681_s5 + $0xc] sm:$0x7] }
 0x43c   : > { %v3924_v2 = vadd.f32 %v3922_v13, %v3804_v25  ;;  %v4036_v0 = vpop.f32.mrb[42].mxu0  ;;  %v5282_v25 = vld [vmem:[%s8681_s5 + $0x10] sm:$0x7] }
 0x43d   : > { %v4041_v36 = vmul.f32 %v4036_v0, %v8212_v17  ;;  %v4038_v6 = vpop.f32.mrb[43].mxu0  ;;  %v5286_v0 = vld [vmem:[%s8681_s5 + $0x14] sm:$0x7] }
 0x43e   : > { %v4042_v9 = vmul.f32 %v4038_v6, %v8215_v19 }
 0x43f   : > { %v4043_v45 = vadd.f32 %v4041_v36, %v3923_v29  ;;  %v5290_v36 = vld [vmem:[%s8681_s5 + $0x18] sm:$0x7] }
 0x440   : > { %v4044_v53 = vadd.f32 %v4042_v9, %v3924_v2  ;;  %v4156_v5 = vpop.f32.mrb[44].mxu1 }
 0x441   : > { %v4161_v62 = vmul.f32 %v4156_v5, %v8222_v18  ;;  %v4158_v40 = vpop.f32.mrb[45].mxu1  ;;  %v5294_v5 = vld [vmem:[%s8681_s5 + $0x1c] sm:$0x7] }
 0x442   : > { %v4162_v43 = vmul.f32 %v4158_v40, %v8226_v44 }
 0x443   : > { %v4163_v55 = vadd.f32 %v4161_v62, %v4043_v45 }
 0x444   : > { %v4164_v24 = vadd.f32 %v4162_v43, %v4044_v53 }
 0x445   : > { %v4171_v59 = vadd.f32 %v4169_v30, %v4163_v55 }
 0x446   : > { %v4172_v15 = vadd.f32 %v4169_v30, %v4164_v24  ;;  %v5298_v30 = vld [vmem:[%s8681_s5 + $0x20] sm:$0x7] }
 0x447   : > { %v4173_v63 = vmax.f32 %v4171_v59, 0.0 }
 0x448   : > { %v4174_v21 = vmax.f32 %v4172_v15, 0.0 }
 0x449   : > { %4631 = vrot.lane.b32.xlu0 %v4173_v63, %s8714_s25  ;;  %4180 = vrot.lane.b32.xlu1 %v4173_v63, %s8720_s30 }
 0x44d   : > { %4273 = vrot.lane.b32.xlu1 %v4173_v63, %s8711_s29  ;;  %4176 = vrot.lane.b32.xlu0 %v4174_v21, %s8720_s30 }
 0x451   : > { %4366 = vrot.lane.b32.xlu1 %v4173_v63, %s8712_s27  ;;  %4270 = vrot.lane.b32.xlu0 %v4174_v21, %s8711_s29  ;;  %s350_s29 = sand.u32 1, %s6744_s14  }
 0x452   : > { %s5035_s20 = scalar_lea.sflag [#allocation3], %s350_s29 }
 0x455   : > { %4459 = vrot.lane.b32.xlu1 %v4173_v63, %s8713_s11  ;;  %4363 = vrot.lane.b32.xlu0 %v4174_v21, %s8712_s27 }
 0x459   : > { %4633 = vrot.lane.b32.xlu1 %v4174_v21, %s8714_s25  ;;  %4456 = vrot.lane.b32.xlu0 %v4174_v21, %s8713_s11  ;;  %s5302_s11 = sshll.u32 %s6842_s17, 4  ;;  %s351_s25 = scalar_lea.vmem [#allocation2], %s350_s29 }
 0x45a   : > { %s8634_s26 = scalar_lea.hbm %s8686_s10, %s5302_s11  ;;  %s6765_s17 = smov [#allocation2]  }
 0x45b   : > { %s6694_s18 = sshll.u32 %s6765_s17, 4  ;;  %s6695_s18 = int_to_ptr.vmem [resolvable:$false] %s6694_s18 }
 0x45c   : > { %s6696_s27 = scalar_lea.vmem %s6695_s18, 32 }
 0x45d   : > { %4726 = vrot.lane.b32.xlu1 %v4174_v21, %s8715_s21  ;;  %4724 = vrot.lane.b32.xlu0 %v4173_v63, %s8715_s21  ;;  %s5047_s21 = sshll.u32 %s351_s25, 4  ;;  %s8636_s21 = int_to_ptr.vmem [resolvable:$true] %s5047_s21 }
 0x45e   : > { %s6690_s30 = scalar_lea.vmem %s8636_s21, 16  ;;  %p6697_p0 = scmp.lt.s32.totalorder %s8636_s21, %s6695_s18 }
 0x45f   : > { %p6691_p11 = scmp.ne.s32.totalorder %s8636_s21, %s6690_s30  ;;  %p6698_p1 = scmp.lt.s32.totalorder %s6696_s27, %s6690_s30 }
 0x461   : > { %4819 = vrot.lane.b32.xlu1 %v4174_v21, %s8716_s12  ;;  %4817 = vrot.lane.b32.xlu0 %v4173_v63, %s8716_s12  ;;  %p6692_p12 = pnand %p6691_p11, %p6859_p5  ;;  %p6699_p2 = por %p6698_p1, %p6697_p0 }
 0x463   : > { %p6693_p13 = pneg %p6692_p12 }
 0x465   : > { %4912 = vrot.lane.b32.xlu1 %v4174_v21, %s8717_s28  ;;  %4910 = vrot.lane.b32.xlu0 %v4173_v63, %s8717_s28  ;;  %p6700_p3 = pnand %p6699_p2, %p6693_p13 }
 0x469   : > { %5006 = vperm.xlu0 %6490, %v5003_v10  }
 0x4bb   : > { %v4632_v3 = vpop.permute.xlu0 %4631  ;;  %v4181_v11 = vpop.permute.xlu1 %4180 }
 0x4bf   : > { %v4274_v7 = vpop.permute.xlu1 %4273  ;;  %v4177_v28 = vpop.permute.xlu0 %4176 }
 0x4c0   : > { %v4182_v57 = vsel %vm528_vm1, %v4181_v11, %v4177_v28  ;;  %v4184_v22 = vsel %vm528_vm1, %v4177_v28, %v4181_v11 }
 0x4c1   : > { %5267 = vmatprep.subr.msk.mxu0 %vm625_vm3, %v4182_v57 }
 0x4c2   : > { %5268 = vmatpush1.msk.msra.mxu0 %vm625_vm3, %v4184_v22 }
 0x4c3   : > { %v4367_v12 = vpop.permute.xlu1 %4366  ;;  %v4271_v52 = vpop.permute.xlu0 %4270  ;;  %5269 = vmatmul.mubr.msk.f32.vlgmr.msra.gmra.mrb[44].mxu0 %vm4186_vm13, %v4185_v23 }
 0x4c4   : > { %v4275_v1 = vsel %vm843_vm2, %v4274_v7, %v4271_v52  ;;  %v4277_v51 = vsel %vm843_vm2, %v4271_v52, %v4274_v7  ;;  %4445 = vmatprep.mubr.f32.mxu0 %v6763_v56 }
 0x4c5   : > { %5271 = vmatprep.subr.msk.mxu1 %vm625_vm3, %v4275_v1 }
 0x4c6   : > { %5272 = vmatpush1.msk.msra.mxu1 %vm625_vm3, %v4277_v51 }
 0x4c7   : > { %v4460_v32 = vpop.permute.xlu1 %4459  ;;  %v4364_v46 = vpop.permute.xlu0 %4363  ;;  %5273 = vmatmul.mubr.msk.f32.vlgmr.msra.gmra.mrb[46].mxu1 %vm4186_vm13, %v5270_v33 }
 0x4c8   : > { %v4368_v60 = vsel %vm1158_vm4, %v4367_v12, %v4364_v46  ;;  %v4370_v27 = vsel %vm1158_vm4, %v4364_v46, %v4367_v12  ;;  %4538 = vmatprep.mubr.f32.mxu1 %v6763_v56 }
 0x4c9   : > { %5275 = vmatprep.subr.msk.mxu0 %vm625_vm3, %v4368_v60 }
 0x4ca   : > { %5276 = vmatpush1.msk.msra.mxu0 %vm625_vm3, %v4370_v27 }
 0x4cb   : > { %v4634_v50 = vpop.permute.xlu1 %4633  ;;  %5283 = vmatprep.subr.msk.mxu0 %vm625_vm3, %v4174_v21  ;;  %v4457_v58 = vpop.permute.xlu0 %4456  ;;  %5277 = vmatmul.mubr.msk.f32.vlgmr.msra.gmra.mrb[46].mxu0 %vm4186_vm13, %v5274_v47 }
 0x4cc   : > { %v4461_v31 = vsel %vm1473_vm5, %v4460_v32, %v4457_v58  ;;  %v4463_v26 = vsel %vm1473_vm5, %v4457_v58, %v4460_v32  ;;  %5284 = vmatpush1.msk.msra.mxu0 %vm625_vm3, %v4173_v63  ;;  %4622 = vmatprep.mubr.f32.mxu0 %v6763_v56  ;;  %v4638_v48 = vsel %vm1891_vm6, %v4634_v50, %v4632_v3 }
 0x4cd   : > { %5279 = vmatprep.subr.msk.mxu1 %vm625_vm3, %v4461_v31  ;;  %v4635_v14 = vsel %vm1891_vm6, %v4632_v3, %v4634_v50 }
 0x4ce   : > { %5280 = vmatpush1.msk.msra.mxu1 %vm625_vm3, %v4463_v26 }
 0x4cf   : > { %v4727_v38 = vpop.permute.xlu1 %4726  ;;  %5287 = vmatprep.subr.msk.mxu1 %vm625_vm3, %v4638_v48  ;;  %v4725_v13 = vpop.permute.xlu0 %4724  ;;  %5281 = vmatmul.mubr.msk.f32.vlgmr.msra.gmra.mrb[48].mxu1 %vm4186_vm13, %v5278_v8 }
 0x4d0   : > { %v4728_v29 = vsel %vm2206_vm7, %v4725_v13, %v4727_v38  ;;  %v4731_v2 = vsel %vm2206_vm7, %v4727_v38, %v4725_v13  ;;  %5288 = vmatpush1.msk.msra.mxu1 %vm625_vm3, %v4635_v14  ;;  %5285 = vmatmul.mubr.msk.f32.vlgmr.msra.gmra.mrb[48].mxu0 %vm4186_vm13, %v5282_v25 }
 0x4d1   : > { %5291 = vmatprep.subr.msk.mxu0 %vm625_vm3, %v4731_v2  ;;  %4713 = vmatprep.mubr.f32.mxu1 %v6763_v56 }
 0x4d2   : > { %5292 = vmatpush1.msk.msra.mxu0 %vm625_vm3, %v4728_v29  ;;  %4806 = vmatprep.mubr.f32.mxu0 %v6763_v56 }
 0x4d3   : > { %v4820_v6 = vpop.permute.xlu1 %4819  ;;  %v4818_v9 = vpop.permute.xlu0 %4817  ;;  %5289 = vmatmul.mubr.msk.f32.vlgmr.msra.gmra.mrb[50].mxu1 %vm4186_vm13, %v5286_v0 }
 0x4d4   : > { %v4821_v45 = vsel %vm2521_vm8, %v4818_v9, %v4820_v6  ;;  %v4824_v53 = vsel %vm2521_vm8, %v4820_v6, %v4818_v9  ;;  %5293 = vmatmul.mubr.msk.f32.vlgmr.msra.gmra.mrb[50].mxu0 %vm4186_vm13, %v5290_v36  ;;  %4899 = vmatprep.mubr.f32.mxu1 %v6763_v56 }
 0x4d5   : > { %5295 = vmatprep.subr.msk.mxu1 %vm625_vm3, %v4824_v53  ;;  %4992 = vmatprep.mubr.f32.mxu0 %v6763_v56 }
 0x4d6   : > { %5296 = vmatpush1.msk.msra.mxu1 %vm625_vm3, %v4821_v45 }
 0x4d7   : > { %v4913_v62 = vpop.permute.xlu1 %4912  ;;  %v4911_v40 = vpop.permute.xlu0 %4910  ;;  %5297 = vmatmul.mubr.msk.f32.vlgmr.msra.gmra.mrb[52].mxu1 %vm4186_vm13, %v5294_v5 }
 0x4d8   : > { %v4914_v43 = vsel %vm2836_vm9, %v4911_v40, %v4913_v62  ;;  %v4917_v55 = vsel %vm2836_vm9, %v4913_v62, %v4911_v40 }
 0x4d9   : > { %5299 = vmatprep.subr.msk.mxu0 %vm625_vm3, %v4917_v55 }
 0x4da   : > { %5300 = vmatpush1.msk.msra.mxu0 %vm625_vm3, %v4914_v43 }
 0x4db   : > { %5301 = vmatmul.mubr.msk.f32.vlgmr.msra.gmra.mrb[52].mxu0 %vm4186_vm13, %v5298_v30 }
 0x4e8   : > { %v5007_v6 = vpop.permute.xlu0 %5006 }
 0x596   : > { %v4261_v56 = vpop.f32.mrb[44].mxu0 }
 0x597   : > { %v4263_v24 = vpop.f32.mrb[45].mxu0  ;;  %v4266_v59 = vmul.f32 %v4261_v56, %v8090_v42 }
 0x598   : > { %v4267_v15 = vmul.f32 %v4263_v24, %v8093_v49 }
 0x59a   : > { %v4354_v63 = vpop.f32.mrb[46].mxu1 }
 0x59b   : > { %v4359_v21 = vmul.f32 %v4354_v63, %v8096_v37  ;;  %v4356_v10 = vpop.f32.mrb[47].mxu1 }
 0x59c   : > { %v4360_v3 = vmul.f32 %v4356_v10, %v8107_v61 }
 0x59d   : > { %v4361_v11 = vadd.f32 %v4359_v21, %v4266_v59 }
 0x59e   : > { %v4362_v7 = vadd.f32 %v4360_v3, %v4267_v15  ;;  %v4447_v28 = vpop.f32.mrb[46].mxu0  ;;  %v5030_v15 = vld [vmem:[%s8685_s9] sm:$0x1] }
 0x59f   : > { %v4452_v57 = vmul.f32 %v4447_v28, %v8132_v16  ;;  %v4449_v22 = vpop.f32.mrb[47].mxu0 }
 0x5a0   : > { %v4453_v23 = vmul.f32 %v4449_v22, %v8135_v35 }
 0x5a1   : > { %v4454_v12 = vadd.f32 %v4452_v57, %v4361_v11 }
 0x5a2   : > { %v4455_v52 = vadd.f32 %v4453_v23, %v4362_v7  ;;  %v4540_v1 = vpop.f32.mrb[48].mxu1 }
 0x5a3   : > { %v4545_v42 = vmul.f32 %v4540_v1, %v8159_v4  ;;  %v4542_v51 = vpop.f32.mrb[49].mxu1  ;;  %v4624_v49 = vpop.f32.mrb[48].mxu0 }
 0x5a4   : > { %v4546_v37 = vmul.f32 %v4542_v51, %v8162_v39  ;;  %v4626_v33 = vpop.f32.mrb[49].mxu0 }
 0x5a5   : > { %v4547_v32 = vadd.f32 %v4545_v42, %v4454_v12 }
 0x5a6   : > { %v4715_v61 = vpop.f32.mrb[50].mxu1  ;;  %v4548_v46 = vadd.f32 %v4546_v37, %v4455_v52 }
 0x5a7   : > { %v4629_v60 = vadd.f32 %v4624_v49, %v4547_v32  ;;  %v4720_v27 = vmul.f32 %v4715_v61, %v8178_v54  ;;  %v4717_v16 = vpop.f32.mrb[51].mxu1  ;;  %v4808_v47 = vpop.f32.mrb[50].mxu0 }
 0x5a8   : > { %v4630_v50 = vadd.f32 %v4626_v33, %v4548_v46  ;;  %v4721_v35 = vmul.f32 %v4717_v16, %v8181_v34  ;;  %v4813_v58 = vmul.f32 %v4808_v47, %v8190_v20  ;;  %v4810_v31 = vpop.f32.mrb[51].mxu0 }
 0x5a9   : > { %v4722_v4 = vadd.f32 %v4720_v27, %v4629_v60  ;;  %v4814_v26 = vmul.f32 %v4810_v31, %v8194_v41 }
 0x5aa   : > { %v4723_v8 = vadd.f32 %v4721_v35, %v4630_v50  ;;  %v4901_v39 = vpop.f32.mrb[52].mxu1 }
 0x5ab   : > { %v4815_v25 = vadd.f32 %v4813_v58, %v4722_v4  ;;  %v4906_v48 = vmul.f32 %v4901_v39, %v8212_v17  ;;  %v4903_v14 = vpop.f32.mrb[53].mxu1 }
 0x5ac   : > { %v4816_v38 = vadd.f32 %v4814_v26, %v4723_v8  ;;  %v4907_v54 = vmul.f32 %v4903_v14, %v8215_v19 }
 0x5ad   : > { %v4908_v13 = vadd.f32 %v4906_v48, %v4815_v25 }
 0x5ae   : > { %v4909_v29 = vadd.f32 %v4907_v54, %v4816_v38  ;;  %v4994_v2 = vpop.f32.mrb[52].mxu0 }
 0x5af   : > { %v4999_v34 = vmul.f32 %v4994_v2, %v8222_v18  ;;  %v4996_v0 = vpop.f32.mrb[53].mxu0  ;;  %v5020_v18 = vld [vmem:[%s8684_s8] sm:$0x7] }
 0x5b0   : > { %v5000_v20 = vmul.f32 %v4996_v0, %v8226_v44 }
 0x5b1   : > { %v5001_v36 = vadd.f32 %v4999_v34, %v4908_v13 }
 0x5b2   : > { %v5002_v41 = vadd.f32 %v5000_v20, %v4909_v29 }
 0x5b3   : > { %v5009_v9 = vadd.f32 %v5007_v6, %v5001_v36 }
 0x5b4   : > { %v5010_v45 = vadd.f32 %v5007_v6, %v5002_v41 }
 0x5b5   : > { %v5011_v17 = vmax.f32 %v5009_v9, 0.0 }
 0x5b6   : > { %v5012_v53 = vmax.f32 %v5010_v45, 0.0 }
 0x5b7   : > { %v5014_v5 = vsel %vm5013_vm14, %v5011_v17, 0.0 }
 0x5b8   : > { %v5015_v62 = vsel %vm5013_vm14, %v5012_v53, 0.0 }
 0x5b9   : > { %v5016_v19 = vadd.f32 %v5015_v62, %v5014_v5 }
 0x5bb   : > { %5017 = vadd.xlane.f32.xlu1 %v5016_v19 }
 0x648   : > { %v5018_v40 = vpop.xlane.xlu1 %5017 }
 0x649   : > { %v5019_v44 = vmul.f32 0.00390625, %v5018_v40 }
 0x64b   : > { %v5021_v43 = vmul.f32 %v5020_v18, %v5019_v44 }
 0x64d   : > { %v5023_v55 = vsel %vm5022_vm15, %v5021_v43, 0.0 }
 0x64e   : > { %v5024_v30 = vrot.slane %v5023_v55, 4 }
 0x650   : > { %v5025_v56 = vadd.f32 %v5024_v30, %v5023_v55 }
 0x652   : > { %v5026_v24 = vrot.slane %v5025_v56, 2 }
 0x654   : > { %v5027_v59 = vadd.f32 %v5026_v24, %v5025_v56 }
 0x656   : > { %v5028_v63 = vrot.slane %v5027_v59, 1 }
 0x658   : > { %v5029_v21 = vadd.f32 %v5028_v63, %v5027_v59 }
 0x65a   : > { %v5031_v10 = vadd.f32 %v5030_v15, %v5029_v21 }
 0x65c   : > { %5033 = vst.msk [vmem:[%s351_s25] sm:$0x1] %vm5032_vm0, %v5031_v10 }
 0x65d   : > { %6703 = shalt.err (!%p6700_p3)
}
 0x65e   : > { %s6704_s29 = scalar_lea.hbm %s8634_s26, 16  ;;  %s6708_s12 = scalar_lea.hbm %s8686_s10, 32 }
 0x65f   : > { %p6705_p4 = scmp.ne.s32.totalorder %s8634_s26, %s6704_s29  ;;  %p6709_p9 = scmp.lt.u32.totalorder %s8634_s26, %s8686_s10 }
 0x660   : > { %p6710_p10 = scmp.lt.u32.totalorder %s6708_s12, %s6704_s29  ;;  %p6712_p12 = scmp.lt.u32.totalorder %s6704_s29, %s8634_s26 }
 0x661   : > { %p6706_p7 = pnand %p6705_p4, %p6859_p5 }
 0x662   : > { %p6711_p11 = por %p6710_p10, %p6709_p9 }
 0x663   : > { %p6707_p8 = pneg %p6706_p7 }
 0x664   : > { %p6713_p13 = por %p6712_p12, %p6711_p11 }
 0x666   : > { %p6714_p0 = pnand %p6713_p13, %p6707_p8 }
 0x668   : > { %6717 = shalt.err (!%p6714_p0)
}
 0x669   : > { %5720 = dma.vmem_to_hbm [thread:$0]  (%p6859_p5), %s8636_s21, 16, %s8634_s26, %s5035_s20  }
 0x66a PF: > { %p5726_p1 = scmp.ge.s32.totalorder %s6752_s16, 2  ;;  %s5059_s30 = sand.u32 1, %s6740_s13  }
 0x66b   : > { %s5060_s18 = scalar_lea.sflag [#allocation3], %s5059_s30 }
 0x66c   : > { %p5723_p2 = pnand %p5726_p1, %p6863_p6 }
 0x66e   : > { %6735 = dma.done.wait (!%p5723_p2), %s5060_s18, 16  }
 0x66f   : > { %6737 = vsyncadd (!%p5723_p2), %s5060_s18, 4294967280  ;;  %p20_p3 = scmp.ge.s32.totalorder %s6846_s19, 4   ;;  %s8721_s13 = smov %s6744_s14 }
 0x670   : > { %s8722_s14 = smov %s6748_s15  ;;  %s8723_s15 = smov %s6857_s22 }
 0x671   : > { %s8724_s16 = smov %s6846_s19  ;;  %22 = sbr.rel (!%p20_p3) target bundleno = 3 (0x3), region = 126 }
 0x678   :  { %5064 = vsyncpa [#allocation3], 1 }
 0x679   :  { %5066 = vsyncpa [#allocation3 + $0x1], 1 }

</bundles_post_ra>
